<compile_context>
chip_gen: v5e
topology: v5e:2x2
jax: 0.10.0
libtpu: 0.0.40
codegen_flags: <defaults>
</compile_context>

<pallas_src>
import functools

import jax
import jax.numpy as jnp
from jax import lax
from jax.experimental import pallas as pl
from jax.experimental.pallas import tpu as pltpu


def _residual_block_kernel(x_ref, w1_ref, w2_ref, shift_ref, out_ref):
    """One grid step processes `nb` batch samples with 2 fused MXU matmuls.

    x_ref    : (nb, D, F)   lane-dense f32 input (also the residual)
    w1_ref   : (3F, F)      bf16 conv1 block-banded weight (BN1 scale folded)
    w2_ref   : (3F, F)      bf16 conv2 block-banded weight (BN2 scale folded)
    shift_ref: (2, F)       f32 rows = [shift1, shift2] (bias + BN shift)
    out_ref  : (nb, D, F)
    """
    nb, d, f = out_ref.shape
    m = nb * d

    x = x_ref[...]                                   # (nb, d, f) f32, residual
    xb = x.astype(jnp.bfloat16)

    sh1 = shift_ref[0:1, :]                          # (1, f)
    sh2 = shift_ref[1:2, :].reshape(1, 1, f)         # (1, 1, f)

    def cat3(a):
        """Fuse the 3 depth taps along K: (nb, d, f) -> (nb*d, 3f).

        Row (s, d) holds [a[s, d-1], a[s, d], a[s, d+1]] with per-sample
        zero padding at the depth boundaries.
        """
        zrow = jnp.zeros((nb, 1, f), a.dtype)
        prev = jnp.concatenate([zrow, a[:, :d - 1, :]], axis=1)   # a[d-1]
        nxt = jnp.concatenate([a[:, 1:, :], zrow], axis=1)        # a[d+1]
        return jnp.concatenate([prev, a, nxt], axis=-1).reshape(m, 3 * f)

    # ---- conv1 + bias + BN1 + ReLU : one (m, 3f) @ (3f, f) MXU matmul ----
    y = jnp.dot(cat3(xb), w1_ref[...], preferred_element_type=jnp.float32)
    y = jnp.maximum(y + sh1, 0.0)                    # (m, f) f32

    # ---- conv2 + bias + BN2, then residual ----
    yb = y.astype(jnp.bfloat16).reshape(nb, d, f)
    acc2 = jnp.dot(cat3(yb), w2_ref[...], preferred_element_type=jnp.float32)
    out_ref[...] = (acc2.reshape(nb, d, f) + sh2 + x).astype(out_ref.dtype)


def _banded_weight(w_dhwio, H, W):
    """Fold the kh/kw taps and the H/W zero padding of a 3x3x3 conv into dense
    block-banded matrices, one per kd tap.

    w_dhwio: (3, 3, 3, Cin, Cout)  ->  (3, H*W*Cin, H*W*Cout)   such that
      y[d, (h,w,co)] = sum_kd  x_flat[d + kd - 1] @ result[kd]
    (out-of-range d handled in-kernel via the zero halo rows of cat3).
    """
    kd_, kh_, kw_, cin, cout = w_dhwio.shape
    # Sh[h, a, p] = 1  iff  p == h + a - 1   (kh tap + H zero padding)
    sh = (jnp.arange(H)[None, None, :] ==
          (jnp.arange(H)[:, None, None] + jnp.arange(kh_)[None, :, None] - 1)
          ).astype(w_dhwio.dtype)
    sw = (jnp.arange(W)[None, None, :] ==
          (jnp.arange(W)[:, None, None] + jnp.arange(kw_)[None, :, None] - 1)
          ).astype(w_dhwio.dtype)
    big = jnp.einsum('hap,wbq,dabio->dpqihwo', sh, sw, w_dhwio,
                     precision=lax.Precision.HIGHEST)   # one-hot: exact copy
    return big.reshape(kd_, H * W * cin, H * W * cout)


@functools.partial(jax.jit, static_argnames=("eps", "batch_block"))
def residual_block_v2(x, w1, b1, g1, beta1, mean1, var1,
                      w2, b2, g2, beta2, mean2, var2,
                      eps=1e-5, batch_block=1):
    """x: (N, D, H, W, C) float32 (NDHWC).  Returns (N, D, H, W, C).

    batch_block: samples per grid step.  Keep the grid >= 2 and "parallel"
    on v7x (2 TCs/chip); use batch_block=N on single-TC v5e/v6e.  When N
    allows, raise it toward batch_block*D in {128, 256} multiples to fill
    the MXU rows.
    """
    N, D, H, W, C = x.shape
    F = H * W * C
    assert N % batch_block == 0

    # Fold conv bias + eval-mode BatchNorm: scale into the weights, shift into
    # one additive per-lane vector (tiled to the lane-dense F layout).
    s1 = g1 * lax.rsqrt(var1 + eps)
    s2 = g2 * lax.rsqrt(var2 + eps)
    shift1 = (b1 - mean1) * s1 + beta1
    shift2 = (b2 - mean2) * s2 + beta2
    shifts = jnp.stack([jnp.tile(shift1, H * W),
                        jnp.tile(shift2, H * W)], axis=0).astype(jnp.float32)

    # Block-banded weights, kd taps stacked along K: (3F, F), bf16.
    w1_big = _banded_weight((w1 * s1).astype(jnp.float32), H, W
                            ).reshape(3 * F, F).astype(jnp.bfloat16)
    w2_big = _banded_weight((w2 * s2).astype(jnp.float32), H, W
                            ).reshape(3 * F, F).astype(jnp.bfloat16)

    x_flat = x.reshape(N, D, F)

    out_flat = pl.pallas_call(
        _residual_block_kernel,
        out_shape=jax.ShapeDtypeStruct((N, D, F), x.dtype),
        grid_spec=pltpu.PrefetchScalarGridSpec(
            num_scalar_prefetch=0,
            grid=(N // batch_block,),
            in_specs=[
                pl.BlockSpec((batch_block, D, F), lambda n: (n, 0, 0)),
                pl.BlockSpec((3 * F, F), lambda n: (0, 0)),
                pl.BlockSpec((3 * F, F), lambda n: (0, 0)),
                pl.BlockSpec((2, F), lambda n: (0, 0)),
            ],
            out_specs=pl.BlockSpec((batch_block, D, F), lambda n: (n, 0, 0)),
        ),
        compiler_params=pltpu.CompilerParams(
            dimension_semantics=("parallel",),
            vmem_limit_bytes=32 * 1024 * 1024),
    )(x_flat, w1_big, w2_big, shifts)

    return out_flat.reshape(N, D, H, W, C)


def _reference(x, w1, b1, g1, beta1, mean1, var1,
               w2, b2, g2, beta2, mean2, var2, eps=1e-5):
    """Pure-JAX reference matching the PyTorch forward (eval-mode BN)."""
    dn = lax.conv_dimension_numbers(x.shape, w1.shape, ("NDHWC", "DHWIO", "NDHWC"))
    y = lax.conv_general_dilated(x, w1, (1, 1, 1), "SAME", dimension_numbers=dn,
                                 precision=lax.Precision.HIGHEST) + b1
    y = (y - mean1) / jnp.sqrt(var1 + eps) * g1 + beta1
    y = jnp.maximum(y, 0.0)
    y = lax.conv_general_dilated(y, w2, (1, 1, 1), "SAME", dimension_numbers=dn,
                                 precision=lax.Precision.HIGHEST) + b2
    y = (y - mean2) / jnp.sqrt(var2 + eps) * g2 + beta2
    return y + x


if __name__ == "__main__":
    N, C, D, H, W = 2, 8, 8, 8, 8  # PyTorch NCDHW (2,8,8,8,8) -> NDHWC here
    key = jax.random.PRNGKey(0)
    keys = jax.random.split(key, 12)

    # Input (NDHWC)
    x = jax.random.normal(keys[0], (N, D, H, W, C), dtype=jnp.float32)

    # Conv weights (DHWIO), PyTorch-style uniform(-k, k), k = 1/sqrt(Cin*27)
    fan_in = C * 27
    k = 1.0 / jnp.sqrt(jnp.float32(fan_in))
    w1 = jax.random.uniform(keys[1], (3, 3, 3, C, C), jnp.float32, -k, k)
    b1 = jax.random.uniform(keys[2], (C,), jnp.float32, -k, k)
    w2 = jax.random.uniform(keys[3], (3, 3, 3, C, C), jnp.float32, -k, k)
    b2 = jax.random.uniform(keys[4], (C,), jnp.float32, -k, k)

    # BatchNorm (eval mode) parameters / running stats
    g1 = 1.0 + 0.1 * jax.random.normal(keys[5], (C,), jnp.float32)
    beta1 = 0.1 * jax.random.normal(keys[6], (C,), jnp.float32)
    mean1 = 0.1 * jax.random.normal(keys[7], (C,), jnp.float32)
    var1 = 1.0 + 0.1 * jax.random.uniform(keys[8], (C,), jnp.float32)
    g2 = 1.0 + 0.1 * jax.random.normal(keys[9], (C,), jnp.float32)
    beta2 = 0.1 * jax.random.normal(keys[10], (C,), jnp.float32)
    mean2 = 0.1 * jax.random.normal(keys[11], (C,), jnp.float32)
    var2 = jnp.ones((C,), jnp.float32) * 1.3

    ref = _reference(x, w1, b1, g1, beta1, mean1, var1,
                     w2, b2, g2, beta2, mean2, var2)

    # Grid of 2 parallel steps (v7x: one per TensorCore).
    out = residual_block_v2(x, w1, b1, g1, beta1, mean1, var1,
                            w2, b2, g2, beta2, mean2, var2)
    out = jax.block_until_ready(out)
    assert out.shape == (N, D, H, W, C)
    # bf16 MXU pass -> allow bf16 rounding.
    assert jnp.allclose(out, ref, atol=3e-2, rtol=3e-2), (
        f"max abs err {jnp.max(jnp.abs(out - ref))}")

    # Whole batch in a single grid step (v5e/v6e: amortize per-step overhead,
    # and fused M doubles to batch_block*D = 16).
    out_1step = residual_block_v2(x, w1, b1, g1, beta1, mean1, var1,
                                  w2, b2, g2, beta2, mean2, var2,
                                  batch_block=N)
    out_1step = jax.block_until_ready(out_1step)
    assert jnp.allclose(out_1step, ref, atol=3e-2, rtol=3e-2), (
        f"max abs err {jnp.max(jnp.abs(out_1step - ref))}")

    print("KERNEL_OK")
</pallas_src>

<mosaic_0001>
module attributes {stable_mosaic.version = 11 : i64} {
  func.func @_residual_block_kernel(%arg0: i32, %arg1: memref<1x8x512xf32, #tpu.memory_space<vmem>>, %arg2: memref<1536x512xbf16, #tpu.memory_space<vmem>>, %arg3: memref<1536x512xbf16, #tpu.memory_space<vmem>>, %arg4: memref<2x512xf32, #tpu.memory_space<vmem>>, %arg5: memref<1x8x512xf32, #tpu.memory_space<vmem>>) attributes {dimension_semantics = [#tpu.dimension_semantics<parallel>], iteration_bounds = array<i64: 2>, scalar_prefetch = 0 : i64, scratch_operands = 0 : i64, tpu.core_type = #tpu.core_type<tc>, window_params = [{transform_indices = @transform_0, window_bounds = array<i64: 1, 8, 512>}, {pipeline_mode = #tpu.pipeline_mode<synchronous>, transform_indices = @transform_1, window_bounds = array<i64: 1536, 512>}, {pipeline_mode = #tpu.pipeline_mode<synchronous>, transform_indices = @transform_2, window_bounds = array<i64: 1536, 512>}, {pipeline_mode = #tpu.pipeline_mode<synchronous>, transform_indices = @transform_3, window_bounds = array<i64: 2, 512>}, {transform_indices = @transform_4, window_bounds = array<i64: 1, 8, 512>}]} {
    %c0 = arith.constant 0 : index
    %c0_0 = arith.constant 0 : index
    %c0_1 = arith.constant 0 : index
    %0 = vector.load %arg1[%c0, %c0_0, %c0_1] : memref<1x8x512xf32, #tpu.memory_space<vmem>>, vector<1x8x512xf32>
    %1 = arith.truncf %0 : vector<1x8x512xf32> to vector<1x8x512xbf16>
    %c0_2 = arith.constant 0 : index
    %c0_3 = arith.constant 0 : index
    %2 = vector.load %arg4[%c0_2, %c0_3] : memref<2x512xf32, #tpu.memory_space<vmem>>, vector<1x512xf32>
    %c1 = arith.constant 1 : index
    %c0_4 = arith.constant 0 : index
    %3 = vector.load %arg4[%c1, %c0_4] : memref<2x512xf32, #tpu.memory_space<vmem>>, vector<1x512xf32>
    %4 = vector.shape_cast %3 : vector<1x512xf32> to vector<1x1x512xf32>
    %cst = arith.constant 0.000000e+00 : bf16
    %5 = vector.broadcast %cst : bf16 to vector<1x1x512xbf16>
    %6 = vector.extract_strided_slice %1 {offsets = [0, 0, 0], sizes = [1, 7, 512], strides = [1, 1, 1]} : vector<1x8x512xbf16> to vector<1x7x512xbf16>
    %7 = tpu.concatenate %5, %6 in 1 : vector<1x1x512xbf16>, vector<1x7x512xbf16> -> vector<1x8x512xbf16>
    %8 = vector.extract_strided_slice %1 {offsets = [0, 1, 0], sizes = [1, 7, 512], strides = [1, 1, 1]} : vector<1x8x512xbf16> to vector<1x7x512xbf16>
    %9 = tpu.concatenate %8, %5 in 1 : vector<1x7x512xbf16>, vector<1x1x512xbf16> -> vector<1x8x512xbf16>
    %10 = tpu.concatenate %7, %1, %9 in 2 : vector<1x8x512xbf16>, vector<1x8x512xbf16>, vector<1x8x512xbf16> -> vector<1x8x1536xbf16>
    %11 = vector.shape_cast %10 : vector<1x8x1536xbf16> to vector<8x1536xbf16>
    %c0_5 = arith.constant 0 : index
    %c0_6 = arith.constant 0 : index
    %12 = vector.load %arg2[%c0_5, %c0_6] : memref<1536x512xbf16, #tpu.memory_space<vmem>>, vector<1536x512xbf16>
    %cst_7 = arith.constant dense<0.000000e+00> : vector<8x512xf32>
    %13 = tpu.matmul %11, %12, %cst_7 {dimension_numbers = #tpu.dot_dimension_numbers<[1], [0], [0], [1], [0, 0, 1, 1], [], []>} : vector<8x1536xbf16>, vector<1536x512xbf16>, vector<8x512xf32> -> vector<8x512xf32>
    %14 = vector.broadcast %2 : vector<1x512xf32> to vector<8x512xf32>
    %15 = arith.addf %13, %14 : vector<8x512xf32>
    %cst_8 = arith.constant 0.000000e+00 : f32
    %16 = vector.broadcast %cst_8 : f32 to vector<8x512xf32>
    %17 = arith.maximumf %15, %16 : vector<8x512xf32>
    %18 = arith.truncf %17 : vector<8x512xf32> to vector<8x512xbf16>
    %19 = vector.shape_cast %18 : vector<8x512xbf16> to vector<1x8x512xbf16>
    %cst_9 = arith.constant 0.000000e+00 : bf16
    %20 = vector.broadcast %cst_9 : bf16 to vector<1x1x512xbf16>
    %21 = vector.extract_strided_slice %19 {offsets = [0, 0, 0], sizes = [1, 7, 512], strides = [1, 1, 1]} : vector<1x8x512xbf16> to vector<1x7x512xbf16>
    %22 = tpu.concatenate %20, %21 in 1 : vector<1x1x512xbf16>, vector<1x7x512xbf16> -> vector<1x8x512xbf16>
    %23 = vector.extract_strided_slice %19 {offsets = [0, 1, 0], sizes = [1, 7, 512], strides = [1, 1, 1]} : vector<1x8x512xbf16> to vector<1x7x512xbf16>
    %24 = tpu.concatenate %23, %20 in 1 : vector<1x7x512xbf16>, vector<1x1x512xbf16> -> vector<1x8x512xbf16>
    %25 = tpu.concatenate %22, %19, %24 in 2 : vector<1x8x512xbf16>, vector<1x8x512xbf16>, vector<1x8x512xbf16> -> vector<1x8x1536xbf16>
    %26 = vector.shape_cast %25 : vector<1x8x1536xbf16> to vector<8x1536xbf16>
    %c0_10 = arith.constant 0 : index
    %c0_11 = arith.constant 0 : index
    %27 = vector.load %arg3[%c0_10, %c0_11] : memref<1536x512xbf16, #tpu.memory_space<vmem>>, vector<1536x512xbf16>
    %cst_12 = arith.constant dense<0.000000e+00> : vector<8x512xf32>
    %28 = tpu.matmul %26, %27, %cst_12 {dimension_numbers = #tpu.dot_dimension_numbers<[1], [0], [0], [1], [0, 0, 1, 1], [], []>} : vector<8x1536xbf16>, vector<1536x512xbf16>, vector<8x512xf32> -> vector<8x512xf32>
    %29 = vector.shape_cast %28 : vector<8x512xf32> to vector<1x8x512xf32>
    %30 = vector.broadcast %4 : vector<1x1x512xf32> to vector<1x8x512xf32>
    %31 = arith.addf %29, %30 : vector<1x8x512xf32>
    %32 = arith.addf %31, %0 : vector<1x8x512xf32>
    %c0_13 = arith.constant 0 : index
    %c0_14 = arith.constant 0 : index
    %c0_15 = arith.constant 0 : index
    %33 = vector.load %arg5[%c0_13, %c0_14, %c0_15] : memref<1x8x512xf32, #tpu.memory_space<vmem>>, vector<1x8x512xf32>
    tpu.vector_store %arg5[%c0_13, %c0_14, %c0_15], %32 {strides = array<i32>} : memref<1x8x512xf32, #tpu.memory_space<vmem>>, vector<1x8x512xf32>,
    return
  }
  func.func @transform_0(%arg0: i32) -> (i32, i32, i32) {
    %c0_i32 = arith.constant 0 : i32
    %c0_i32_0 = arith.constant 0 : i32
    %c0_i32_1 = arith.constant 0 : i32
    return %arg0, %c0_i32, %c0_i32_0 : i32, i32, i32
  }
  func.func @transform_1(%arg0: i32) -> (i32, i32) {
    %c0_i32 = arith.constant 0 : i32
    %c0_i32_0 = arith.constant 0 : i32
    %c0_i32_1 = arith.constant 0 : i32
    return %c0_i32, %c0_i32_0 : i32, i32
  }
  func.func @transform_2(%arg0: i32) -> (i32, i32) {
    %c0_i32 = arith.constant 0 : i32
    %c0_i32_0 = arith.constant 0 : i32
    %c0_i32_1 = arith.constant 0 : i32
    return %c0_i32, %c0_i32_0 : i32, i32
  }
  func.func @transform_3(%arg0: i32) -> (i32, i32) {
    %c0_i32 = arith.constant 0 : i32
    %c0_i32_0 = arith.constant 0 : i32
    %c0_i32_1 = arith.constant 0 : i32
    return %c0_i32, %c0_i32_0 : i32, i32
  }
  func.func @transform_4(%arg0: i32) -> (i32, i32, i32) {
    %c0_i32 = arith.constant 0 : i32
    %c0_i32_0 = arith.constant 0 : i32
    %c0_i32_1 = arith.constant 0 : i32
    return %arg0, %c0_i32, %c0_i32_0 : i32, i32, i32
  }
}

</mosaic_0001>

<bundles_post_ra>
// kernel: tile.13
= control target key start
LH: loop header
LB: loop body
LE: loop exit
PB: predicated region body
PF: predicated region fallthrough
CT: control target
= control target key end

     0   :  { %s64_s0 = inlined_call_operand.vmem [shape: f32[8], index: 0, kind: input, shape index: {}]   ;;  %s65_s1 = inlined_call_operand.vmem [shape: f32[64,8], index: 1, kind: output, shape index: {}]  }
   0x1   :  { %v4_v0 = vld [vmem:[%s64_s0] ss:$0 sm:$0xff] }
   0x2   :  { %5 = vst [vmem:[%s65_s1] sm:$0xff] %v4_v0 }
   0x3   :  { %20 = vst [vmem:[%s65_s1 + $0x8] sm:$0xff] %v4_v0 }
   0x4   :  { %21 = vst [vmem:[%s65_s1 + $0x10] sm:$0xff] %v4_v0 }
   0x5   :  { %22 = vst [vmem:[%s65_s1 + $0x18] sm:$0xff] %v4_v0 }
   0x6   :  { %23 = vst [vmem:[%s65_s1 + $0x20] sm:$0xff] %v4_v0 }
   0x7   :  { %24 = vst [vmem:[%s65_s1 + $0x28] sm:$0xff] %v4_v0 }
   0x8   :  { %25 = vst [vmem:[%s65_s1 + $0x30] sm:$0xff] %v4_v0 }
   0x9   :  { %26 = vst [vmem:[%s65_s1 + $0x38] sm:$0xff] %v4_v0 }

// kernel: tile.18
= control target key start
LH: loop header
LB: loop body
LE: loop exit
PB: predicated region body
PF: predicated region fallthrough
CT: control target
= control target key end

     0   :  { %vm6_vm0 = vcmask 1043458   ;;  %s11_s6 = smov 3  ;;  %s14_s7 = smov 12  ;;  %vm8_vm1 = vcmask 64512   ;;  %vm20_vm2 = vcmask 1048512   ;;  %vm32_vm3 = vcmask 982912   ;;  %s411_s0 = inlined_call_operand.vmem [shape: f32[64,8], index: 0, kind: input, shape index: {}]   ;;  %s412_s1 = inlined_call_operand.vmem [shape: f32[1,512], index: 1, kind: output, shape index: {}]  }
   0x1   :  { %v214_v0 = vld [vmem:[%s411_s0 + $0xf] ss:$16 sm:%s11_s6]   ;;  %s35_s12 = smov 3  ;;  %s38_s15 = smov 12  ;;  %vm44_vm4 = vcmask 917312   ;;  %vm56_vm5 = vcmask 851712  }
   0x2   :  { %v215_v1 = vld [vmem:[%s411_s0 + $0xf] ss:$16 sm:%s14_s7]   ;;  %v218_v3 = vld [vmem:[%s411_s0 + $0xd] ss:$16 sm:%s35_s12]   ;;  %s262_s16 = smov 120   ;;  %s23_s19 = smov 3 }
   0x3   :  { %v17_v2 = vsel %vm6_vm0, %v215_v1, %v214_v0  ;;  %v219_v4 = vld [vmem:[%s411_s0 + $0xd] ss:$16 sm:%s38_s15]   ;;  %s26_s20 = smov 12  ;;  %v216_v6 = vld [vmem:[%s411_s0 + $0xe] ss:$16 sm:%s23_s19]   ;;  %s47_s23 = smov 3 }
   0x4   :  { %18 = vrot.lane.b32.xlu0 %v17_v2, %s262_s16  ;;  %v41_v5 = vsel %vm6_vm0, %v219_v4, %v218_v3  ;;  %s263_s24 = smov 104   ;;  %v217_v7 = vld [vmem:[%s411_s0 + $0xe] ss:$16 sm:%s26_s20]   ;;  %s50_s27 = smov 12  ;;  %vm68_vm6 = vcmask 786112   ;;  %vm80_vm7 = vcmask 720512  }
   0x5   :  { %42 = vrot.lane.b32.xlu1 %v41_v5, %s263_s24  ;;  %v220_v8 = vld [vmem:[%s411_s0 + $0xc] ss:$16 sm:%s47_s23]   ;;  %v29_v10 = vsel %vm6_vm0, %v217_v7, %v216_v6  ;;  %s83_s3 = smov 3  ;;  %s86_s4 = smov 12  ;;  %vm92_vm8 = vcmask 654912   ;;  %vm104_vm9 = vcmask 589312  }
   0x6   :  { %v221_v9 = vld [vmem:[%s411_s0 + $0xc] ss:$16 sm:%s50_s27]   ;;  %s264_s5 = smov 112   ;;  %s95_s6 = smov 3  ;;  %v226_v12 = vld [vmem:[%s411_s0 + $0x9] ss:$16 sm:%s83_s3]  }
   0x7   :  { %v53_v11 = vsel %vm6_vm0, %v221_v9, %v220_v8  ;;  %s98_s7 = smov 12  ;;  %v227_v13 = vld [vmem:[%s411_s0 + $0x9] ss:$16 sm:%s86_s4]   ;;  %s59_s12 = smov 3  ;;  %v228_v16 = vld [vmem:[%s411_s0 + $0x8] ss:$16 sm:%s95_s6]  }
   0x8   :  { %s62_s13 = smov 12  ;;  %s265_s14 = smov 96   ;;  %v222_v14 = vld [vmem:[%s411_s0 + $0xb] ss:$16 sm:%s59_s12]   ;;  %v229_v17 = vld [vmem:[%s411_s0 + $0x8] ss:$16 sm:%s98_s7]   ;;  %v89_v19 = vsel %vm6_vm0, %v227_v13, %v226_v12 }
   0x9   :  { %v223_v15 = vld [vmem:[%s411_s0 + $0xb] ss:$16 sm:%s62_s13]   ;;  %s266_s23 = smov 88   ;;  %s71_s24 = smov 3  ;;  %v101_v20 = vsel %vm6_vm0, %v229_v17, %v228_v16  ;;  %vm116_vm10 = vcmask 523712   ;;  %vm128_vm11 = vcmask 458112  }
   0xa   :  { %v65_v18 = vsel %vm6_vm0, %v223_v15, %v222_v14  ;;  %s119_s25 = smov 3  ;;  %s74_s26 = smov 12  ;;  %v224_v21 = vld [vmem:[%s411_s0 + $0xa] ss:$16 sm:%s71_s24]   ;;  %vm140_vm12 = vcmask 392512   ;;  %vm152_vm13 = vcmask 326912  }
   0xb   :  { %66 = vrot.lane.b32.xlu2 %v65_v18, %s266_s23  ;;  %s122_s27 = smov 12  ;;  %v225_v22 = vld [vmem:[%s411_s0 + $0xa] ss:$16 sm:%s74_s26]   ;;  %s267_s3 = smov 72   ;;  %vm164_vm14 = vcmask 261312   ;;  %vm176_vm15 = vcmask 195712  }
   0xc   :  { %30 = vrot.lane.b32.xlu0 %v29_v10, %s264_s5  ;;  %v232_v23 = vld [vmem:[%s411_s0 + $0x6] ss:$16 sm:%s119_s25]   ;;  %s131_s6 = smov 3  ;;  %s134_s7 = smov 12  ;;  %v77_v25 = vsel %vm6_vm0, %v225_v22, %v224_v21 }
   0xd   :  { %54 = vrot.lane.b32.xlu1 %v53_v11, %s265_s14  ;;  %s268_s8 = smov 64   ;;  %v233_v24 = vld [vmem:[%s411_s0 + $0x6] ss:$16 sm:%s122_s27]   ;;  %s107_s15 = smov 3 }
   0xe   :  { %v234_v26 = vld [vmem:[%s411_s0 + $0x5] ss:$16 sm:%s131_s6]   ;;  %s110_s16 = smov 12  ;;  %v125_v28 = vsel %vm6_vm0, %v233_v24, %v232_v23  ;;  %s269_s17 = smov 80   ;;  %v230_v30 = vld [vmem:[%s411_s0 + $0x7] ss:$16 sm:%s107_s15]  }
   0xf   :  { %v235_v27 = vld [vmem:[%s411_s0 + $0x5] ss:$16 sm:%s134_s7]   ;;  %s155_s18 = smov 3  ;;  %s158_s19 = smov 12  ;;  %v231_v31 = vld [vmem:[%s411_s0 + $0x7] ss:$16 sm:%s110_s16]  }
  0x10   :  { %v137_v29 = vsel %vm6_vm0, %v235_v27, %v234_v26  ;;  %s270_s24 = smov 48   ;;  %v238_v32 = vld [vmem:[%s411_s0 + $0x3] ss:$16 sm:%s155_s18]   ;;  %s167_s27 = smov 3  ;;  %v113_v34 = vsel %vm6_vm0, %v231_v31, %v230_v30 }
  0x11   :  { %s170_s28 = smov 12  ;;  %s271_s29 = smov 40   ;;  %v239_v33 = vld [vmem:[%s411_s0 + $0x3] ss:$16 sm:%s158_s19]   ;;  %v240_v35 = vld [vmem:[%s411_s0 + $0x2] ss:$16 sm:%s167_s27]  }
  0x12   :  { %v241_v36 = vld [vmem:[%s411_s0 + $0x2] ss:$16 sm:%s170_s28]   ;;  %s143_s7 = smov 3  ;;  %v161_v37 = vsel %vm6_vm0, %v239_v33, %v238_v32  ;;  %s272_s9 = smov 56  }
  0x13   :  { %78 = vrot.lane.b32.xlu2 %v77_v25, %s269_s17  ;;  %v173_v38 = vsel %vm6_vm0, %v241_v36, %v240_v35  ;;  %v236_v39 = vld [vmem:[%s411_s0 + $0x4] ss:$16 sm:%s143_s7]   ;;  %s273_s14 = smov 24   ;;  %s274_s15 = smov 16  }
  0x14   :  { %90 = vrot.lane.b32.xlu0 %v89_v19, %s267_s3  ;;  %s179_s16 = smov 3  ;;  %s182_s17 = smov 12 }
  0x15   :  { %102 = vrot.lane.b32.xlu1 %v101_v20, %s268_s8  ;;  %s146_s8 = smov 12  ;;  %s275_s18 = smov 32   ;;  %v242_v42 = vld [vmem:[%s411_s0 + $0x1] ss:$16 sm:%s179_s16]  }
  0x16   :  { %v237_v40 = vld [vmem:[%s411_s0 + $0x4] ss:$16 sm:%s146_s8]   ;;  %v243_v43 = vld [vmem:[%s411_s0 + $0x1] ss:$16 sm:%s182_s17]   ;;  %s276_s23 = smov 8   ;;  %s4_s25 = smov 12 }
  0x17   :  { %v149_v41 = vsel %vm6_vm0, %v237_v40, %v236_v39  ;;  %v185_v44 = vsel %vm6_vm0, %v243_v43, %v242_v42  ;;  %v5_v46 = vld [vmem:[%s411_s0] ss:$16 sm:%s4_s25]  }
  0x1b   :  { %114 = vrot.lane.b32.xlu2 %v113_v34, %s272_s9 }
  0x1c   :  { %126 = vrot.lane.b32.xlu0 %v125_v28, %s270_s24  ;;  %s2_s24 = smov 3 }
  0x1d   :  { %138 = vrot.lane.b32.xlu1 %v137_v29, %s271_s29  ;;  %v3_v45 = vld [vmem:[%s411_s0] ss:$16 sm:%s2_s24]  }
  0x1e   :  { %v7_v47 = vsel %vm6_vm0, %v5_v46, %v3_v45  ;;  %vm188_vm0 = vcmask 130112  }
  0x1f   :  { %9 = vst.msk [vmem:[#allocation0] ss:$8 sm:$0xf] %vm8_vm1, %v7_v47  }
  0x23   :  { %150 = vrot.lane.b32.xlu2 %v149_v41, %s275_s18 }
  0x24   :  { %162 = vrot.lane.b32.xlu0 %v161_v37, %s273_s14 }
  0x25   :  { %174 = vrot.lane.b32.xlu1 %v173_v38, %s274_s15 }
  0x2b   :  { %186 = vrot.lane.b32.xlu2 %v185_v44, %s276_s23 }
  0x65   :  { %v67_v48 = vpop.permute.xlu2 %66  }
  0x6d   :  { %v79_v49 = vpop.permute.xlu2 %78  }
  0x75   :  { %v115_v52 = vpop.permute.xlu2 %114  }
  0x76   :  { %v19_v50 = vpop.permute.xlu0 %18  }
  0x77   :  { %21 = vst.msk [vmem:[#allocation0] ss:$8 sm:$0xf] %vm20_vm2, %v19_v50   ;;  %v43_v51 = vpop.permute.xlu1 %42  }
  0x7d   :  { %v151_v55 = vpop.permute.xlu2 %150  }
  0x7e   :  { %v31_v53 = vpop.permute.xlu0 %30  }
  0x7f   :  { %33 = vst.msk [vmem:[#allocation0] ss:$8 sm:$0xf] %vm32_vm3, %v31_v53   ;;  %v55_v54 = vpop.permute.xlu1 %54  }
  0x80   :  { %45 = vst.msk [vmem:[#allocation0] ss:$8 sm:$0xf] %vm44_vm4, %v43_v51  }
  0x81   :  { %57 = vst.msk [vmem:[#allocation0] ss:$8 sm:$0xf] %vm56_vm5, %v55_v54  }
  0x82   :  { %69 = vst.msk [vmem:[#allocation0] ss:$8 sm:$0xf] %vm68_vm6, %v67_v48  }
  0x83   :  { %81 = vst.msk [vmem:[#allocation0] ss:$8 sm:$0xf] %vm80_vm7, %v79_v49  }
  0x85   :  { %v187_v58 = vpop.permute.xlu2 %186  }
  0x86   :  { %v91_v56 = vpop.permute.xlu0 %90  }
  0x87   :  { %93 = vst.msk [vmem:[#allocation0] ss:$8 sm:$0xf] %vm92_vm8, %v91_v56   ;;  %v103_v57 = vpop.permute.xlu1 %102  }
  0x88   :  { %105 = vst.msk [vmem:[#allocation0] ss:$8 sm:$0xf] %vm104_vm9, %v103_v57  }
  0x89   :  { %117 = vst.msk [vmem:[#allocation0] ss:$8 sm:$0xf] %vm116_vm10, %v115_v52  }
  0x8e   :  { %v127_v59 = vpop.permute.xlu0 %126  }
  0x8f   :  { %129 = vst.msk [vmem:[#allocation0] ss:$8 sm:$0xf] %vm128_vm11, %v127_v59   ;;  %v139_v60 = vpop.permute.xlu1 %138  }
  0x90   :  { %141 = vst.msk [vmem:[#allocation0] ss:$8 sm:$0xf] %vm140_vm12, %v139_v60  }
  0x91   :  { %153 = vst.msk [vmem:[#allocation0] ss:$8 sm:$0xf] %vm152_vm13, %v151_v55  }
  0x96   :  { %v163_v61 = vpop.permute.xlu0 %162  }
  0x97   :  { %165 = vst.msk [vmem:[#allocation0] ss:$8 sm:$0xf] %vm164_vm14, %v163_v61   ;;  %v175_v62 = vpop.permute.xlu1 %174  }
  0x98   :  { %177 = vst.msk [vmem:[#allocation0] ss:$8 sm:$0xf] %vm176_vm15, %v175_v62  }
  0x99   :  { %189 = vst.msk [vmem:[#allocation0] ss:$8 sm:$0xf] %vm188_vm0, %v187_v58  }
  0xa0   :  { %v192_v63 = vld [vmem:[#allocation0] sm:$0x1]  ;;  %v197_v0 = vld [vmem:[#allocation0 + $0x8] sm:$0x1]  ;;  %v203_v1 = vld [vmem:[#allocation0 + $0x10] sm:$0x1] }
  0xa1   :  { %195 = vst [vmem:[%s412_s1] sm:$0x1] %v192_v63  ;;  %v209_v2 = vld [vmem:[#allocation0 + $0x18] sm:$0x1] }
  0xa2   :  { %244 = vst [vmem:[%s412_s1 + $0x1] sm:$0x1] %v197_v0 }
  0xa3   :  { %245 = vst [vmem:[%s412_s1 + $0x2] sm:$0x1] %v203_v1 }
  0xa4   :  { %246 = vst [vmem:[%s412_s1 + $0x3] sm:$0x1] %v209_v2 }

// kernel: residual_block_v2.1
= control target key start
LH: loop header
LB: loop body
LE: loop exit
PB: predicated region body
PF: predicated region fallthrough
CT: control target
= control target key end

     0   :  { %s10193_s15 = smov 0   ;;  %s15239_s0 = inlined_call_operand.vmem [shape: f32[2,8,512], index: 0, kind: input, shape index: {}]   ;;  %s15240_s1 = inlined_call_operand.vmem [shape: bf16[1536,512], index: 1, kind: input, shape index: {}]   ;;  %s15241_s2 = inlined_call_operand.vmem [shape: bf16[1536,512], index: 2, kind: input, shape index: {}]   ;;  %s15242_s3 = inlined_call_operand.vmem [shape: f32[2,512], index: 3, kind: input, shape index: {}]   ;;  %s15243_s4 = inlined_call_operand.vmem [shape: f32[2,8,512], index: 4, kind: output, shape index: {}]  }
   0x1 LB: > { %s6293_s16 = sadd.s32 4294967295, %s10166_s15   ;;  %p6297_p0 = scmp.ge.s32.totalorder %s10166_s15, 1  ;;  %s10166_s15 = sphi %s10193_s15, %s14_s15  }
   0x2   : > { %p162_p1 = scmp.lt.s32.totalorder %s10166_s15, 3 }
   0x4   : > { %p163_p2 = pnand %p6297_p0, %p162_p1 }
   0x5   : > { %p188_p3 = scmp.lt.s32.totalorder (!%p163_p2), %s6293_s16, 1 }
   0x6   : > { %166 = sbr.rel (%p163_p2) target bundleno = 1022 (0x3fe), region = 36 }
   0xb   : > { %v6417_v0 = vld [vmem:[%s15240_s1 + $0xe0] sm:$0xf]  ;;  %v9409_v1 = vld [vmem:[%s15240_s1 + $0xec] sm:$0xf0]  ;;  %s15249_s16 = smov (!%p188_p3, %s6293_s16), 1  ;;  %vm250_vm0 = vcmask 1040384  }
   0xc   : > { %v6545_v2 = vld [vmem:[%s15240_s1 + $0x1e0] sm:$0xf]  ;;  %v6418_v3 = vor.u32 %v9409_v1, %v6417_v0  ;;  %v9441_v4 = vld [vmem:[%s15240_s1 + $0x1ec] sm:$0xf0]  ;;  %s9377_s5 = sshll.u32 %s15249_s16, 5  ;;  %vm269_vm3 = vcmask 1043456  }
   0xd   : > { %v6673_v5 = vld [vmem:[%s15240_s1 + $0x2e0] sm:$0xf]  ;;  %v9473_v6 = vld [vmem:[%s15240_s1 + $0x2ec] sm:$0xf0]  ;;  %v6546_v7 = vor.u32 %v9441_v4, %v6545_v2  ;;  %s10531_s14 = scalar_lea.vmem %s15239_s0, %s9377_s5  ;;  %vm251_vm1 = vsmask.f32 256  ;;  %s14703_s12 = scalar_lea.vmem %s15243_s4, %s9377_s5 }
   0xe   : > { %v6674_v8 = vor.u32 %v9473_v6, %v6673_v5  ;;  %v6801_v9 = vld [vmem:[%s15240_s1 + $0x3e0] sm:$0xf]  ;;  %v9505_v10 = vld [vmem:[%s15240_s1 + $0x3ec] sm:$0xf0]  ;;  %2593 = vmatpush.bf16.msra.mxu0 %v6418_v3  ;;  %vm10595_vm2 = vmand %vm250_vm0, %vm251_vm1  ;;  %vm270_vm4 = vsmask.f32 3328 }
   0xf   : > { %v6401_v11 = vld [vmem:[%s15240_s1 + $0xc0] sm:$0xf]  ;;  %v6802_v12 = vor.u32 %v9505_v10, %v6801_v9  ;;  %v9405_v13 = vld [vmem:[%s15240_s1 + $0xcc] sm:$0xf0]  ;;  %2606 = vmatpush.bf16.msra.mxu1 %v6546_v7  ;;  %vm10893_vm5 = vmand %vm269_vm3, %vm270_vm4 }
  0x10   : > { %v6529_v14 = vld [vmem:[%s15240_s1 + $0x1c0] sm:$0xf]  ;;  %v9437_v15 = vld [vmem:[%s15240_s1 + $0x1cc] sm:$0xf0]  ;;  %2619 = vmatpush.bf16.msra.mxu2 %v6674_v8  ;;  %v6402_v16 = vor.u32 %v9405_v13, %v6401_v11 }
  0x11   : > { %v6530_v17 = vor.u32 %v9437_v15, %v6529_v14  ;;  %v6657_v18 = vld [vmem:[%s15240_s1 + $0x2c0] sm:$0xf]  ;;  %v9469_v19 = vld [vmem:[%s15240_s1 + $0x2cc] sm:$0xf0]  ;;  %2632 = vmatpush.bf16.msra.mxu3 %v6802_v12 }
  0x12   : > { %v6785_v20 = vld [vmem:[%s15240_s1 + $0x3c0] sm:$0xf]  ;;  %v6658_v21 = vor.u32 %v9469_v19, %v6657_v18  ;;  %v9501_v22 = vld [vmem:[%s15240_s1 + $0x3cc] sm:$0xf0]  ;;  %2594 = vmatpush.bf16.msra.mxu0 %v6402_v16 }
  0x13   : > { %v6385_v23 = vld [vmem:[%s15240_s1 + $0xa0] sm:$0xf]  ;;  %v9401_v24 = vld [vmem:[%s15240_s1 + $0xac] sm:$0xf0]  ;;  %v6786_v25 = vor.u32 %v9501_v22, %v6785_v20  ;;  %2607 = vmatpush.bf16.msra.mxu1 %v6530_v17 }
  0x14   : > { %v6513_v26 = vld [vmem:[%s15240_s1 + $0x1a0] sm:$0xf]  ;;  %v9433_v27 = vld [vmem:[%s15240_s1 + $0x1ac] sm:$0xf0]  ;;  %v6386_v29 = vor.u32 %v9401_v24, %v6385_v23  ;;  %2620 = vmatpush.bf16.msra.mxu2 %v6658_v21 }
  0x15   : > { %v6641_v28 = vld [vmem:[%s15240_s1 + $0x2a0] sm:$0xf]  ;;  %v9465_v30 = vld [vmem:[%s15240_s1 + $0x2ac] sm:$0xf0]  ;;  %v6514_v33 = vor.u32 %v9433_v27, %v6513_v26  ;;  %2633 = vmatpush.bf16.msra.mxu3 %v6786_v25 }
  0x16   : > { %v6769_v31 = vld [vmem:[%s15240_s1 + $0x3a0] sm:$0xf]  ;;  %v9497_v32 = vld [vmem:[%s15240_s1 + $0x3ac] sm:$0xf0]  ;;  %v6642_v34 = vor.u32 %v9465_v30, %v6641_v28  ;;  %2595 = vmatpush.bf16.msra.mxu0 %v6386_v29 }
  0x17   : > { %v6369_v35 = vld [vmem:[%s15240_s1 + $0x80] sm:$0xf]  ;;  %v9397_v36 = vld [vmem:[%s15240_s1 + $0x8c] sm:$0xf0]  ;;  %v6770_v38 = vor.u32 %v9497_v32, %v6769_v31  ;;  %2608 = vmatpush.bf16.msra.mxu1 %v6514_v33 }
  0x18   : > { %v6497_v37 = vld [vmem:[%s15240_s1 + $0x180] sm:$0xf]  ;;  %v9429_v39 = vld [vmem:[%s15240_s1 + $0x18c] sm:$0xf0]  ;;  %v6370_v44 = vor.u32 %v9397_v36, %v6369_v35  ;;  %2621 = vmatpush.bf16.msra.mxu2 %v6642_v34 }
  0x19   : > { %v6625_v40 = vld [vmem:[%s15240_s1 + $0x280] sm:$0xf]  ;;  %v9461_v41 = vld [vmem:[%s15240_s1 + $0x28c] sm:$0xf0]  ;;  %v6498_v45 = vor.u32 %v9429_v39, %v6497_v37  ;;  %2634 = vmatpush.bf16.msra.mxu3 %v6770_v38 }
  0x1a   : > { %v6753_v42 = vld [vmem:[%s15240_s1 + $0x380] sm:$0xf]  ;;  %v9493_v43 = vld [vmem:[%s15240_s1 + $0x38c] sm:$0xf0]  ;;  %v6626_v46 = vor.u32 %v9461_v41, %v6625_v40  ;;  %2596 = vmatpush.bf16.msra.mxu0 %v6370_v44 }
  0x1b   : > { %v6353_v47 = vld [vmem:[%s15240_s1 + $0x60] sm:$0xf]  ;;  %v9393_v48 = vld [vmem:[%s15240_s1 + $0x6c] sm:$0xf0]  ;;  %v6754_v50 = vor.u32 %v9493_v43, %v6753_v42  ;;  %2609 = vmatpush.bf16.msra.mxu1 %v6498_v45 }
  0x1c   : > { %v6481_v49 = vld [vmem:[%s15240_s1 + $0x160] sm:$0xf]  ;;  %v9425_v51 = vld [vmem:[%s15240_s1 + $0x16c] sm:$0xf0]  ;;  %v6354_v56 = vor.u32 %v9393_v48, %v6353_v47  ;;  %2622 = vmatpush.bf16.msra.mxu2 %v6626_v46 }
  0x1d   : > { %v6609_v52 = vld [vmem:[%s15240_s1 + $0x260] sm:$0xf]  ;;  %v9457_v53 = vld [vmem:[%s15240_s1 + $0x26c] sm:$0xf0]  ;;  %v6482_v57 = vor.u32 %v9425_v51, %v6481_v49  ;;  %2635 = vmatpush.bf16.msra.mxu3 %v6754_v50 }
  0x1e   : > { %v6737_v54 = vld [vmem:[%s15240_s1 + $0x360] sm:$0xf]  ;;  %v9489_v55 = vld [vmem:[%s15240_s1 + $0x36c] sm:$0xf0]  ;;  %v6610_v58 = vor.u32 %v9457_v53, %v6609_v52  ;;  %2597 = vmatpush.bf16.msra.mxu0 %v6354_v56 }
  0x1f   : > { %v6337_v59 = vld [vmem:[%s15240_s1 + $0x40] sm:$0xf]  ;;  %v9389_v60 = vld [vmem:[%s15240_s1 + $0x4c] sm:$0xf0]  ;;  %v6738_v62 = vor.u32 %v9489_v55, %v6737_v54  ;;  %2610 = vmatpush.bf16.msra.mxu1 %v6482_v57 }
  0x20   : > { %v6465_v61 = vld [vmem:[%s15240_s1 + $0x140] sm:$0xf]  ;;  %v9421_v63 = vld [vmem:[%s15240_s1 + $0x14c] sm:$0xf0]  ;;  %v6338_v4 = vor.u32 %v9389_v60, %v6337_v59  ;;  %2623 = vmatpush.bf16.msra.mxu2 %v6610_v58 }
  0x21   : > { %v6593_v0 = vld [vmem:[%s15240_s1 + $0x240] sm:$0xf]  ;;  %v9453_v1 = vld [vmem:[%s15240_s1 + $0x24c] sm:$0xf0]  ;;  %v6466_v5 = vor.u32 %v9421_v63, %v6465_v61  ;;  %2636 = vmatpush.bf16.msra.mxu3 %v6738_v62 }
  0x22   : > { %v6721_v2 = vld [vmem:[%s15240_s1 + $0x340] sm:$0xf]  ;;  %v9485_v3 = vld [vmem:[%s15240_s1 + $0x34c] sm:$0xf0]  ;;  %v6594_v6 = vor.u32 %v9453_v1, %v6593_v0  ;;  %2598 = vmatpush.bf16.msra.mxu0 %v6338_v4 }
  0x23   : > { %v6321_v7 = vld [vmem:[%s15240_s1 + $0x20] sm:$0xf]  ;;  %v9385_v8 = vld [vmem:[%s15240_s1 + $0x2c] sm:$0xf0]  ;;  %v6722_v10 = vor.u32 %v9485_v3, %v6721_v2  ;;  %2611 = vmatpush.bf16.msra.mxu1 %v6466_v5 }
  0x24   : > { %v6449_v9 = vld [vmem:[%s15240_s1 + $0x120] sm:$0xf]  ;;  %v9417_v11 = vld [vmem:[%s15240_s1 + $0x12c] sm:$0xf0]  ;;  %v6322_v16 = vor.u32 %v9385_v8, %v6321_v7  ;;  %2624 = vmatpush.bf16.msra.mxu2 %v6594_v6 }
  0x25   : > { %v6577_v12 = vld [vmem:[%s15240_s1 + $0x220] sm:$0xf]  ;;  %v9449_v13 = vld [vmem:[%s15240_s1 + $0x22c] sm:$0xf0]  ;;  %v6450_v19 = vor.u32 %v9417_v11, %v6449_v9  ;;  %2637 = vmatpush.bf16.msra.mxu3 %v6722_v10 }
  0x26   : > { %v6705_v14 = vld [vmem:[%s15240_s1 + $0x320] sm:$0xf]  ;;  %v9481_v15 = vld [vmem:[%s15240_s1 + $0x32c] sm:$0xf0]  ;;  %v6578_v20 = vor.u32 %v9449_v13, %v6577_v12  ;;  %2599 = vmatpush.bf16.msra.mxu0 %v6322_v16 }
  0x27   : > { %v6305_v17 = vld [vmem:[%s15240_s1] sm:$0xf]  ;;  %v9381_v18 = vld [vmem:[%s15240_s1 + $0xc] sm:$0xf0]  ;;  %v6706_v24 = vor.u32 %v9481_v15, %v6705_v14  ;;  %2612 = vmatpush.bf16.msra.mxu1 %v6450_v19 }
  0x28   : > { %v6433_v21 = vld [vmem:[%s15240_s1 + $0x100] sm:$0xf]  ;;  %v9413_v22 = vld [vmem:[%s15240_s1 + $0x10c] sm:$0xf0]  ;;  %v6306_v31 = vor.u32 %v9381_v18, %v6305_v17  ;;  %2625 = vmatpush.bf16.msra.mxu2 %v6578_v20 }
  0x29   : > { %v6561_v23 = vld [vmem:[%s15240_s1 + $0x200] sm:$0xf]  ;;  %v9445_v25 = vld [vmem:[%s15240_s1 + $0x20c] sm:$0xf0]  ;;  %v6434_v35 = vor.u32 %v9413_v22, %v6433_v21  ;;  %2638 = vmatpush.bf16.msra.mxu3 %v6706_v24 }
  0x2a   : > { %v6689_v26 = vld [vmem:[%s15240_s1 + $0x300] sm:$0xf]  ;;  %v9477_v27 = vld [vmem:[%s15240_s1 + $0x30c] sm:$0xf0]  ;;  %v6562_v36 = vor.u32 %v9445_v25, %v6561_v23  ;;  %2600 = vmatpush.bf16.msra.mxu0 %v6306_v31 }
  0x2b   : > { %v6929_v28 = vld [vmem:[%s15240_s1 + $0x4e0] sm:$0xf]  ;;  %v9537_v29 = vld [vmem:[%s15240_s1 + $0x4ec] sm:$0xf0]  ;;  %v6690_v39 = vor.u32 %v9477_v27, %v6689_v26  ;;  %2613 = vmatpush.bf16.msra.mxu1 %v6434_v35  ;;  %v202_v27 = vld [vmem:[%s10531_s14 + $0x18] sm:$0xff] }
  0x2c   : > { %v7057_v30 = vld [vmem:[%s15240_s1 + $0x5e0] sm:$0xf]  ;;  %v9569_v32 = vld [vmem:[%s15240_s1 + $0x5ec] sm:$0xf0]  ;;  %v6930_v40 = vor.u32 %v9537_v29, %v6929_v28  ;;  %2626 = vmatpush.bf16.msra.mxu2 %v6562_v36 }
  0x2d   : > { %v7185_v33 = vld [vmem:[%s15240_s1 + $0x6e0] sm:$0xf]  ;;  %v9601_v34 = vld [vmem:[%s15240_s1 + $0x6ec] sm:$0xf0]  ;;  %v7058_v41 = vor.u32 %v9569_v32, %v7057_v30  ;;  %2639 = vmatpush.bf16.msra.mxu3 %v6690_v39  ;;  %v200_v32 = vld [vmem:[%s10531_s14 + $0x8] sm:$0xff] }
  0x2e   : > { %v7313_v37 = vld [vmem:[%s15240_s1 + $0x7e0] sm:$0xf]  ;;  %v9633_v38 = vld [vmem:[%s15240_s1 + $0x7ec] sm:$0xf0]  ;;  %v7186_v42 = vor.u32 %v9601_v34, %v7185_v33  ;;  %2645 = vmatpush.bf16.msrb.mxu0 %v6930_v40 }
  0x2f   : > { %v6913_v43 = vld [vmem:[%s15240_s1 + $0x4c0] sm:$0xf]  ;;  %v9533_v44 = vld [vmem:[%s15240_s1 + $0x4cc] sm:$0xf0]  ;;  %v7314_v46 = vor.u32 %v9633_v38, %v7313_v37  ;;  %2658 = vmatpush.bf16.msrb.mxu1 %v7058_v41 }
  0x30   : > { %v7041_v45 = vld [vmem:[%s15240_s1 + $0x5c0] sm:$0xf]  ;;  %v9565_v47 = vld [vmem:[%s15240_s1 + $0x5cc] sm:$0xf0]  ;;  %v6914_v52 = vor.u32 %v9533_v44, %v6913_v43  ;;  %2671 = vmatpush.bf16.msrb.mxu2 %v7186_v42 }
  0x31   : > { %v7169_v48 = vld [vmem:[%s15240_s1 + $0x6c0] sm:$0xf]  ;;  %v9597_v49 = vld [vmem:[%s15240_s1 + $0x6cc] sm:$0xf0]  ;;  %v7042_v53 = vor.u32 %v9565_v47, %v7041_v45  ;;  %2684 = vmatpush.bf16.msrb.mxu3 %v7314_v46 }
  0x32   : > { %v7297_v50 = vld [vmem:[%s15240_s1 + $0x7c0] sm:$0xf]  ;;  %v9629_v51 = vld [vmem:[%s15240_s1 + $0x7cc] sm:$0xf0]  ;;  %v7170_v54 = vor.u32 %v9597_v49, %v7169_v48  ;;  %2646 = vmatpush.bf16.msrb.mxu0 %v6914_v52 }
  0x33   : > { %v6897_v55 = vld [vmem:[%s15240_s1 + $0x4a0] sm:$0xf]  ;;  %v9529_v56 = vld [vmem:[%s15240_s1 + $0x4ac] sm:$0xf0]  ;;  %v7298_v58 = vor.u32 %v9629_v51, %v7297_v50  ;;  %2659 = vmatpush.bf16.msrb.mxu1 %v7042_v53 }
  0x34   : > { %v7025_v57 = vld [vmem:[%s15240_s1 + $0x5a0] sm:$0xf]  ;;  %v9561_v59 = vld [vmem:[%s15240_s1 + $0x5ac] sm:$0xf0]  ;;  %v6898_v1 = vor.u32 %v9529_v56, %v6897_v55  ;;  %2672 = vmatpush.bf16.msrb.mxu2 %v7170_v54 }
  0x35   : > { %v7153_v60 = vld [vmem:[%s15240_s1 + $0x6a0] sm:$0xf]  ;;  %v9593_v61 = vld [vmem:[%s15240_s1 + $0x6ac] sm:$0xf0]  ;;  %v7026_v4 = vor.u32 %v9561_v59, %v7025_v57  ;;  %2685 = vmatpush.bf16.msrb.mxu3 %v7298_v58 }
  0x36   : > { %v7281_v62 = vld [vmem:[%s15240_s1 + $0x7a0] sm:$0xf]  ;;  %v9625_v63 = vld [vmem:[%s15240_s1 + $0x7ac] sm:$0xf0]  ;;  %v7154_v5 = vor.u32 %v9593_v61, %v7153_v60  ;;  %2647 = vmatpush.bf16.msrb.mxu0 %v6898_v1 }
  0x37   : > { %v6881_v0 = vld [vmem:[%s15240_s1 + $0x480] sm:$0xf]  ;;  %v9525_v2 = vld [vmem:[%s15240_s1 + $0x48c] sm:$0xf0]  ;;  %v7282_v9 = vor.u32 %v9625_v63, %v7281_v62  ;;  %2660 = vmatpush.bf16.msrb.mxu1 %v7026_v4 }
  0x38   : > { %v7009_v3 = vld [vmem:[%s15240_s1 + $0x580] sm:$0xf]  ;;  %v9557_v6 = vld [vmem:[%s15240_s1 + $0x58c] sm:$0xf0]  ;;  %v6882_v16 = vor.u32 %v9525_v2, %v6881_v0  ;;  %2673 = vmatpush.bf16.msrb.mxu2 %v7154_v5 }
  0x39   : > { %v7137_v7 = vld [vmem:[%s15240_s1 + $0x680] sm:$0xf]  ;;  %v9589_v8 = vld [vmem:[%s15240_s1 + $0x68c] sm:$0xf0]  ;;  %v7010_v20 = vor.u32 %v9557_v6, %v7009_v3  ;;  %2686 = vmatpush.bf16.msrb.mxu3 %v7282_v9 }
  0x3a   : > { %v7265_v10 = vld [vmem:[%s15240_s1 + $0x780] sm:$0xf]  ;;  %v9621_v11 = vld [vmem:[%s15240_s1 + $0x78c] sm:$0xf0]  ;;  %v7138_v21 = vor.u32 %v9589_v8, %v7137_v7  ;;  %2648 = vmatpush.bf16.msrb.mxu0 %v6882_v16 }
  0x3b   : > { %v6865_v12 = vld [vmem:[%s15240_s1 + $0x460] sm:$0xf]  ;;  %v9521_v13 = vld [vmem:[%s15240_s1 + $0x46c] sm:$0xf0]  ;;  %v7266_v25 = vor.u32 %v9621_v11, %v7265_v10  ;;  %2661 = vmatpush.bf16.msrb.mxu1 %v7010_v20 }
  0x3c   : > { %v6993_v14 = vld [vmem:[%s15240_s1 + $0x560] sm:$0xf]  ;;  %v9553_v15 = vld [vmem:[%s15240_s1 + $0x56c] sm:$0xf0]  ;;  %v6866_v33 = vor.u32 %v9521_v13, %v6865_v12  ;;  %2674 = vmatpush.bf16.msrb.mxu2 %v7138_v21 }
  0x3d   : > { %v7121_v17 = vld [vmem:[%s15240_s1 + $0x660] sm:$0xf]  ;;  %v9585_v18 = vld [vmem:[%s15240_s1 + $0x66c] sm:$0xf0]  ;;  %v6994_v34 = vor.u32 %v9553_v15, %v6993_v14  ;;  %2687 = vmatpush.bf16.msrb.mxu3 %v7266_v25 }
  0x3e   : > { %v7249_v19 = vld [vmem:[%s15240_s1 + $0x760] sm:$0xf]  ;;  %v9617_v22 = vld [vmem:[%s15240_s1 + $0x76c] sm:$0xf0]  ;;  %v7122_v38 = vor.u32 %v9585_v18, %v7121_v17  ;;  %2649 = vmatpush.bf16.msrb.mxu0 %v6866_v33 }
  0x3f   : > { %v6849_v23 = vld [vmem:[%s15240_s1 + $0x440] sm:$0xf]  ;;  %v9517_v24 = vld [vmem:[%s15240_s1 + $0x44c] sm:$0xf0]  ;;  %v7250_v39 = vor.u32 %v9617_v22, %v7249_v19  ;;  %2662 = vmatpush.bf16.msrb.mxu1 %v6994_v34 }
  0x40   : > { %v201_v26 = vld [vmem:[%s10531_s14 + $0x10] sm:$0xff]  ;;  %v199_v28 = vld [vmem:[%s10531_s14] sm:$0xff]  ;;  %v6850_v44 = vor.u32 %v9517_v24, %v6849_v23  ;;  %2675 = vmatpush.bf16.msrb.mxu2 %v7122_v38 }
  0x41   : > { %v6977_v29 = vld [vmem:[%s15240_s1 + $0x540] sm:$0xf]  ;;  %v9549_v30 = vld [vmem:[%s15240_s1 + $0x54c] sm:$0xf0]  ;;  %v204_v31 = vpack.c.bf16 %v202_v27, %v201_v26  ;;  %v203_v37 = vpack.c.bf16 %v200_v32, %v199_v28  ;;  %2688 = vmatpush.bf16.msrb.mxu3 %v7250_v39 }
  0x42   : > { %v7105_v35 = vld [vmem:[%s15240_s1 + $0x640] sm:$0xf]  ;;  %v9581_v36 = vld [vmem:[%s15240_s1 + $0x64c] sm:$0xf0]  ;;  %v6978_v45 = vor.u32 %v9549_v30, %v6977_v29  ;;  %2650 = vmatpush.bf16.msrb.mxu0 %v6850_v44 }
  0x43   : > { %v7233_v40 = vld [vmem:[%s15240_s1 + $0x740] sm:$0xf]  ;;  %v9613_v41 = vld [vmem:[%s15240_s1 + $0x74c] sm:$0xf0]  ;;  %v212_v42 = vunpack.c.l.b16 %v204_v31  ;;  %v213_v43 = vunpack.c.h.b16 %v204_v31  ;;  %v210_v46 = vunpack.c.l.b16 %v203_v37  ;;  %v211_v47 = vunpack.c.h.b16 %v203_v37 }
  0x44   : > { %v7106_v48 = vor.u32 %v9581_v36, %v7105_v35  ;;  %v7234_v51 = vor.u32 %v9613_v41, %v7233_v40  ;;  %v6833_v58 = vld [vmem:[%s15240_s1 + $0x420] sm:$0xf]  ;;  %v9513_v59 = vld [vmem:[%s15240_s1 + $0x42c] sm:$0xf0]  ;;  %2663 = vmatpush.bf16.msrb.mxu1 %v6978_v45 }
  0x45   : > { %v10555_v49 = vpack.c.b16 %v212_v42, %v212_v42  ;;  %v10557_v50 = vpack.c.b16 %v213_v43, %v213_v43  ;;  %v10559_v52 = vpack.c.b16 %v210_v46, %v210_v46  ;;  %v10561_v53 = vpack.c.b16 %v211_v47, %v211_v47  ;;  %v6961_v60 = vld [vmem:[%s15240_s1 + $0x520] sm:$0xf]  ;;  %v9545_v63 = vld [vmem:[%s15240_s1 + $0x52c] sm:$0xf0] }
  0x46   : > { %v7089_v4 = vld [vmem:[%s15240_s1 + $0x620] sm:$0xf]  ;;  %v9577_v5 = vld [vmem:[%s15240_s1 + $0x62c] sm:$0xf0]  ;;  %2676 = vmatpush.bf16.msrb.mxu2 %v7106_v48  ;;  %v6962_v13 = vor.u32 %v9545_v63, %v6961_v60  ;;  %2689 = vmatpush.bf16.msrb.mxu3 %v7234_v51  ;;  %v6834_v19 = vor.u32 %v9513_v59, %v6833_v58 }
  0x47   : > { %v233_v54 = vshrl.u32 %v10555_v49, 16  ;;  %v236_v55 = vshll.u32 %v10555_v49, 16  ;;  %v240_v56 = vshrl.u32 %v10557_v50, 16  ;;  %v243_v57 = vshll.u32 %v10557_v50, 16  ;;  %v7217_v8 = vld [vmem:[%s15240_s1 + $0x720] sm:$0xf] }
  0x48   : > { %v219_v61 = vshrl.u32 %v10559_v52, 16  ;;  %v222_v62 = vshll.u32 %v10559_v52, 16  ;;  %v226_v0 = vshrl.u32 %v10561_v53, 16  ;;  %v229_v1 = vshll.u32 %v10561_v53, 16  ;;  %v9609_v9 = vld [vmem:[%s15240_s1 + $0x72c] sm:$0xf0]  ;;  %2664 = vmatpush.bf16.msrb.mxu1 %v6962_v13  ;;  %2651 = vmatpush.bf16.msrb.mxu0 %v6834_v19 }
  0x49   : > { %v235_v2 = vrot.slane %v233_v54, 7  ;;  %v242_v3 = vrot.slane %v240_v56, 7  ;;  %v6817_v14 = vld [vmem:[%s15240_s1 + $0x400] sm:$0xf]  ;;  %v9509_v15 = vld [vmem:[%s15240_s1 + $0x40c] sm:$0xf0]  ;;  %v7090_v20 = vor.u32 %v9577_v5, %v7089_v4  ;;  %v7218_v27 = vor.u32 %v9609_v9, %v7217_v8 }
  0x4a   : > { %v221_v7 = vrot.slane %v219_v61, 7  ;;  %v228_v10 = vrot.slane %v226_v0, 7  ;;  %v6945_v16 = vld [vmem:[%s15240_s1 + $0x500] sm:$0xf]  ;;  %v9541_v17 = vld [vmem:[%s15240_s1 + $0x50c] sm:$0xf0]  ;;  %v6818_v38 = vor.u32 %v9509_v15, %v6817_v14 }
  0x4b   : > { %v238_v11 = vor.u32 %v236_v55, %v235_v2  ;;  %v245_v12 = vor.u32 %v243_v57, %v242_v3  ;;  %v7073_v22 = vld [vmem:[%s15240_s1 + $0x600] sm:$0xf]  ;;  %v9573_v23 = vld [vmem:[%s15240_s1 + $0x60c] sm:$0xf0]  ;;  %v6946_v34 = vor.u32 %v9541_v17, %v6945_v16  ;;  %2677 = vmatpush.bf16.msrb.mxu2 %v7090_v20  ;;  %2690 = vmatpush.bf16.msrb.mxu3 %v7218_v27 }
  0x4c   : > { %v224_v18 = vor.u32 %v222_v62, %v221_v7  ;;  %v231_v21 = vor.u32 %v229_v1, %v228_v10  ;;  %v7201_v24 = vld [vmem:[%s15240_s1 + $0x700] sm:$0xf]  ;;  %v9605_v28 = vld [vmem:[%s15240_s1 + $0x70c] sm:$0xf0]  ;;  %v7074_v39 = vor.u32 %v9573_v23, %v7073_v22  ;;  %2652 = vmatpush.bf16.msrb.mxu0 %v6818_v38 }
  0x4d   : > { %v10640_v25 = vsel %vm10595_vm2, 0, %v238_v11  ;;  %v10644_v26 = vsel %vm10595_vm2, 0, %v245_v12  ;;  %v7441_v29 = vld [vmem:[%s15240_s1 + $0x8e0] sm:$0xf]  ;;  %v9665_v32 = vld [vmem:[%s15240_s1 + $0x8ec] sm:$0xf0]  ;;  %v7202_v42 = vor.u32 %v9605_v28, %v7201_v24  ;;  %2665 = vmatpush.bf16.msrb.mxu1 %v6946_v34 }
  0x4e   : > { %2627 = vmatmul.bf16.vlgmr.msra.gmra.mxu2 %v10640_v25  ;;  %v10655_v30 = vsel %vm10595_vm2, 0, %v224_v18  ;;  %2640 = vmatmul.bf16.vlgmr.msra.gmra.mxu3 %v10644_v26  ;;  %v10660_v31 = vsel %vm10595_vm2, 0, %v231_v21  ;;  %v7569_v33 = vld [vmem:[%s15240_s1 + $0x9e0] sm:$0xf]  ;;  %v9697_v35 = vld [vmem:[%s15240_s1 + $0x9ec] sm:$0xf0]  ;;  %v7442_v43 = vor.u32 %v9665_v32, %v7441_v29 }
  0x4f   : > { %2601 = vmatmul.bf16.vlgmr.msra.gmra.mxu0 %v10655_v30  ;;  %v7697_v36 = vld [vmem:[%s15240_s1 + $0xae0] sm:$0xf]  ;;  %v9729_v37 = vld [vmem:[%s15240_s1 + $0xaec] sm:$0xf0]  ;;  %2614 = vmatmul.bf16.vlgmr.msra.gmra.mxu1 %v10660_v31  ;;  %v7570_v44 = vor.u32 %v9697_v35, %v7569_v33 }
  0x50   : > { %v7825_v40 = vld [vmem:[%s15240_s1 + $0xbe0] sm:$0xf]  ;;  %v9761_v41 = vld [vmem:[%s15240_s1 + $0xbec] sm:$0xf0]  ;;  %v7698_v45 = vor.u32 %v9729_v37, %v7697_v36  ;;  %2678 = vmatpush.bf16.msrb.mxu2 %v7074_v39  ;;  %2691 = vmatpush.bf16.msrb.mxu3 %v7202_v42 }
  0x51   : > { %v7425_v46 = vld [vmem:[%s15240_s1 + $0x8c0] sm:$0xf]  ;;  %v9661_v47 = vld [vmem:[%s15240_s1 + $0x8cc] sm:$0xf0]  ;;  %v7826_v51 = vor.u32 %v9761_v41, %v7825_v40  ;;  %2697 = vmatpush.bf16.msra.mxu0 %v7442_v43  ;;  %2710 = vmatpush.bf16.msra.mxu1 %v7570_v44 }
  0x52   : > { %v7553_v48 = vld [vmem:[%s15240_s1 + $0x9c0] sm:$0xf]  ;;  %v9693_v58 = vld [vmem:[%s15240_s1 + $0x9cc] sm:$0xf0]  ;;  %v7426_v3 = vor.u32 %v9661_v47, %v7425_v46 }
  0x53   : > { %v7681_v59 = vld [vmem:[%s15240_s1 + $0xac0] sm:$0xf]  ;;  %v9725_v60 = vld [vmem:[%s15240_s1 + $0xacc] sm:$0xf0]  ;;  %v7554_v4 = vor.u32 %v9693_v58, %v7553_v48 }
  0x54   : > { %v7809_v63 = vld [vmem:[%s15240_s1 + $0xbc0] sm:$0xf]  ;;  %v9757_v2 = vld [vmem:[%s15240_s1 + $0xbcc] sm:$0xf0]  ;;  %2723 = vmatpush.bf16.msra.mxu2 %v7698_v45  ;;  %v7682_v5 = vor.u32 %v9725_v60, %v7681_v59  ;;  %2736 = vmatpush.bf16.msra.mxu3 %v7826_v51 }
  0x55   : > { %v7409_v7 = vld [vmem:[%s15240_s1 + $0x8a0] sm:$0xf]  ;;  %v9657_v8 = vld [vmem:[%s15240_s1 + $0x8ac] sm:$0xf0]  ;;  %v7810_v9 = vor.u32 %v9757_v2, %v7809_v63  ;;  %2698 = vmatpush.bf16.msra.mxu0 %v7426_v3  ;;  %2711 = vmatpush.bf16.msra.mxu1 %v7554_v4 }
  0x56   : > { %v7537_v10 = vld [vmem:[%s15240_s1 + $0x9a0] sm:$0xf]  ;;  %v9689_v11 = vld [vmem:[%s15240_s1 + $0x9ac] sm:$0xf0]  ;;  %v7410_v16 = vor.u32 %v9657_v8, %v7409_v7 }
  0x57   : > { %v7665_v12 = vld [vmem:[%s15240_s1 + $0xaa0] sm:$0xf]  ;;  %v9721_v13 = vld [vmem:[%s15240_s1 + $0xaac] sm:$0xf0]  ;;  %v7538_v17 = vor.u32 %v9689_v11, %v7537_v10 }
  0x58   : > { %v7793_v14 = vld [vmem:[%s15240_s1 + $0xba0] sm:$0xf]  ;;  %v9753_v15 = vld [vmem:[%s15240_s1 + $0xbac] sm:$0xf0]  ;;  %2724 = vmatpush.bf16.msra.mxu2 %v7682_v5  ;;  %2737 = vmatpush.bf16.msra.mxu3 %v7810_v9  ;;  %v7666_v20 = vor.u32 %v9721_v13, %v7665_v12 }
  0x59   : > { %v7393_v18 = vld [vmem:[%s15240_s1 + $0x880] sm:$0xf]  ;;  %v9653_v19 = vld [vmem:[%s15240_s1 + $0x88c] sm:$0xf0]  ;;  %v7794_v21 = vor.u32 %v9753_v15, %v7793_v14  ;;  %2699 = vmatpush.bf16.msra.mxu0 %v7410_v16  ;;  %2712 = vmatpush.bf16.msra.mxu1 %v7538_v17 }
  0x5a   : > { %v7521_v22 = vld [vmem:[%s15240_s1 + $0x980] sm:$0xf]  ;;  %v9685_v23 = vld [vmem:[%s15240_s1 + $0x98c] sm:$0xf0]  ;;  %v7394_v32 = vor.u32 %v9653_v19, %v7393_v18 }
  0x5b   : > { %v7649_v24 = vld [vmem:[%s15240_s1 + $0xa80] sm:$0xf]  ;;  %v9717_v27 = vld [vmem:[%s15240_s1 + $0xa8c] sm:$0xf0]  ;;  %v7522_v33 = vor.u32 %v9685_v23, %v7521_v22 }
  0x5c   : > { %v7777_v28 = vld [vmem:[%s15240_s1 + $0xb80] sm:$0xf]  ;;  %v9749_v29 = vld [vmem:[%s15240_s1 + $0xb8c] sm:$0xf0]  ;;  %2725 = vmatpush.bf16.msra.mxu2 %v7666_v20  ;;  %2738 = vmatpush.bf16.msra.mxu3 %v7794_v21  ;;  %v7650_v36 = vor.u32 %v9717_v27, %v7649_v24 }
  0x5d   : > { %v7377_v34 = vld [vmem:[%s15240_s1 + $0x860] sm:$0xf]  ;;  %v9649_v35 = vld [vmem:[%s15240_s1 + $0x86c] sm:$0xf0]  ;;  %v7778_v37 = vor.u32 %v9749_v29, %v7777_v28  ;;  %2700 = vmatpush.bf16.msra.mxu0 %v7394_v32  ;;  %2713 = vmatpush.bf16.msra.mxu1 %v7522_v33  ;;  %v257_v29 = vrot.slane %v222_v62, 1 }
  0x5e   : > { %2679 = vmatmul.bf16.vlgmr.msrb.gmra.mxu2 %v10555_v49  ;;  %v7505_v38 = vld [vmem:[%s15240_s1 + $0x960] sm:$0xf]  ;;  %v9681_v39 = vld [vmem:[%s15240_s1 + $0x96c] sm:$0xf0]  ;;  %2692 = vmatmul.bf16.vlgmr.msrb.gmra.mxu3 %v10557_v50  ;;  %v7378_v44 = vor.u32 %v9649_v35, %v7377_v34  ;;  %v9407_v34 = vld [vmem:[%s15240_s1 + $0xe4] sm:$0xf] }
  0x5f   : > { %v7633_v40 = vld [vmem:[%s15240_s1 + $0xa60] sm:$0xf]  ;;  %2653 = vmatmul.bf16.vlgmr.msrb.gmra.mxu0 %v10559_v52  ;;  %v9713_v41 = vld [vmem:[%s15240_s1 + $0xa6c] sm:$0xf0]  ;;  %2666 = vmatmul.bf16.vlgmr.msrb.gmra.mxu1 %v10561_v53  ;;  %v7506_v45 = vor.u32 %v9681_v39, %v7505_v38  ;;  %v6419_v35 = vld [vmem:[%s15240_s1 + $0xf0] sm:$0xf0] }
  0x60   : > { %v7761_v42 = vld [vmem:[%s15240_s1 + $0xb60] sm:$0xf]  ;;  %v9745_v43 = vld [vmem:[%s15240_s1 + $0xb6c] sm:$0xf0]  ;;  %2726 = vmatpush.bf16.msra.mxu2 %v7650_v36  ;;  %2739 = vmatpush.bf16.msra.mxu3 %v7778_v37  ;;  %v7634_v48 = vor.u32 %v9713_v41, %v7633_v40  ;;  %v261_v36 = vrot.slane %v236_v55, 1  ;;  %v259_v37 = vrot.slane %v229_v1, 1 }
  0x61   : > { %v7361_v46 = vld [vmem:[%s15240_s1 + $0x840] sm:$0xf]  ;;  %v9645_v47 = vld [vmem:[%s15240_s1 + $0x84c] sm:$0xf0]  ;;  %v7762_v51 = vor.u32 %v9745_v43, %v7761_v42  ;;  %2701 = vmatpush.bf16.msra.mxu0 %v7378_v44  ;;  %2714 = vmatpush.bf16.msra.mxu1 %v7506_v45  ;;  %v9439_v62 = vld [vmem:[%s15240_s1 + $0x1e4] sm:$0xf]  ;;  %v6422_v43 = vor.u32 %v9407_v34, %v6419_v35  ;;  %v258_v45 = vor.u32 %v257_v29, %v219_v61 }
  0x62   : > { %v7489_v58 = vld [vmem:[%s15240_s1 + $0x940] sm:$0xf]  ;;  %v9677_v59 = vld [vmem:[%s15240_s1 + $0x94c] sm:$0xf0]  ;;  %v7362_v4 = vor.u32 %v9645_v47, %v7361_v46  ;;  %v263_v38 = vrot.slane %v243_v57, 1 }
  0x63   : > { %v7617_v60 = vld [vmem:[%s15240_s1 + $0xa40] sm:$0xf]  ;;  %v9709_v63 = vld [vmem:[%s15240_s1 + $0xa4c] sm:$0xf0]  ;;  %v7490_v7 = vor.u32 %v9677_v59, %v7489_v58  ;;  %v6547_v40 = vld [vmem:[%s15240_s1 + $0x1f0] sm:$0xf0] }
  0x64   : > { %v7745_v2 = vld [vmem:[%s15240_s1 + $0xb40] sm:$0xf]  ;;  %v9741_v3 = vld [vmem:[%s15240_s1 + $0xb4c] sm:$0xf0]  ;;  %2727 = vmatpush.bf16.msra.mxu2 %v7634_v48  ;;  %2740 = vmatpush.bf16.msra.mxu3 %v7762_v51  ;;  %v7618_v11 = vor.u32 %v9709_v63, %v7617_v60  ;;  %v9471_v55 = vld [vmem:[%s15240_s1 + $0x2e4] sm:$0xf]  ;;  %v262_v48 = vor.u32 %v261_v36, %v233_v54  ;;  %v260_v51 = vor.u32 %v259_v37, %v226_v0 }
  0x65   : > { %v7345_v5 = vld [vmem:[%s15240_s1 + $0x820] sm:$0xf]  ;;  %v9641_v8 = vld [vmem:[%s15240_s1 + $0x82c] sm:$0xf0]  ;;  %v7746_v12 = vor.u32 %v9741_v3, %v7745_v2  ;;  %2702 = vmatpush.bf16.msra.mxu0 %v7362_v4  ;;  %2715 = vmatpush.bf16.msra.mxu1 %v7490_v7  ;;  %v6675_v1 = vld [vmem:[%s15240_s1 + $0x2f0] sm:$0xf0]  ;;  %v6550_v58 = vor.u32 %v9439_v62, %v6547_v40  ;;  %v264_v61 = vor.u32 %v263_v38, %v240_v56 }
  0x66   : > { %v7473_v9 = vld [vmem:[%s15240_s1 + $0x920] sm:$0xf]  ;;  %v9673_v10 = vld [vmem:[%s15240_s1 + $0x92c] sm:$0xf0]  ;;  %v7346_v19 = vor.u32 %v9641_v8, %v7345_v5  ;;  %v9503_v57 = vld [vmem:[%s15240_s1 + $0x3e4] sm:$0xf]  ;;  %v6678_v59 = vor.u32 %v9471_v55, %v6675_v1 }
  0x67   : > { %v7601_v13 = vld [vmem:[%s15240_s1 + $0xa20] sm:$0xf]  ;;  %v9705_v14 = vld [vmem:[%s15240_s1 + $0xa2c] sm:$0xf0]  ;;  %v7474_v24 = vor.u32 %v9673_v10, %v7473_v9  ;;  %v6803_v44 = vld [vmem:[%s15240_s1 + $0x3f0] sm:$0xf0] }
  0x68   : > { %v7729_v15 = vld [vmem:[%s15240_s1 + $0xb20] sm:$0xf]  ;;  %v9737_v16 = vld [vmem:[%s15240_s1 + $0xb2c] sm:$0xf0]  ;;  %2728 = vmatpush.bf16.msra.mxu2 %v7618_v11  ;;  %2741 = vmatpush.bf16.msra.mxu3 %v7746_v12  ;;  %v7602_v32 = vor.u32 %v9705_v14, %v7601_v13  ;;  %v9403_v60 = vld [vmem:[%s15240_s1 + $0xc4] sm:$0xf]  ;;  %v6806_v2 = vor.u32 %v9503_v57, %v6803_v44 }
  0x69   : > { %v7329_v17 = vld [vmem:[%s15240_s1 + $0x800] sm:$0xf]  ;;  %v9637_v18 = vld [vmem:[%s15240_s1 + $0x80c] sm:$0xf0]  ;;  %v7730_v33 = vor.u32 %v9737_v16, %v7729_v15  ;;  %2703 = vmatpush.bf16.msra.mxu0 %v7346_v19  ;;  %2716 = vmatpush.bf16.msra.mxu1 %v7474_v24  ;;  %v6403_v63 = vld [vmem:[%s15240_s1 + $0xd0] sm:$0xf0] }
  0x6a   : > { %v7457_v20 = vld [vmem:[%s15240_s1 + $0x900] sm:$0xf]  ;;  %v9669_v21 = vld [vmem:[%s15240_s1 + $0x90c] sm:$0xf0]  ;;  %v7330_v39 = vor.u32 %v9637_v18, %v7329_v17  ;;  %v9435_v54 = vld [vmem:[%s15240_s1 + $0x1c4] sm:$0xf]  ;;  %v6406_v10 = vor.u32 %v9403_v60, %v6403_v63 }
  0x6b   : > { %v7585_v22 = vld [vmem:[%s15240_s1 + $0xa00] sm:$0xf]  ;;  %v9701_v23 = vld [vmem:[%s15240_s1 + $0xa0c] sm:$0xf0]  ;;  %v7458_v41 = vor.u32 %v9669_v21, %v7457_v20  ;;  %v6531_v0 = vld [vmem:[%s15240_s1 + $0x1d0] sm:$0xf0] }
  0x6c   : > { %v7713_v27 = vld [vmem:[%s15240_s1 + $0xb00] sm:$0xf]  ;;  %v9733_v28 = vld [vmem:[%s15240_s1 + $0xb0c] sm:$0xf0]  ;;  %v7586_v42 = vor.u32 %v9701_v23, %v7585_v22  ;;  %2729 = vmatpush.bf16.msra.mxu2 %v7602_v32  ;;  %2742 = vmatpush.bf16.msra.mxu3 %v7730_v33  ;;  %v9467_v56 = vld [vmem:[%s15240_s1 + $0x2c4] sm:$0xf]  ;;  %v6534_v13 = vor.u32 %v9435_v54, %v6531_v0 }
  0x6d   : > { %v7714_v46 = vor.u32 %v9733_v28, %v7713_v27  ;;  %2704 = vmatpush.bf16.msra.mxu0 %v7330_v39  ;;  %v6659_v3 = vld [vmem:[%s15240_s1 + $0x2d0] sm:$0xf0]  ;;  %2717 = vmatpush.bf16.msra.mxu1 %v7458_v41  ;;  %v10923_v4 = vsel %vm10893_vm5, %v258_v45, 0  ;;  %v9499_v5 = vld [vmem:[%s15240_s1 + $0x3c4] sm:$0xf]  ;;  %v10933_v8 = vsel %vm10893_vm5, %v262_v48, 0 }
  0x6e   : > { %v6787_v7 = vld [vmem:[%s15240_s1 + $0x3d0] sm:$0xf0]  ;;  %v10937_v9 = vsel %vm10893_vm5, %v260_v51, 0  ;;  %v9399_v11 = vld [vmem:[%s15240_s1 + $0xa4] sm:$0xf]  ;;  %v10944_v12 = vsel %vm10893_vm5, %v264_v61, 0  ;;  %v6662_v14 = vor.u32 %v9467_v56, %v6659_v3 }
  0x6f   : > { %v6387_v15 = vld [vmem:[%s15240_s1 + $0xb0] sm:$0xf0]  ;;  %v9431_v16 = vld [vmem:[%s15240_s1 + $0x1a4] sm:$0xf]  ;;  %v6790_v17 = vor.u32 %v9499_v5, %v6787_v7  ;;  %v9201_v6 = vld [vmem:[%s15241_s2 + $0xaa0] sm:$0xf] }
  0x70   : > { %2730 = vmatpush.bf16.msra.mxu2 %v7586_v42  ;;  %2743 = vmatpush.bf16.msra.mxu3 %v7714_v46  ;;  %v6515_v18 = vld [vmem:[%s15240_s1 + $0x1b0] sm:$0xf0]  ;;  %v9463_v19 = vld [vmem:[%s15240_s1 + $0x2a4] sm:$0xf]  ;;  %v6390_v23 = vor.u32 %v9399_v11, %v6387_v15 }
  0x71   : > { %2749 = vmatpush.bf16.msrb.mxu0 %v6422_v43  ;;  %2762 = vmatpush.bf16.msrb.mxu1 %v6550_v58  ;;  %v6643_v20 = vld [vmem:[%s15240_s1 + $0x2b0] sm:$0xf0]  ;;  %v9495_v21 = vld [vmem:[%s15240_s1 + $0x3a4] sm:$0xf]  ;;  %v6518_v24 = vor.u32 %v9431_v16, %v6515_v18 }
  0x72   : > { %2705 = vmatmul.bf16.vlgmr.msra.gmra.mxu0 %v10923_v4  ;;  %2718 = vmatmul.bf16.vlgmr.msra.gmra.mxu1 %v10937_v9  ;;  %v6771_v22 = vld [vmem:[%s15240_s1 + $0x3b0] sm:$0xf0]  ;;  %v6646_v27 = vor.u32 %v9463_v19, %v6643_v20  ;;  %v9395_v28 = vld [vmem:[%s15240_s1 + $0x84] sm:$0xf] }
  0x73   : > { %2731 = vmatmul.bf16.vlgmr.msra.gmra.mxu2 %v10933_v8  ;;  %2744 = vmatmul.bf16.vlgmr.msra.gmra.mxu3 %v10944_v12  ;;  %v6371_v29 = vld [vmem:[%s15240_s1 + $0x90] sm:$0xf0]  ;;  %v9427_v32 = vld [vmem:[%s15240_s1 + $0x184] sm:$0xf]  ;;  %v6774_v33 = vor.u32 %v9495_v21, %v6771_v22 }
  0x74   : > { %2775 = vmatpush.bf16.msrb.mxu2 %v6678_v59  ;;  %2788 = vmatpush.bf16.msrb.mxu3 %v6806_v2  ;;  %v6499_v34 = vld [vmem:[%s15240_s1 + $0x190] sm:$0xf0]  ;;  %v9459_v35 = vld [vmem:[%s15240_s1 + $0x284] sm:$0xf]  ;;  %v6374_v38 = vor.u32 %v9395_v28, %v6371_v29 }
  0x75   : > { %2750 = vmatpush.bf16.msrb.mxu0 %v6406_v10  ;;  %2763 = vmatpush.bf16.msrb.mxu1 %v6534_v13  ;;  %v6627_v36 = vld [vmem:[%s15240_s1 + $0x290] sm:$0xf0]  ;;  %v9491_v37 = vld [vmem:[%s15240_s1 + $0x384] sm:$0xf]  ;;  %v6502_v39 = vor.u32 %v9427_v32, %v6499_v34 }
  0x76   : > { %v6755_v62 = vld [vmem:[%s15240_s1 + $0x390] sm:$0xf0]  ;;  %v6630_v40 = vor.u32 %v9459_v35, %v6627_v36  ;;  %v9391_v55 = vld [vmem:[%s15240_s1 + $0x64] sm:$0xf] }
  0x77   : > { %v6355_v1 = vld [vmem:[%s15240_s1 + $0x70] sm:$0xf0]  ;;  %v9423_v41 = vld [vmem:[%s15240_s1 + $0x164] sm:$0xf]  ;;  %v6758_v42 = vor.u32 %v9491_v37, %v6755_v62 }
  0x78   : > { %2776 = vmatpush.bf16.msrb.mxu2 %v6662_v14  ;;  %2789 = vmatpush.bf16.msrb.mxu3 %v6790_v17  ;;  %v6483_v43 = vld [vmem:[%s15240_s1 + $0x170] sm:$0xf0]  ;;  %v9455_v57 = vld [vmem:[%s15240_s1 + $0x264] sm:$0xf]  ;;  %v6358_v48 = vor.u32 %v9391_v55, %v6355_v1 }
  0x79   : > { %2751 = vmatpush.bf16.msrb.mxu0 %v6390_v23  ;;  %2764 = vmatpush.bf16.msrb.mxu1 %v6518_v24  ;;  %v6611_v44 = vld [vmem:[%s15240_s1 + $0x270] sm:$0xf0]  ;;  %v9487_v45 = vld [vmem:[%s15240_s1 + $0x364] sm:$0xf]  ;;  %v6486_v51 = vor.u32 %v9423_v41, %v6483_v43 }
  0x7a   : > { %v6739_v46 = vld [vmem:[%s15240_s1 + $0x370] sm:$0xf0]  ;;  %v6614_v58 = vor.u32 %v9455_v57, %v6611_v44  ;;  %v9387_v59 = vld [vmem:[%s15240_s1 + $0x44] sm:$0xf] }
  0x7b   : > { %v6339_v61 = vld [vmem:[%s15240_s1 + $0x50] sm:$0xf0]  ;;  %v9419_v60 = vld [vmem:[%s15240_s1 + $0x144] sm:$0xf]  ;;  %v6742_v63 = vor.u32 %v9487_v45, %v6739_v46 }
  0x7c   : > { %2777 = vmatpush.bf16.msrb.mxu2 %v6646_v27  ;;  %2790 = vmatpush.bf16.msrb.mxu3 %v6774_v33  ;;  %v6467_v54 = vld [vmem:[%s15240_s1 + $0x150] sm:$0xf0]  ;;  %v9451_v2 = vld [vmem:[%s15240_s1 + $0x244] sm:$0xf]  ;;  %v6342_v5 = vor.u32 %v9387_v59, %v6339_v61 }
  0x7d   : > { %2752 = vmatpush.bf16.msrb.mxu0 %v6374_v38  ;;  %2765 = vmatpush.bf16.msrb.mxu1 %v6502_v39  ;;  %v6595_v0 = vld [vmem:[%s15240_s1 + $0x250] sm:$0xf0]  ;;  %v9483_v56 = vld [vmem:[%s15240_s1 + $0x344] sm:$0xf]  ;;  %v6470_v7 = vor.u32 %v9419_v60, %v6467_v54 }
  0x7e   : > { %v6723_v3 = vld [vmem:[%s15240_s1 + $0x350] sm:$0xf0]  ;;  %v6598_v10 = vor.u32 %v9451_v2, %v6595_v0  ;;  %v9383_v11 = vld [vmem:[%s15240_s1 + $0x24] sm:$0xf] }
  0x7f   : > { %v6323_v13 = vld [vmem:[%s15240_s1 + $0x30] sm:$0xf0]  ;;  %v9415_v14 = vld [vmem:[%s15240_s1 + $0x124] sm:$0xf]  ;;  %v6726_v15 = vor.u32 %v9483_v56, %v6723_v3 }
  0x80   : > { %2778 = vmatpush.bf16.msrb.mxu2 %v6630_v40  ;;  %2791 = vmatpush.bf16.msrb.mxu3 %v6758_v42  ;;  %v6451_v16 = vld [vmem:[%s15240_s1 + $0x130] sm:$0xf0]  ;;  %v9447_v17 = vld [vmem:[%s15240_s1 + $0x224] sm:$0xf]  ;;  %v6326_v21 = vor.u32 %v9383_v11, %v6323_v13 }
  0x81   : > { %2753 = vmatpush.bf16.msrb.mxu0 %v6358_v48  ;;  %2766 = vmatpush.bf16.msrb.mxu1 %v6486_v51  ;;  %v6579_v18 = vld [vmem:[%s15240_s1 + $0x230] sm:$0xf0]  ;;  %v9479_v19 = vld [vmem:[%s15240_s1 + $0x324] sm:$0xf]  ;;  %v6454_v24 = vor.u32 %v9415_v14, %v6451_v16 }
  0x82   : > { %v6707_v20 = vld [vmem:[%s15240_s1 + $0x330] sm:$0xf0]  ;;  %v9379_v22 = vld [vmem:[%s15240_s1 + $0x4] sm:$0xf]  ;;  %v6582_v27 = vor.u32 %v9447_v17, %v6579_v18 }
  0x83   : > { %v6307_v23 = vld [vmem:[%s15240_s1 + $0x10] sm:$0xf0]  ;;  %v9411_v28 = vld [vmem:[%s15240_s1 + $0x104] sm:$0xf]  ;;  %v6710_v33 = vor.u32 %v9479_v19, %v6707_v20 }
  0x84   : > { %2779 = vmatpush.bf16.msrb.mxu2 %v6614_v58  ;;  %2792 = vmatpush.bf16.msrb.mxu3 %v6742_v63  ;;  %v6435_v29 = vld [vmem:[%s15240_s1 + $0x110] sm:$0xf0]  ;;  %v9443_v32 = vld [vmem:[%s15240_s1 + $0x204] sm:$0xf]  ;;  %v6310_v39 = vor.u32 %v9379_v22, %v6307_v23 }
  0x85   : > { %2754 = vmatpush.bf16.msrb.mxu0 %v6342_v5  ;;  %2767 = vmatpush.bf16.msrb.mxu1 %v6470_v7  ;;  %v6563_v34 = vld [vmem:[%s15240_s1 + $0x210] sm:$0xf0]  ;;  %v9475_v35 = vld [vmem:[%s15240_s1 + $0x304] sm:$0xf]  ;;  %v6438_v41 = vor.u32 %v9411_v28, %v6435_v29 }
  0x86   : > { %v6691_v36 = vld [vmem:[%s15240_s1 + $0x310] sm:$0xf0]  ;;  %v9535_v37 = vld [vmem:[%s15240_s1 + $0x4e4] sm:$0xf]  ;;  %v6566_v42 = vor.u32 %v9443_v32, %v6563_v34 }
  0x87   : > { %v6931_v62 = vld [vmem:[%s15240_s1 + $0x4f0] sm:$0xf0]  ;;  %v9567_v38 = vld [vmem:[%s15240_s1 + $0x5e4] sm:$0xf]  ;;  %v6694_v44 = vor.u32 %v9475_v35, %v6691_v36 }
  0x88   : > { %2780 = vmatpush.bf16.msrb.mxu2 %v6598_v10  ;;  %2793 = vmatpush.bf16.msrb.mxu3 %v6726_v15  ;;  %v7059_v40 = vld [vmem:[%s15240_s1 + $0x5f0] sm:$0xf0]  ;;  %v9599_v55 = vld [vmem:[%s15240_s1 + $0x6e4] sm:$0xf]  ;;  %v6934_v45 = vor.u32 %v9535_v37, %v6931_v62 }
  0x89   : > { %2755 = vmatpush.bf16.msrb.mxu0 %v6326_v21  ;;  %v7187_v1 = vld [vmem:[%s15240_s1 + $0x6f0] sm:$0xf0]  ;;  %2768 = vmatpush.bf16.msrb.mxu1 %v6454_v24  ;;  %v9631_v43 = vld [vmem:[%s15240_s1 + $0x7e4] sm:$0xf]  ;;  %v7062_v46 = vor.u32 %v9567_v38, %v7059_v40 }
  0x8a   : > { %v7315_v57 = vld [vmem:[%s15240_s1 + $0x7f0] sm:$0xf0]  ;;  %v7190_v48 = vor.u32 %v9599_v55, %v7187_v1  ;;  %v9531_v51 = vld [vmem:[%s15240_s1 + $0x4c4] sm:$0xf] }
  0x8b   : > { %v6915_v58 = vld [vmem:[%s15240_s1 + $0x4d0] sm:$0xf0]  ;;  %v9563_v59 = vld [vmem:[%s15240_s1 + $0x5c4] sm:$0xf]  ;;  %v7318_v61 = vor.u32 %v9631_v43, %v7315_v57 }
  0x8c   : > { %2781 = vmatpush.bf16.msrb.mxu2 %v6582_v27  ;;  %2794 = vmatpush.bf16.msrb.mxu3 %v6710_v33  ;;  %v7043_v60 = vld [vmem:[%s15240_s1 + $0x5d0] sm:$0xf0]  ;;  %v9595_v63 = vld [vmem:[%s15240_s1 + $0x6c4] sm:$0xf]  ;;  %v6918_v56 = vor.u32 %v9531_v51, %v6915_v58 }
  0x8d   : > { %2756 = vmatpush.bf16.msrb.mxu0 %v6310_v39  ;;  %v7171_v54 = vld [vmem:[%s15240_s1 + $0x6d0] sm:$0xf0]  ;;  %2769 = vmatpush.bf16.msrb.mxu1 %v6438_v41  ;;  %v9627_v2 = vld [vmem:[%s15240_s1 + $0x7c4] sm:$0xf]  ;;  %v7046_v3 = vor.u32 %v9563_v59, %v7043_v60 }
  0x8e   : > { %v7299_v0 = vld [vmem:[%s15240_s1 + $0x7d0] sm:$0xf0]  ;;  %v7174_v5 = vor.u32 %v9595_v63, %v7171_v54  ;;  %v9527_v7 = vld [vmem:[%s15240_s1 + $0x4a4] sm:$0xf] }
  0x8f   : > { %v6899_v10 = vld [vmem:[%s15240_s1 + $0x4b0] sm:$0xf0]  ;;  %v9559_v11 = vld [vmem:[%s15240_s1 + $0x5a4] sm:$0xf]  ;;  %v7302_v13 = vor.u32 %v9627_v2, %v7299_v0 }
  0x90   : > { %2782 = vmatpush.bf16.msrb.mxu2 %v6566_v42  ;;  %2795 = vmatpush.bf16.msrb.mxu3 %v6694_v44  ;;  %v7027_v14 = vld [vmem:[%s15240_s1 + $0x5b0] sm:$0xf0]  ;;  %v9591_v15 = vld [vmem:[%s15240_s1 + $0x6a4] sm:$0xf]  ;;  %v6902_v19 = vor.u32 %v9527_v7, %v6899_v10 }
  0x91   : > { %2801 = vmatpush.bf16.msra.mxu0 %v6934_v45  ;;  %2814 = vmatpush.bf16.msra.mxu1 %v7062_v46  ;;  %v7155_v16 = vld [vmem:[%s15240_s1 + $0x6b0] sm:$0xf0]  ;;  %v9623_v17 = vld [vmem:[%s15240_s1 + $0x7a4] sm:$0xf]  ;;  %v7030_v20 = vor.u32 %v9559_v11, %v7027_v14 }
  0x92   : > { %v7283_v18 = vld [vmem:[%s15240_s1 + $0x7b0] sm:$0xf0]  ;;  %2757 = vmatmul.bf16.vlgmr.msrb.gmra.mxu0 %v10655_v30  ;;  %2770 = vmatmul.bf16.vlgmr.msrb.gmra.mxu1 %v10660_v31  ;;  %v7158_v21 = vor.u32 %v9591_v15, %v7155_v16  ;;  %v9523_v22 = vld [vmem:[%s15240_s1 + $0x484] sm:$0xf] }
  0x93   : > { %2783 = vmatmul.bf16.vlgmr.msrb.gmra.mxu2 %v10640_v25  ;;  %2796 = vmatmul.bf16.vlgmr.msrb.gmra.mxu3 %v10644_v26  ;;  %v6883_v23 = vld [vmem:[%s15240_s1 + $0x490] sm:$0xf0]  ;;  %v9555_v24 = vld [vmem:[%s15240_s1 + $0x584] sm:$0xf]  ;;  %v7286_v27 = vor.u32 %v9623_v17, %v7283_v18 }
  0x94   : > { %2827 = vmatpush.bf16.msra.mxu2 %v7190_v48  ;;  %2840 = vmatpush.bf16.msra.mxu3 %v7318_v61  ;;  %v7011_v28 = vld [vmem:[%s15240_s1 + $0x590] sm:$0xf0]  ;;  %v9587_v29 = vld [vmem:[%s15240_s1 + $0x684] sm:$0xf]  ;;  %v6886_v35 = vor.u32 %v9523_v22, %v6883_v23 }
  0x95   : > { %2802 = vmatpush.bf16.msra.mxu0 %v6918_v56  ;;  %2815 = vmatpush.bf16.msra.mxu1 %v7046_v3  ;;  %v7139_v32 = vld [vmem:[%s15240_s1 + $0x690] sm:$0xf0]  ;;  %v9619_v33 = vld [vmem:[%s15240_s1 + $0x784] sm:$0xf]  ;;  %v7014_v36 = vor.u32 %v9555_v24, %v7011_v28 }
  0x96   : > { %v7267_v34 = vld [vmem:[%s15240_s1 + $0x790] sm:$0xf0]  ;;  %v7142_v37 = vor.u32 %v9587_v29, %v7139_v32  ;;  %v9519_v62 = vld [vmem:[%s15240_s1 + $0x464] sm:$0xf] }
  0x97   : > { %v6867_v38 = vld [vmem:[%s15240_s1 + $0x470] sm:$0xf0]  ;;  %v9551_v39 = vld [vmem:[%s15240_s1 + $0x564] sm:$0xf]  ;;  %v7270_v40 = vor.u32 %v9619_v33, %v7267_v34 }
  0x98   : > { %2828 = vmatpush.bf16.msra.mxu2 %v7174_v5  ;;  %2841 = vmatpush.bf16.msra.mxu3 %v7302_v13  ;;  %v6995_v55 = vld [vmem:[%s15240_s1 + $0x570] sm:$0xf0]  ;;  %v9583_v1 = vld [vmem:[%s15240_s1 + $0x664] sm:$0xf]  ;;  %v6870_v57 = vor.u32 %v9519_v62, %v6867_v38 }
  0x99   : > { %2803 = vmatpush.bf16.msra.mxu0 %v6902_v19  ;;  %2816 = vmatpush.bf16.msra.mxu1 %v7030_v20  ;;  %v7123_v41 = vld [vmem:[%s15240_s1 + $0x670] sm:$0xf0]  ;;  %v9615_v42 = vld [vmem:[%s15240_s1 + $0x764] sm:$0xf]  ;;  %v6998_v44 = vor.u32 %v9551_v39, %v6995_v55 }
  0x9a   : > { %v7251_v43 = vld [vmem:[%s15240_s1 + $0x770] sm:$0xf0]  ;;  %v7126_v45 = vor.u32 %v9583_v1, %v7123_v41  ;;  %v9515_v46 = vld [vmem:[%s15240_s1 + $0x444] sm:$0xf] }
  0x9b   : > { %v6851_v48 = vld [vmem:[%s15240_s1 + $0x450] sm:$0xf0]  ;;  %v9547_v51 = vld [vmem:[%s15240_s1 + $0x544] sm:$0xf]  ;;  %v7254_v58 = vor.u32 %v9615_v42, %v7251_v43 }
  0x9c   : > { %2829 = vmatpush.bf16.msra.mxu2 %v7158_v21  ;;  %2842 = vmatpush.bf16.msra.mxu3 %v7286_v27  ;;  %v6979_v59 = vld [vmem:[%s15240_s1 + $0x550] sm:$0xf0]  ;;  %v9579_v61 = vld [vmem:[%s15240_s1 + $0x644] sm:$0xf]  ;;  %v6854_v2 = vor.u32 %v9515_v46, %v6851_v48 }
  0x9d   : > { %2804 = vmatpush.bf16.msra.mxu0 %v6886_v35  ;;  %2817 = vmatpush.bf16.msra.mxu1 %v7014_v36  ;;  %v7107_v60 = vld [vmem:[%s15240_s1 + $0x650] sm:$0xf0]  ;;  %v9611_v63 = vld [vmem:[%s15240_s1 + $0x744] sm:$0xf]  ;;  %v6982_v0 = vor.u32 %v9547_v51, %v6979_v59 }
  0x9e   : > { %v7235_v54 = vld [vmem:[%s15240_s1 + $0x750] sm:$0xf0]  ;;  %v7110_v56 = vor.u32 %v9579_v61, %v7107_v60  ;;  %v9511_v3 = vld [vmem:[%s15240_s1 + $0x424] sm:$0xf] }
  0x9f   : > { %v6835_v5 = vld [vmem:[%s15240_s1 + $0x430] sm:$0xf0]  ;;  %v9543_v7 = vld [vmem:[%s15240_s1 + $0x524] sm:$0xf]  ;;  %v7238_v10 = vor.u32 %v9611_v63, %v7235_v54 }
  0xa0   : > { %2830 = vmatpush.bf16.msra.mxu2 %v7142_v37  ;;  %2843 = vmatpush.bf16.msra.mxu3 %v7270_v40  ;;  %v6963_v11 = vld [vmem:[%s15240_s1 + $0x530] sm:$0xf0]  ;;  %v9575_v13 = vld [vmem:[%s15240_s1 + $0x624] sm:$0xf]  ;;  %v6838_v17 = vor.u32 %v9511_v3, %v6835_v5 }
  0xa1   : > { %2805 = vmatpush.bf16.msra.mxu0 %v6870_v57  ;;  %2818 = vmatpush.bf16.msra.mxu1 %v6998_v44  ;;  %v7091_v14 = vld [vmem:[%s15240_s1 + $0x630] sm:$0xf0]  ;;  %v9607_v15 = vld [vmem:[%s15240_s1 + $0x724] sm:$0xf]  ;;  %v6966_v20 = vor.u32 %v9543_v7, %v6963_v11 }
  0xa2   : > { %v7219_v16 = vld [vmem:[%s15240_s1 + $0x730] sm:$0xf0]  ;;  %v9507_v18 = vld [vmem:[%s15240_s1 + $0x404] sm:$0xf]  ;;  %v7094_v21 = vor.u32 %v9575_v13, %v7091_v14 }
  0xa3   : > { %v6819_v19 = vld [vmem:[%s15240_s1 + $0x410] sm:$0xf0]  ;;  %v9539_v22 = vld [vmem:[%s15240_s1 + $0x504] sm:$0xf]  ;;  %v7222_v27 = vor.u32 %v9607_v15, %v7219_v16 }
  0xa4   : > { %2831 = vmatpush.bf16.msra.mxu2 %v7126_v45  ;;  %2844 = vmatpush.bf16.msra.mxu3 %v7254_v58  ;;  %v6947_v23 = vld [vmem:[%s15240_s1 + $0x510] sm:$0xf0]  ;;  %v9571_v24 = vld [vmem:[%s15240_s1 + $0x604] sm:$0xf]  ;;  %v6822_v36 = vor.u32 %v9507_v18, %v6819_v19 }
  0xa5   : > { %2806 = vmatpush.bf16.msra.mxu0 %v6854_v2  ;;  %2819 = vmatpush.bf16.msra.mxu1 %v6982_v0  ;;  %v7075_v28 = vld [vmem:[%s15240_s1 + $0x610] sm:$0xf0]  ;;  %v9603_v29 = vld [vmem:[%s15240_s1 + $0x704] sm:$0xf]  ;;  %v6950_v39 = vor.u32 %v9539_v22, %v6947_v23 }
  0xa6   : > { %v7203_v32 = vld [vmem:[%s15240_s1 + $0x710] sm:$0xf0]  ;;  %v9663_v33 = vld [vmem:[%s15240_s1 + $0x8e4] sm:$0xf]  ;;  %v7078_v40 = vor.u32 %v9571_v24, %v7075_v28 }
  0xa7   : > { %v7443_v34 = vld [vmem:[%s15240_s1 + $0x8f0] sm:$0xf0]  ;;  %v9695_v35 = vld [vmem:[%s15240_s1 + $0x9e4] sm:$0xf]  ;;  %v7206_v41 = vor.u32 %v9603_v29, %v7203_v32 }
  0xa8   : > { %2832 = vmatpush.bf16.msra.mxu2 %v7110_v56  ;;  %2845 = vmatpush.bf16.msra.mxu3 %v7238_v10  ;;  %v7571_v37 = vld [vmem:[%s15240_s1 + $0x9f0] sm:$0xf0]  ;;  %v9727_v62 = vld [vmem:[%s15240_s1 + $0xae4] sm:$0xf]  ;;  %v7446_v42 = vor.u32 %v9663_v33, %v7443_v34 }
  0xa9   : > { %2807 = vmatpush.bf16.msra.mxu0 %v6838_v17  ;;  %v7699_v38 = vld [vmem:[%s15240_s1 + $0xaf0] sm:$0xf0]  ;;  %2820 = vmatpush.bf16.msra.mxu1 %v6966_v20  ;;  %v9759_v55 = vld [vmem:[%s15240_s1 + $0xbe4] sm:$0xf]  ;;  %v7574_v43 = vor.u32 %v9695_v35, %v7571_v37 }
  0xaa   : > { %v7827_v1 = vld [vmem:[%s15240_s1 + $0xbf0] sm:$0xf0]  ;;  %v7702_v57 = vor.u32 %v9727_v62, %v7699_v38  ;;  %v9659_v44 = vld [vmem:[%s15240_s1 + $0x8c4] sm:$0xf] }
  0xab   : > { %v7427_v45 = vld [vmem:[%s15240_s1 + $0x8d0] sm:$0xf0]  ;;  %v9691_v46 = vld [vmem:[%s15240_s1 + $0x9c4] sm:$0xf]  ;;  %v7830_v48 = vor.u32 %v9759_v55, %v7827_v1 }
  0xac   : > { %2833 = vmatpush.bf16.msra.mxu2 %v7094_v21  ;;  %2846 = vmatpush.bf16.msra.mxu3 %v7222_v27  ;;  %v7555_v51 = vld [vmem:[%s15240_s1 + $0x9d0] sm:$0xf0]  ;;  %v9723_v58 = vld [vmem:[%s15240_s1 + $0xac4] sm:$0xf]  ;;  %v7430_v63 = vor.u32 %v9659_v44, %v7427_v45 }
  0xad   : > { %2808 = vmatpush.bf16.msra.mxu0 %v6822_v36  ;;  %v7683_v59 = vld [vmem:[%s15240_s1 + $0xad0] sm:$0xf0]  ;;  %2821 = vmatpush.bf16.msra.mxu1 %v6950_v39  ;;  %v9755_v61 = vld [vmem:[%s15240_s1 + $0xbc4] sm:$0xf]  ;;  %v7558_v54 = vor.u32 %v9691_v46, %v7555_v51 }
  0xae   : > { %v7811_v60 = vld [vmem:[%s15240_s1 + $0xbd0] sm:$0xf0]  ;;  %v7686_v2 = vor.u32 %v9723_v58, %v7683_v59  ;;  %v9655_v0 = vld [vmem:[%s15240_s1 + $0x8a4] sm:$0xf] }
  0xaf   : > { %v7411_v56 = vld [vmem:[%s15240_s1 + $0x8b0] sm:$0xf0]  ;;  %v9687_v3 = vld [vmem:[%s15240_s1 + $0x9a4] sm:$0xf]  ;;  %v7814_v5 = vor.u32 %v9755_v61, %v7811_v60 }
  0xb0   : > { %2834 = vmatpush.bf16.msra.mxu2 %v7078_v40  ;;  %2847 = vmatpush.bf16.msra.mxu3 %v7206_v41  ;;  %v7539_v7 = vld [vmem:[%s15240_s1 + $0x9b0] sm:$0xf0]  ;;  %v9719_v10 = vld [vmem:[%s15240_s1 + $0xaa4] sm:$0xf]  ;;  %v7414_v15 = vor.u32 %v9655_v0, %v7411_v56 }
  0xb1   : > { %2853 = vmatpush.bf16.msrb.mxu0 %v7446_v42  ;;  %2866 = vmatpush.bf16.msrb.mxu1 %v7574_v43  ;;  %v7667_v11 = vld [vmem:[%s15240_s1 + $0xab0] sm:$0xf0]  ;;  %v9751_v13 = vld [vmem:[%s15240_s1 + $0xba4] sm:$0xf]  ;;  %v7542_v16 = vor.u32 %v9687_v3, %v7539_v7 }
  0xb2   : > { %v7795_v14 = vld [vmem:[%s15240_s1 + $0xbb0] sm:$0xf0]  ;;  %2809 = vmatmul.bf16.vlgmr.msra.gmra.mxu0 %v10559_v52  ;;  %2822 = vmatmul.bf16.vlgmr.msra.gmra.mxu1 %v10561_v53  ;;  %v7670_v17 = vor.u32 %v9719_v10, %v7667_v11  ;;  %v9651_v18 = vld [vmem:[%s15240_s1 + $0x884] sm:$0xf] }
  0xb3   : > { %2835 = vmatmul.bf16.vlgmr.msra.gmra.mxu2 %v10555_v49  ;;  %2848 = vmatmul.bf16.vlgmr.msra.gmra.mxu3 %v10557_v50  ;;  %v7395_v19 = vld [vmem:[%s15240_s1 + $0x890] sm:$0xf0]  ;;  %v9683_v20 = vld [vmem:[%s15240_s1 + $0x984] sm:$0xf]  ;;  %v7798_v21 = vor.u32 %v9751_v13, %v7795_v14 }
  0xb4   : > { %2879 = vmatpush.bf16.msrb.mxu2 %v7702_v57  ;;  %2892 = vmatpush.bf16.msrb.mxu3 %v7830_v48  ;;  %v7523_v22 = vld [vmem:[%s15240_s1 + $0x990] sm:$0xf0]  ;;  %v9715_v23 = vld [vmem:[%s15240_s1 + $0xa84] sm:$0xf]  ;;  %v7398_v29 = vor.u32 %v9651_v18, %v7395_v19 }
  0xb5   : > { %2854 = vmatpush.bf16.msrb.mxu0 %v7430_v63  ;;  %2867 = vmatpush.bf16.msrb.mxu1 %v7558_v54  ;;  %v7651_v24 = vld [vmem:[%s15240_s1 + $0xa90] sm:$0xf0]  ;;  %v9747_v27 = vld [vmem:[%s15240_s1 + $0xb84] sm:$0xf]  ;;  %v7526_v32 = vor.u32 %v9683_v20, %v7523_v22 }
  0xb6   : > { %v7779_v28 = vld [vmem:[%s15240_s1 + $0xb90] sm:$0xf0]  ;;  %v7654_v33 = vor.u32 %v9715_v23, %v7651_v24  ;;  %v9647_v34 = vld [vmem:[%s15240_s1 + $0x864] sm:$0xf] }
  0xb7   : > { %v7379_v35 = vld [vmem:[%s15240_s1 + $0x870] sm:$0xf0]  ;;  %v9679_v36 = vld [vmem:[%s15240_s1 + $0x964] sm:$0xf]  ;;  %v7782_v37 = vor.u32 %v9747_v27, %v7779_v28  ;;  %v6425_v27 = vld [vmem:[%s15240_s1 + $0xe8] sm:$0xf] }
  0xb8   : > { %2880 = vmatpush.bf16.msrb.mxu2 %v7686_v2  ;;  %2893 = vmatpush.bf16.msrb.mxu3 %v7814_v5  ;;  %v7507_v62 = vld [vmem:[%s15240_s1 + $0x970] sm:$0xf0]  ;;  %v9711_v38 = vld [vmem:[%s15240_s1 + $0xa64] sm:$0xf]  ;;  %v7382_v1 = vor.u32 %v9647_v34, %v7379_v35  ;;  %v9410_v28 = vld [vmem:[%s15240_s1 + $0xf4] sm:$0xf0] }
  0xb9   : > { %2855 = vmatpush.bf16.msrb.mxu0 %v7414_v15  ;;  %2868 = vmatpush.bf16.msrb.mxu1 %v7542_v16  ;;  %v7635_v39 = vld [vmem:[%s15240_s1 + $0xa70] sm:$0xf0]  ;;  %v9743_v40 = vld [vmem:[%s15240_s1 + $0xb64] sm:$0xf]  ;;  %v7510_v41 = vor.u32 %v9679_v36, %v7507_v62  ;;  %v9442_v34 = vld [vmem:[%s15240_s1 + $0x1f4] sm:$0xf0] }
  0xba   : > { %v7763_v55 = vld [vmem:[%s15240_s1 + $0xb70] sm:$0xf0]  ;;  %v7638_v42 = vor.u32 %v9711_v38, %v7635_v39  ;;  %v9643_v43 = vld [vmem:[%s15240_s1 + $0x844] sm:$0xf]  ;;  %v6681_v35 = vld [vmem:[%s15240_s1 + $0x2e8] sm:$0xf] }
  0xbb   : > { %v7363_v57 = vld [vmem:[%s15240_s1 + $0x850] sm:$0xf0]  ;;  %v9675_v44 = vld [vmem:[%s15240_s1 + $0x944] sm:$0xf]  ;;  %v7766_v45 = vor.u32 %v9743_v40, %v7763_v55  ;;  %v9474_v36 = vld [vmem:[%s15240_s1 + $0x2f4] sm:$0xf0]  ;;  %v6426_v55 = vor.u32 %v9410_v28, %v6425_v27 }
  0xbc   : > { %2881 = vmatpush.bf16.msrb.mxu2 %v7670_v17  ;;  %2894 = vmatpush.bf16.msrb.mxu3 %v7798_v21  ;;  %v7491_v46 = vld [vmem:[%s15240_s1 + $0x950] sm:$0xf0]  ;;  %v9707_v48 = vld [vmem:[%s15240_s1 + $0xa44] sm:$0xf]  ;;  %v7366_v61 = vor.u32 %v9643_v43, %v7363_v57  ;;  %v6809_v38 = vld [vmem:[%s15240_s1 + $0x3e8] sm:$0xf] }
  0xbd   : > { %2856 = vmatpush.bf16.msrb.mxu0 %v7398_v29  ;;  %2869 = vmatpush.bf16.msrb.mxu1 %v7526_v32  ;;  %v7619_v51 = vld [vmem:[%s15240_s1 + $0xa50] sm:$0xf0]  ;;  %v9739_v58 = vld [vmem:[%s15240_s1 + $0xb44] sm:$0xf]  ;;  %v7494_v60 = vor.u32 %v9675_v44, %v7491_v46  ;;  %v6553_v29 = vld [vmem:[%s15240_s1 + $0x1e8] sm:$0xf] }
  0xbe   : > { %v7747_v59 = vld [vmem:[%s15240_s1 + $0xb50] sm:$0xf0]  ;;  %v7622_v63 = vor.u32 %v9707_v48, %v7619_v51  ;;  %v9639_v54 = vld [vmem:[%s15240_s1 + $0x824] sm:$0xf]  ;;  %v9506_v39 = vld [vmem:[%s15240_s1 + $0x3f4] sm:$0xf0] }
  0xbf   : > { %v7347_v2 = vld [vmem:[%s15240_s1 + $0x830] sm:$0xf0]  ;;  %v9671_v0 = vld [vmem:[%s15240_s1 + $0x924] sm:$0xf]  ;;  %v7750_v56 = vor.u32 %v9739_v58, %v7747_v59  ;;  %v6409_v43 = vld [vmem:[%s15240_s1 + $0xc8] sm:$0xf] }
  0xc0   : > { %2882 = vmatpush.bf16.msrb.mxu2 %v7654_v33  ;;  %2895 = vmatpush.bf16.msrb.mxu3 %v7782_v37  ;;  %v7475_v3 = vld [vmem:[%s15240_s1 + $0x930] sm:$0xf0]  ;;  %v9703_v5 = vld [vmem:[%s15240_s1 + $0xa24] sm:$0xf]  ;;  %v7350_v14 = vor.u32 %v9639_v54, %v7347_v2  ;;  %v9406_v57 = vld [vmem:[%s15240_s1 + $0xd4] sm:$0xf0] }
  0xc1   : > { %2857 = vmatpush.bf16.msrb.mxu0 %v7382_v1  ;;  %2870 = vmatpush.bf16.msrb.mxu1 %v7510_v41  ;;  %v7603_v7 = vld [vmem:[%s15240_s1 + $0xa30] sm:$0xf0]  ;;  %v9735_v10 = vld [vmem:[%s15240_s1 + $0xb24] sm:$0xf]  ;;  %v7478_v18 = vor.u32 %v9671_v0, %v7475_v3  ;;  %v6554_v41 = vor.u32 %v9442_v34, %v6553_v29  ;;  %v6537_v44 = vld [vmem:[%s15240_s1 + $0x1c8] sm:$0xf] }
  0xc2   : > { %v7731_v11 = vld [vmem:[%s15240_s1 + $0xb30] sm:$0xf0]  ;;  %v9635_v13 = vld [vmem:[%s15240_s1 + $0x804] sm:$0xf]  ;;  %v7606_v19 = vor.u32 %v9703_v5, %v7603_v7  ;;  %v9438_v46 = vld [vmem:[%s15240_s1 + $0x1d4] sm:$0xf0] }
  0xc3   : > { %v7331_v15 = vld [vmem:[%s15240_s1 + $0x810] sm:$0xf0]  ;;  %v9667_v16 = vld [vmem:[%s15240_s1 + $0x904] sm:$0xf]  ;;  %v7734_v23 = vor.u32 %v9735_v10, %v7731_v11  ;;  %v6665_v48 = vld [vmem:[%s15240_s1 + $0x2c8] sm:$0xf]  ;;  %v6538_v54 = vor.u32 %v9438_v46, %v6537_v44 }
  0xc4   : > { %2883 = vmatpush.bf16.msrb.mxu2 %v7638_v42  ;;  %2896 = vmatpush.bf16.msrb.mxu3 %v7766_v45  ;;  %v7459_v17 = vld [vmem:[%s15240_s1 + $0x910] sm:$0xf0]  ;;  %v9699_v20 = vld [vmem:[%s15240_s1 + $0xa04] sm:$0xf]  ;;  %v7334_v33 = vor.u32 %v9635_v13, %v7331_v15  ;;  %v6682_v42 = vor.u32 %v9474_v36, %v6681_v35  ;;  %v6810_v45 = vor.u32 %v9506_v39, %v6809_v38  ;;  %v9470_v51 = vld [vmem:[%s15240_s1 + $0x2d4] sm:$0xf0] }
  0xc5   : > { %2858 = vmatpush.bf16.msrb.mxu0 %v7366_v61  ;;  %2871 = vmatpush.bf16.msrb.mxu1 %v7494_v60  ;;  %v7587_v21 = vld [vmem:[%s15240_s1 + $0xa10] sm:$0xf0]  ;;  %v9731_v22 = vld [vmem:[%s15240_s1 + $0xb04] sm:$0xf]  ;;  %v7462_v37 = vor.u32 %v9667_v16, %v7459_v17  ;;  %v6793_v59 = vld [vmem:[%s15240_s1 + $0x3c8] sm:$0xf]  ;;  %v6666_v2 = vor.u32 %v9470_v51, %v6665_v48 }
  0xc6   : > { %v7715_v24 = vld [vmem:[%s15240_s1 + $0xb10] sm:$0xf0]  ;;  %v11495_v32 = vld [vmem:[%s15242_s3] ss:$2 sm:$0xf]  ;;  %v7590_v62 = vor.u32 %v9699_v20, %v7587_v21 }
  0xc7   : > { %v7718_v40 = vor.u32 %v9731_v22, %v7715_v24  ;;  %v665_v1 = vperm.slane %v11495_v32, 0  ;;  %v9502_v61 = vld [vmem:[%s15240_s1 + $0x3d4] sm:$0xf0]  ;;  %v6521_v5 = vld [vmem:[%s15240_s1 + $0x1a8] sm:$0xf] }
  0xc8   : > { %2884 = vmatpush.bf16.msrb.mxu2 %v7622_v63  ;;  %2897 = vmatpush.bf16.msrb.mxu3 %v7750_v56  ;;  %v6410_v63 = vor.u32 %v9406_v57, %v6409_v43  ;;  %v6393_v56 = vld [vmem:[%s15240_s1 + $0xa8] sm:$0xf]  ;;  %v9402_v3 = vld [vmem:[%s15240_s1 + $0xb4] sm:$0xf0]  ;;  %v6794_v7 = vor.u32 %v9502_v61, %v6793_v59  ;;  %v9879_v47 = vld [vmem:[%s15241_s2 + $0x3a4] sm:$0xf] }
  0xc9   : > { %2859 = vmatpush.bf16.msrb.mxu0 %v7350_v14  ;;  %2872 = vmatpush.bf16.msrb.mxu1 %v7478_v18  ;;  %v9434_v11 = vld [vmem:[%s15240_s1 + $0x1b4] sm:$0xf0]  ;;  %v6649_v13 = vld [vmem:[%s15240_s1 + $0x2a8] sm:$0xf]  ;;  %v6394_v18 = vor.u32 %v9402_v3, %v6393_v56 }
  0xca   : > { %v9466_v14 = vld [vmem:[%s15240_s1 + $0x2b4] sm:$0xf0]  ;;  %v6777_v15 = vld [vmem:[%s15240_s1 + $0x3a8] sm:$0xf]  ;;  %v6522_v21 = vor.u32 %v9434_v11, %v6521_v5 }
  0xcb   : > { %v9498_v16 = vld [vmem:[%s15240_s1 + $0x3b4] sm:$0xf0]  ;;  %v6650_v22 = vor.u32 %v9466_v14, %v6649_v13  ;;  %v6505_v27 = vld [vmem:[%s15240_s1 + $0x188] sm:$0xf] }
  0xcc   : > { %2885 = vmatpush.bf16.msrb.mxu2 %v7606_v19  ;;  %2898 = vmatpush.bf16.msrb.mxu3 %v7734_v23  ;;  %v2602_v58 = vpop.f32.mrf.mxu0  ;;  %v2615_v0 = vpop.f32.mrf.mxu1  ;;  %v6377_v23 = vld [vmem:[%s15240_s1 + $0x88] sm:$0xf]  ;;  %v9398_v24 = vld [vmem:[%s15240_s1 + $0x94] sm:$0xf0]  ;;  %v6778_v28 = vor.u32 %v9498_v16, %v6777_v15 }
  0xcd   : > { %2860 = vmatpush.bf16.msrb.mxu0 %v7334_v33  ;;  %2873 = vmatpush.bf16.msrb.mxu1 %v7462_v37  ;;  %v2603_v60 = vadd.f32 %v2602_v58, %v665_v1  ;;  %v9430_v29 = vld [vmem:[%s15240_s1 + $0x194] sm:$0xf0]  ;;  %v6633_v33 = vld [vmem:[%s15240_s1 + $0x288] sm:$0xf]  ;;  %v6378_v38 = vor.u32 %v9398_v24, %v6377_v23 }
  0xce   : > { %v9462_v34 = vld [vmem:[%s15240_s1 + $0x294] sm:$0xf0]  ;;  %v6761_v37 = vld [vmem:[%s15240_s1 + $0x388] sm:$0xf]  ;;  %v6506_v39 = vor.u32 %v9430_v29, %v6505_v27 }
  0xcf   : > { %v2616_v10 = vadd.f32 %v2615_v0, %v2603_v60  ;;  %v6361_v1 = vld [vmem:[%s15240_s1 + $0x68] sm:$0xf]  ;;  %v9426_v57 = vld [vmem:[%s15240_s1 + $0x174] sm:$0xf0] }
  0xd0   : > { %2886 = vmatpush.bf16.msrb.mxu2 %v7590_v62  ;;  %2899 = vmatpush.bf16.msrb.mxu3 %v7718_v40  ;;  %v9494_v62 = vld [vmem:[%s15240_s1 + $0x394] sm:$0xf0]  ;;  %v6634_v40 = vor.u32 %v9462_v34, %v6633_v33  ;;  %v6617_v44 = vld [vmem:[%s15240_s1 + $0x268] sm:$0xf] }
  0xd1   : > { %2905 = vmatpush.bf16.msra.mxu0 %v6426_v55  ;;  %2918 = vmatpush.bf16.msra.mxu1 %v6554_v41  ;;  %v2628_v17 = vpop.f32.mrf.mxu2  ;;  %v2641_v19 = vpop.f32.mrf.mxu3  ;;  %v9394_v41 = vld [vmem:[%s15240_s1 + $0x74] sm:$0xf0]  ;;  %v6762_v43 = vor.u32 %v9494_v62, %v6761_v37  ;;  %v6745_v46 = vld [vmem:[%s15240_s1 + $0x368] sm:$0xf] }
  0xd2   : > { %2861 = vmatmul.bf16.vlgmr.msrb.gmra.mxu0 %v10923_v4  ;;  %2874 = vmatmul.bf16.vlgmr.msrb.gmra.mxu1 %v10937_v9  ;;  %v2629_v20 = vadd.f32 %v2628_v17, %v2616_v10  ;;  %v9490_v48 = vld [vmem:[%s15240_s1 + $0x374] sm:$0xf0]  ;;  %v6362_v58 = vor.u32 %v9394_v41, %v6361_v1  ;;  %v6601_v3 = vld [vmem:[%s15240_s1 + $0x248] sm:$0xf] }
  0xd3   : > { %2887 = vmatmul.bf16.vlgmr.msrb.gmra.mxu2 %v10933_v8  ;;  %2900 = vmatmul.bf16.vlgmr.msrb.gmra.mxu3 %v10944_v12  ;;  %v6746_v0 = vor.u32 %v9490_v48, %v6745_v46  ;;  %v9422_v56 = vld [vmem:[%s15240_s1 + $0x154] sm:$0xf0]  ;;  %v6585_v23 = vld [vmem:[%s15240_s1 + $0x228] sm:$0xf] }
  0xd4   : > { %2931 = vmatpush.bf16.msra.mxu2 %v6682_v42  ;;  %2944 = vmatpush.bf16.msra.mxu3 %v6810_v45  ;;  %v2642_v35 = vadd.f32 %v2641_v19, %v2629_v20  ;;  %v2604_v36 = vpop.f32.mrf.mxu0  ;;  %v2617_v55 = vpop.f32.mrf.mxu1  ;;  %v6489_v42 = vld [vmem:[%s15240_s1 + $0x168] sm:$0xf]  ;;  %v9458_v45 = vld [vmem:[%s15240_s1 + $0x274] sm:$0xf0] }
  0xd5   : > { %2906 = vmatpush.bf16.msra.mxu0 %v6410_v63  ;;  %2919 = vmatpush.bf16.msra.mxu1 %v6538_v54  ;;  %v6490_v61 = vor.u32 %v9426_v57, %v6489_v42  ;;  %v6618_v60 = vor.u32 %v9458_v45, %v6617_v44  ;;  %v6345_v63 = vld [vmem:[%s15240_s1 + $0x48] sm:$0xf]  ;;  %v9390_v54 = vld [vmem:[%s15240_s1 + $0x54] sm:$0xf0] }
  0xd6   : > { %v9454_v5 = vld [vmem:[%s15240_s1 + $0x254] sm:$0xf0]  ;;  %v6346_v13 = vor.u32 %v9390_v54, %v6345_v63  ;;  %v6457_v20 = vld [vmem:[%s15240_s1 + $0x128] sm:$0xf] }
  0xd7   : > { %v9486_v10 = vld [vmem:[%s15240_s1 + $0x354] sm:$0xf0]  ;;  %v6602_v16 = vor.u32 %v9454_v5, %v6601_v3  ;;  %v6569_v55 = vld [vmem:[%s15240_s1 + $0x208] sm:$0xf] }
  0xd8   : > { %2932 = vmatpush.bf16.msra.mxu2 %v6666_v2  ;;  %2945 = vmatpush.bf16.msra.mxu3 %v6794_v7  ;;  %v6473_v2 = vld [vmem:[%s15240_s1 + $0x148] sm:$0xf]  ;;  %v9386_v19 = vld [vmem:[%s15240_s1 + $0x34] sm:$0xf0] }
  0xd9   : > { %2907 = vmatpush.bf16.msra.mxu0 %v6394_v18  ;;  %2920 = vmatpush.bf16.msra.mxu1 %v6522_v21  ;;  %v2630_v51 = vpop.f32.mrf.mxu2  ;;  %v2643_v59 = vpop.f32.mrf.mxu3  ;;  %v6729_v7 = vld [vmem:[%s15240_s1 + $0x348] sm:$0xf]  ;;  %v6474_v15 = vor.u32 %v9422_v56, %v6473_v2  ;;  %v9450_v24 = vld [vmem:[%s15240_s1 + $0x234] sm:$0xf0] }
  0xda   : > { %v6329_v18 = vld [vmem:[%s15240_s1 + $0x28] sm:$0xf]  ;;  %v6730_v21 = vor.u32 %v9486_v10, %v6729_v7  ;;  %v9482_v29 = vld [vmem:[%s15240_s1 + $0x334] sm:$0xf0] }
  0xdb   : > { %v6330_v34 = vor.u32 %v9386_v19, %v6329_v18  ;;  %v9382_v36 = vld [vmem:[%s15240_s1 + $0x14] sm:$0xf0]  ;;  %v6937_v45 = vld [vmem:[%s15240_s1 + $0x4e8] sm:$0xf] }
  0xdc   : > { %2933 = vmatpush.bf16.msra.mxu2 %v6650_v22  ;;  %2946 = vmatpush.bf16.msra.mxu3 %v6778_v28  ;;  %v2654_v11 = vpop.f32.mrf.mxu0  ;;  %v2667_v17 = vpop.f32.mrf.mxu1  ;;  %v9418_v22 = vld [vmem:[%s15240_s1 + $0x134] sm:$0xf0]  ;;  %v6713_v28 = vld [vmem:[%s15240_s1 + $0x328] sm:$0xf] }
  0xdd   : > { %2908 = vmatpush.bf16.msra.mxu0 %v6378_v38  ;;  %2921 = vmatpush.bf16.msra.mxu1 %v6506_v39  ;;  %v2655_v14 = vadd.f32 %v2654_v11, %v2642_v35  ;;  %v6313_v35 = vld [vmem:[%s15240_s1 + $0x8] sm:$0xf]  ;;  %v6458_v62 = vor.u32 %v9418_v22, %v6457_v20  ;;  %v6586_v38 = vor.u32 %v9450_v24, %v6585_v23  ;;  %v9446_v42 = vld [vmem:[%s15240_s1 + $0x214] sm:$0xf0] }
  0xde   : > { %v6441_v39 = vld [vmem:[%s15240_s1 + $0x108] sm:$0xf]  ;;  %v6714_v1 = vor.u32 %v9482_v29, %v6713_v28  ;;  %v9478_v57 = vld [vmem:[%s15240_s1 + $0x314] sm:$0xf0]  ;;  %v6314_v51 = vor.u32 %v9382_v36, %v6313_v35  ;;  %v6570_v54 = vor.u32 %v9446_v42, %v6569_v55 }
  0xdf   : > { %v2668_v27 = vadd.f32 %v2667_v17, %v2655_v14  ;;  %v9538_v46 = vld [vmem:[%s15240_s1 + $0x4f4] sm:$0xf0]  ;;  %v7065_v48 = vld [vmem:[%s15240_s1 + $0x5e8] sm:$0xf] }
  0xe0   : > { %2934 = vmatpush.bf16.msra.mxu2 %v6634_v40  ;;  %2947 = vmatpush.bf16.msra.mxu3 %v6762_v43  ;;  %v9414_v40 = vld [vmem:[%s15240_s1 + $0x114] sm:$0xf0]  ;;  %v6697_v43 = vld [vmem:[%s15240_s1 + $0x308] sm:$0xf]  ;;  %v6938_v5 = vor.u32 %v9538_v46, %v6937_v45 }
  0xe1   : > { %2909 = vmatpush.bf16.msra.mxu0 %v6362_v58  ;;  %2922 = vmatpush.bf16.msra.mxu1 %v6490_v61  ;;  %v2680_v33 = vpop.f32.mrf.mxu2  ;;  %v2693_v41 = vpop.f32.mrf.mxu3  ;;  %v9570_v58 = vld [vmem:[%s15240_s1 + $0x5f4] sm:$0xf0]  ;;  %v7193_v59 = vld [vmem:[%s15240_s1 + $0x6e8] sm:$0xf]  ;;  %v6442_v63 = vor.u32 %v9414_v40, %v6441_v39  ;;  %v6698_v3 = vor.u32 %v9478_v57, %v6697_v43 }
  0xe2   : > { %v2681_v37 = vadd.f32 %v2680_v33, %v2668_v27  ;;  %v9602_v61 = vld [vmem:[%s15240_s1 + $0x6f4] sm:$0xf0]  ;;  %v7321_v2 = vld [vmem:[%s15240_s1 + $0x7e8] sm:$0xf]  ;;  %v7066_v7 = vor.u32 %v9570_v58, %v7065_v48 }
  0xe3   : > { %v7194_v10 = vor.u32 %v9602_v61, %v7193_v59  ;;  %v6921_v11 = vld [vmem:[%s15240_s1 + $0x4c8] sm:$0xf]  ;;  %v9598_v18 = vld [vmem:[%s15240_s1 + $0x6d4] sm:$0xf0] }
  0xe4   : > { %2935 = vmatpush.bf16.msra.mxu2 %v6618_v60  ;;  %2948 = vmatpush.bf16.msra.mxu3 %v6746_v0  ;;  %v11685_v44 = vadd.f32 %v2693_v41, %v2681_v37  ;;  %v2656_v60 = vpop.f32.mrf.mxu0  ;;  %v9634_v0 = vld [vmem:[%s15240_s1 + $0x7f4] sm:$0xf0]  ;;  %v2669_v56 = vpop.f32.mrf.mxu1  ;;  %v7049_v14 = vld [vmem:[%s15240_s1 + $0x5c8] sm:$0xf] }
  0xe5   : > { %2910 = vmatpush.bf16.msra.mxu0 %v6346_v13  ;;  %2923 = vmatpush.bf16.msra.mxu1 %v6474_v15  ;;  %v9534_v13 = vld [vmem:[%s15240_s1 + $0x4d4] sm:$0xf0]  ;;  %v7322_v15 = vor.u32 %v9634_v0, %v7321_v2  ;;  %v7177_v17 = vld [vmem:[%s15240_s1 + $0x6c8] sm:$0xf] }
  0xe6   : > { %v7305_v20 = vld [vmem:[%s15240_s1 + $0x7c8] sm:$0xf]  ;;  %v6922_v22 = vor.u32 %v9534_v13, %v6921_v11  ;;  %v7178_v27 = vor.u32 %v9598_v18, %v7177_v17  ;;  %v9530_v29 = vld [vmem:[%s15240_s1 + $0x4b4] sm:$0xf0] }
  0xe7   : > { %v6905_v28 = vld [vmem:[%s15240_s1 + $0x4a8] sm:$0xf]  ;;  %v9562_v35 = vld [vmem:[%s15240_s1 + $0x5b4] sm:$0xf0] }
  0xe8   : > { %2936 = vmatpush.bf16.msra.mxu2 %v6602_v16  ;;  %2949 = vmatpush.bf16.msra.mxu3 %v6730_v21  ;;  %v9566_v16 = vld [vmem:[%s15240_s1 + $0x5d4] sm:$0xf0]  ;;  %v7033_v33 = vld [vmem:[%s15240_s1 + $0x5a8] sm:$0xf]  ;;  %v6906_v39 = vor.u32 %v9530_v29, %v6905_v28 }
  0xe9   : > { %2911 = vmatpush.bf16.msra.mxu0 %v6330_v34  ;;  %2924 = vmatpush.bf16.msra.mxu1 %v6458_v62  ;;  %v2682_v19 = vpop.f32.mrf.mxu2  ;;  %v9630_v21 = vld [vmem:[%s15240_s1 + $0x7d4] sm:$0xf0]  ;;  %v2695_v23 = vpop.f32.mrf.mxu3  ;;  %v7050_v24 = vor.u32 %v9566_v16, %v7049_v14  ;;  %v7161_v36 = vld [vmem:[%s15240_s1 + $0x6a8] sm:$0xf]  ;;  %v7034_v40 = vor.u32 %v9562_v35, %v7033_v33 }
  0xea   : > { %v7306_v34 = vor.u32 %v9630_v21, %v7305_v20  ;;  %v9594_v37 = vld [vmem:[%s15240_s1 + $0x6b4] sm:$0xf0]  ;;  %v7289_v62 = vld [vmem:[%s15240_s1 + $0x7a8] sm:$0xf] }
  0xeb   : > { %v7162_v55 = vor.u32 %v9594_v37, %v7161_v36  ;;  %v9526_v41 = vld [vmem:[%s15240_s1 + $0x494] sm:$0xf0]  ;;  %v7017_v42 = vld [vmem:[%s15240_s1 + $0x588] sm:$0xf] }
  0xec   : > { %2937 = vmatpush.bf16.msra.mxu2 %v6586_v38  ;;  %2950 = vmatpush.bf16.msra.mxu3 %v6714_v1  ;;  %v9626_v38 = vld [vmem:[%s15240_s1 + $0x7b4] sm:$0xf0]  ;;  %v6889_v1 = vld [vmem:[%s15240_s1 + $0x488] sm:$0xf] }
  0xed   : > { %2912 = vmatpush.bf16.msra.mxu0 %v6314_v51  ;;  %2925 = vmatpush.bf16.msra.mxu1 %v6442_v63  ;;  %v7290_v43 = vor.u32 %v9626_v38, %v7289_v62  ;;  %v9558_v57 = vld [vmem:[%s15240_s1 + $0x594] sm:$0xf0]  ;;  %v7145_v45 = vld [vmem:[%s15240_s1 + $0x688] sm:$0xf]  ;;  %v6890_v61 = vor.u32 %v9526_v41, %v6889_v1 }
  0xee   : > { %v9590_v46 = vld [vmem:[%s15240_s1 + $0x694] sm:$0xf0]  ;;  %v7273_v51 = vld [vmem:[%s15240_s1 + $0x788] sm:$0xf]  ;;  %v7018_v63 = vor.u32 %v9558_v57, %v7017_v42 }
  0xef   : > { %v2706_v48 = vpop.f32.mrf.mxu0  ;;  %v9622_v58 = vld [vmem:[%s15240_s1 + $0x794] sm:$0xf0]  ;;  %v2719_v60 = vpop.f32.mrf.mxu1  ;;  %v6873_v2 = vld [vmem:[%s15240_s1 + $0x468] sm:$0xf] }
  0xf0   : > { %2938 = vmatpush.bf16.msra.mxu2 %v6570_v54  ;;  %2951 = vmatpush.bf16.msra.mxu3 %v6698_v3  ;;  %v2707_v59 = vadd.f32 %v2706_v48, %v11685_v44  ;;  %v7146_v54 = vor.u32 %v9590_v46, %v7145_v45  ;;  %v9522_v0 = vld [vmem:[%s15240_s1 + $0x474] sm:$0xf0]  ;;  %v7001_v56 = vld [vmem:[%s15240_s1 + $0x568] sm:$0xf]  ;;  %v7274_v44 = vor.u32 %v9622_v58, %v7273_v51 }
  0xf1   : > { %2957 = vmatpush.bf16.msrb.mxu0 %v6938_v5  ;;  %2970 = vmatpush.bf16.msrb.mxu1 %v7066_v7  ;;  %v9554_v5 = vld [vmem:[%s15240_s1 + $0x574] sm:$0xf0]  ;;  %v7129_v7 = vld [vmem:[%s15240_s1 + $0x668] sm:$0xf]  ;;  %v6874_v14 = vor.u32 %v9522_v0, %v6873_v2 }
  0xf2   : > { %2913 = vmatmul.bf16.vlgmr.msra.gmra.mxu0 %v10655_v30  ;;  %2926 = vmatmul.bf16.vlgmr.msra.gmra.mxu1 %v10660_v31  ;;  %v2720_v3 = vadd.f32 %v2719_v60, %v2707_v59  ;;  %v7257_v11 = vld [vmem:[%s15240_s1 + $0x768] sm:$0xf]  ;;  %v9618_v13 = vld [vmem:[%s15240_s1 + $0x774] sm:$0xf0] }
  0xf3   : > { %2939 = vmatmul.bf16.vlgmr.msra.gmra.mxu2 %v10640_v25  ;;  %2952 = vmatmul.bf16.vlgmr.msra.gmra.mxu3 %v10644_v26  ;;  %v6857_v17 = vld [vmem:[%s15240_s1 + $0x448] sm:$0xf]  ;;  %v9518_v18 = vld [vmem:[%s15240_s1 + $0x454] sm:$0xf0]  ;;  %v7258_v20 = vor.u32 %v9618_v13, %v7257_v11 }
  0xf4   : > { %2983 = vmatpush.bf16.msrb.mxu2 %v7194_v10  ;;  %2996 = vmatpush.bf16.msrb.mxu3 %v7322_v15  ;;  %v9586_v10 = vld [vmem:[%s15240_s1 + $0x674] sm:$0xf0]  ;;  %v7002_v15 = vor.u32 %v9554_v5, %v7001_v56  ;;  %v6985_v19 = vld [vmem:[%s15240_s1 + $0x548] sm:$0xf]  ;;  %v6858_v35 = vor.u32 %v9518_v18, %v6857_v17 }
  0xf5   : > { %2958 = vmatpush.bf16.msrb.mxu0 %v6922_v22  ;;  %2971 = vmatpush.bf16.msrb.mxu1 %v7050_v24  ;;  %v7130_v16 = vor.u32 %v9586_v10, %v7129_v7  ;;  %v9550_v22 = vld [vmem:[%s15240_s1 + $0x554] sm:$0xf0]  ;;  %v7113_v23 = vld [vmem:[%s15240_s1 + $0x648] sm:$0xf] }
  0xf6   : > { %v2732_v21 = vpop.f32.mrf.mxu2  ;;  %v9582_v24 = vld [vmem:[%s15240_s1 + $0x654] sm:$0xf0]  ;;  %v2745_v28 = vpop.f32.mrf.mxu3  ;;  %v7241_v29 = vld [vmem:[%s15240_s1 + $0x748] sm:$0xf]  ;;  %v6986_v62 = vor.u32 %v9550_v22, %v6985_v19 }
  0xf7   : > { %v9614_v33 = vld [vmem:[%s15240_s1 + $0x754] sm:$0xf0]  ;;  %v2721_v36 = vpop.f32.mrf.mxu1  ;;  %v7114_v38 = vor.u32 %v9582_v24, %v7113_v23  ;;  %v7097_v42 = vld [vmem:[%s15240_s1 + $0x628] sm:$0xf] }
  0xf8   : > { %2984 = vmatpush.bf16.msrb.mxu2 %v7178_v27  ;;  %2997 = vmatpush.bf16.msrb.mxu3 %v7306_v34  ;;  %v2733_v27 = vadd.f32 %v2732_v21, %v2720_v3  ;;  %v2708_v34 = vpop.f32.mrf.mxu0  ;;  %v7242_v1 = vor.u32 %v9614_v33, %v7241_v29  ;;  %v9546_v41 = vld [vmem:[%s15240_s1 + $0x534] sm:$0xf0]  ;;  %v7225_v57 = vld [vmem:[%s15240_s1 + $0x728] sm:$0xf] }
  0xf9   : > { %2959 = vmatpush.bf16.msrb.mxu0 %v6906_v39  ;;  %2972 = vmatpush.bf16.msrb.mxu1 %v7034_v40  ;;  %v6841_v39 = vld [vmem:[%s15240_s1 + $0x428] sm:$0xf]  ;;  %v9514_v40 = vld [vmem:[%s15240_s1 + $0x434] sm:$0xf0] }
  0xfa   : > { %v11836_v37 = vadd.f32 %v2745_v28, %v2733_v27  ;;  %v9610_v45 = vld [vmem:[%s15240_s1 + $0x734] sm:$0xf0]  ;;  %v6842_v46 = vor.u32 %v9514_v40, %v6841_v39  ;;  %v6825_v48 = vld [vmem:[%s15240_s1 + $0x408] sm:$0xf] }
  0xfb   : > { %v9510_v51 = vld [vmem:[%s15240_s1 + $0x414] sm:$0xf0]  ;;  %v7209_v0 = vld [vmem:[%s15240_s1 + $0x708] sm:$0xf] }
  0xfc   : > { %2985 = vmatpush.bf16.msrb.mxu2 %v7162_v55  ;;  %2998 = vmatpush.bf16.msrb.mxu3 %v7290_v43  ;;  %v6969_v55 = vld [vmem:[%s15240_s1 + $0x528] sm:$0xf]  ;;  %v9578_v43 = vld [vmem:[%s15240_s1 + $0x634] sm:$0xf0]  ;;  %v6826_v11 = vor.u32 %v9510_v51, %v6825_v48 }
  0xfd   : > { %2960 = vmatpush.bf16.msrb.mxu0 %v6890_v61  ;;  %2973 = vmatpush.bf16.msrb.mxu1 %v7018_v63  ;;  %v6970_v58 = vor.u32 %v9546_v41, %v6969_v55  ;;  %v7098_v59 = vor.u32 %v9578_v43, %v7097_v42  ;;  %v6953_v61 = vld [vmem:[%s15240_s1 + $0x508] sm:$0xf]  ;;  %v9542_v60 = vld [vmem:[%s15240_s1 + $0x514] sm:$0xf0] }
  0xfe   : > { %v7081_v63 = vld [vmem:[%s15240_s1 + $0x608] sm:$0xf]  ;;  %v9574_v2 = vld [vmem:[%s15240_s1 + $0x614] sm:$0xf0]  ;;  %v2747_v10 = vpop.f32.mrf.mxu3 }
  0xff   : > { %v9606_v56 = vld [vmem:[%s15240_s1 + $0x714] sm:$0xf0]  ;;  %v7449_v3 = vld [vmem:[%s15240_s1 + $0x8e8] sm:$0xf]  ;;  %v7082_v17 = vor.u32 %v9574_v2, %v7081_v63 }
 0x100   : > { %2986 = vmatpush.bf16.msrb.mxu2 %v7146_v54  ;;  %2999 = vmatpush.bf16.msrb.mxu3 %v7274_v44  ;;  %v7226_v54 = vor.u32 %v9610_v45, %v7225_v57  ;;  %v2734_v44 = vpop.f32.mrf.mxu2  ;;  %v9666_v5 = vld [vmem:[%s15240_s1 + $0x8f4] sm:$0xf0]  ;;  %v7577_v7 = vld [vmem:[%s15240_s1 + $0x9e8] sm:$0xf] }
 0x101   : > { %2961 = vmatpush.bf16.msrb.mxu0 %v6874_v14  ;;  %2974 = vmatpush.bf16.msrb.mxu1 %v7002_v15  ;;  %v9698_v13 = vld [vmem:[%s15240_s1 + $0x9f4] sm:$0xf0]  ;;  %v7705_v14 = vld [vmem:[%s15240_s1 + $0xae8] sm:$0xf]  ;;  %v7450_v21 = vor.u32 %v9666_v5, %v7449_v3 }
 0x102   : > { %v9730_v15 = vld [vmem:[%s15240_s1 + $0xaf4] sm:$0xf0]  ;;  %v7833_v18 = vld [vmem:[%s15240_s1 + $0xbe8] sm:$0xf]  ;;  %v7578_v22 = vor.u32 %v9698_v13, %v7577_v7 }
 0x103   : > { %v9762_v19 = vld [vmem:[%s15240_s1 + $0xbf4] sm:$0xf0]  ;;  %v7706_v23 = vor.u32 %v9730_v15, %v7705_v14  ;;  %v7433_v24 = vld [vmem:[%s15240_s1 + $0x8c8] sm:$0xf] }
 0x104   : > { %2987 = vmatpush.bf16.msrb.mxu2 %v7130_v16  ;;  %3000 = vmatpush.bf16.msrb.mxu3 %v7258_v20  ;;  %v6954_v16 = vor.u32 %v9542_v60, %v6953_v61  ;;  %v7210_v20 = vor.u32 %v9606_v56, %v7209_v0  ;;  %v9662_v27 = vld [vmem:[%s15240_s1 + $0x8d4] sm:$0xf0]  ;;  %v7561_v28 = vld [vmem:[%s15240_s1 + $0x9c8] sm:$0xf]  ;;  %v7834_v29 = vor.u32 %v9762_v19, %v7833_v18 }
 0x105   : > { %2962 = vmatpush.bf16.msrb.mxu0 %v6858_v35  ;;  %2975 = vmatpush.bf16.msrb.mxu1 %v6986_v62  ;;  %v9694_v33 = vld [vmem:[%s15240_s1 + $0x9d4] sm:$0xf0]  ;;  %v7689_v34 = vld [vmem:[%s15240_s1 + $0xac8] sm:$0xf] }
 0x106   : > { %v9726_v35 = vld [vmem:[%s15240_s1 + $0xad4] sm:$0xf0]  ;;  %v7817_v36 = vld [vmem:[%s15240_s1 + $0xbc8] sm:$0xf]  ;;  %v7562_v39 = vor.u32 %v9694_v33, %v7561_v28 }
 0x107   : > { %v9758_v62 = vld [vmem:[%s15240_s1 + $0xbd4] sm:$0xf0]  ;;  %v7690_v40 = vor.u32 %v9726_v35, %v7689_v34  ;;  %v7417_v55 = vld [vmem:[%s15240_s1 + $0x8a8] sm:$0xf] }
 0x108   : > { %2988 = vmatpush.bf16.msrb.mxu2 %v7114_v38  ;;  %3001 = vmatpush.bf16.msrb.mxu3 %v7242_v1  ;;  %v7434_v38 = vor.u32 %v9662_v27, %v7433_v24  ;;  %v9658_v1 = vld [vmem:[%s15240_s1 + $0x8b4] sm:$0xf0]  ;;  %v7545_v41 = vld [vmem:[%s15240_s1 + $0x9a8] sm:$0xf]  ;;  %v7818_v42 = vor.u32 %v9758_v62, %v7817_v36 }
 0x109   : > { %2963 = vmatpush.bf16.msrb.mxu0 %v6842_v46  ;;  %2976 = vmatpush.bf16.msrb.mxu1 %v6970_v58  ;;  %v9690_v43 = vld [vmem:[%s15240_s1 + $0x9b4] sm:$0xf0]  ;;  %v7673_v57 = vld [vmem:[%s15240_s1 + $0xaa8] sm:$0xf]  ;;  %v7418_v51 = vor.u32 %v9658_v1, %v7417_v55 }
 0x10a   : > { %v9722_v45 = vld [vmem:[%s15240_s1 + $0xab4] sm:$0xf0]  ;;  %v7801_v46 = vld [vmem:[%s15240_s1 + $0xba8] sm:$0xf] }
 0x10b   : > { %v9754_v48 = vld [vmem:[%s15240_s1 + $0xbb4] sm:$0xf0]  ;;  %v7401_v58 = vld [vmem:[%s15240_s1 + $0x888] sm:$0xf]  ;;  %v7674_v61 = vor.u32 %v9722_v45, %v7673_v57 }
 0x10c   : > { %2989 = vmatpush.bf16.msrb.mxu2 %v7098_v59  ;;  %3002 = vmatpush.bf16.msrb.mxu3 %v7226_v54  ;;  %v7546_v59 = vor.u32 %v9690_v43, %v7545_v41  ;;  %v9654_v60 = vld [vmem:[%s15240_s1 + $0x894] sm:$0xf0]  ;;  %v7529_v63 = vld [vmem:[%s15240_s1 + $0x988] sm:$0xf]  ;;  %v666_v54 = vperm.slane %v11495_v32, 1  ;;  %v7802_v2 = vor.u32 %v9754_v48, %v7801_v46 }
 0x10d   : > { %2964 = vmatpush.bf16.msrb.mxu0 %v6826_v11  ;;  %2977 = vmatpush.bf16.msrb.mxu1 %v6954_v16  ;;  %v9686_v0 = vld [vmem:[%s15240_s1 + $0x994] sm:$0xf0]  ;;  %v7657_v56 = vld [vmem:[%s15240_s1 + $0xa88] sm:$0xf]  ;;  %v7402_v5 = vor.u32 %v9654_v60, %v7401_v58 }
 0x10e   : > { %v9718_v44 = vld [vmem:[%s15240_s1 + $0xa94] sm:$0xf0]  ;;  %v7785_v3 = vld [vmem:[%s15240_s1 + $0xb88] sm:$0xf]  ;;  %v7530_v10 = vor.u32 %v9686_v0, %v7529_v63 }
 0x10f   : > { %v9750_v32 = vld [vmem:[%s15240_s1 + $0xb94] sm:$0xf0]  ;;  %v2758_v7 = vpop.f32.mrf.mxu0  ;;  %v7658_v11 = vor.u32 %v9718_v44, %v7657_v56  ;;  %v7385_v13 = vld [vmem:[%s15240_s1 + $0x868] sm:$0xf] }
 0x110   : > { %2990 = vmatpush.bf16.msrb.mxu2 %v7082_v17  ;;  %3003 = vmatpush.bf16.msrb.mxu3 %v7210_v20  ;;  %v9650_v14 = vld [vmem:[%s15240_s1 + $0x874] sm:$0xf0]  ;;  %v7513_v15 = vld [vmem:[%s15240_s1 + $0x968] sm:$0xf]  ;;  %v2759_v16 = vadd.f32 %v2758_v7, %v666_v54  ;;  %v2771_v17 = vpop.f32.mrf.mxu1  ;;  %v7786_v18 = vor.u32 %v9750_v32, %v7785_v3 }
 0x111   : > { %3009 = vmatpush.bf16.msra.mxu0 %v7450_v21  ;;  %3022 = vmatpush.bf16.msra.mxu1 %v7578_v22  ;;  %v9682_v19 = vld [vmem:[%s15240_s1 + $0x974] sm:$0xf0]  ;;  %v7641_v20 = vld [vmem:[%s15240_s1 + $0xa68] sm:$0xf]  ;;  %v7386_v27 = vor.u32 %v9650_v14, %v7385_v13 }
 0x112   : > { %2965 = vmatmul.bf16.vlgmr.msrb.gmra.mxu0 %v10559_v52  ;;  %2978 = vmatmul.bf16.vlgmr.msrb.gmra.mxu1 %v10561_v53  ;;  %v9714_v21 = vld [vmem:[%s15240_s1 + $0xa74] sm:$0xf0]  ;;  %v7769_v22 = vld [vmem:[%s15240_s1 + $0xb68] sm:$0xf]  ;;  %v2772_v24 = vadd.f32 %v2771_v17, %v2759_v16  ;;  %v7514_v28 = vor.u32 %v9682_v19, %v7513_v15 }
 0x113   : > { %2991 = vmatmul.bf16.vlgmr.msrb.gmra.mxu2 %v10555_v49  ;;  %3004 = vmatmul.bf16.vlgmr.msrb.gmra.mxu3 %v10557_v50  ;;  %v7369_v33 = vld [vmem:[%s15240_s1 + $0x848] sm:$0xf]  ;;  %v9646_v34 = vld [vmem:[%s15240_s1 + $0x854] sm:$0xf0] }
 0x114   : > { %3035 = vmatpush.bf16.msra.mxu2 %v7706_v23  ;;  %3048 = vmatpush.bf16.msra.mxu3 %v7834_v29  ;;  %v9746_v23 = vld [vmem:[%s15240_s1 + $0xb74] sm:$0xf0]  ;;  %v7642_v29 = vor.u32 %v9714_v21, %v7641_v20  ;;  %v7497_v35 = vld [vmem:[%s15240_s1 + $0x948] sm:$0xf]  ;;  %v7370_v43 = vor.u32 %v9646_v34, %v7369_v33  ;;  %v9408_v20 = vld [vmem:[%s15240_s1 + $0xec] sm:$0xf] }
 0x115   : > { %3010 = vmatpush.bf16.msra.mxu0 %v7434_v38  ;;  %3023 = vmatpush.bf16.msra.mxu1 %v7562_v39  ;;  %v7770_v62 = vor.u32 %v9746_v23, %v7769_v22  ;;  %v9678_v38 = vld [vmem:[%s15240_s1 + $0x954] sm:$0xf0]  ;;  %v7625_v39 = vld [vmem:[%s15240_s1 + $0xa48] sm:$0xf]  ;;  %v6427_v21 = vld [vmem:[%s15240_s1 + $0xf8] sm:$0xf0] }
 0x116   : > { %v2784_v36 = vpop.f32.mrf.mxu2  ;;  %v2797_v1 = vpop.f32.mrf.mxu3  ;;  %v7753_v41 = vld [vmem:[%s15240_s1 + $0xb48] sm:$0xf]  ;;  %v7498_v46 = vor.u32 %v9678_v38, %v7497_v35  ;;  %v9642_v58 = vld [vmem:[%s15240_s1 + $0x834] sm:$0xf0]  ;;  %v9440_v22 = vld [vmem:[%s15240_s1 + $0x1ec] sm:$0xf] }
 0x117   : > { %v2785_v55 = vadd.f32 %v2784_v36, %v2772_v24  ;;  %v2760_v45 = vpop.f32.mrf.mxu0  ;;  %v9674_v63 = vld [vmem:[%s15240_s1 + $0x934] sm:$0xf0]  ;;  %v7609_v54 = vld [vmem:[%s15240_s1 + $0xa28] sm:$0xf]  ;;  %v6555_v24 = vld [vmem:[%s15240_s1 + $0x1f8] sm:$0xf0] }
 0x118   : > { %3036 = vmatpush.bf16.msra.mxu2 %v7690_v40  ;;  %3049 = vmatpush.bf16.msra.mxu3 %v7818_v42  ;;  %v9710_v40 = vld [vmem:[%s15240_s1 + $0xa54] sm:$0xf0]  ;;  %v7737_v0 = vld [vmem:[%s15240_s1 + $0xb28] sm:$0xf]  ;;  %v9504_v34 = vld [vmem:[%s15240_s1 + $0x3ec] sm:$0xf]  ;;  %v6558_v38 = vor.u32 %v9440_v22, %v6555_v24 }
 0x119   : > { %3011 = vmatpush.bf16.msra.mxu0 %v7418_v51  ;;  %3024 = vmatpush.bf16.msra.mxu1 %v7546_v59  ;;  %v9742_v42 = vld [vmem:[%s15240_s1 + $0xb54] sm:$0xf0]  ;;  %v12035_v57 = vadd.f32 %v2797_v1, %v2785_v55  ;;  %v7626_v48 = vor.u32 %v9710_v40, %v7625_v39  ;;  %v7353_v51 = vld [vmem:[%s15240_s1 + $0x828] sm:$0xf]  ;;  %v6811_v35 = vld [vmem:[%s15240_s1 + $0x3f8] sm:$0xf0] }
 0x11a   : > { %v7481_v59 = vld [vmem:[%s15240_s1 + $0x928] sm:$0xf]  ;;  %v7754_v60 = vor.u32 %v9742_v42, %v7753_v41  ;;  %v9738_v56 = vld [vmem:[%s15240_s1 + $0xb34] sm:$0xf0]  ;;  %v7354_v44 = vor.u32 %v9642_v58, %v7353_v51  ;;  %v9404_v40 = vld [vmem:[%s15240_s1 + $0xcc] sm:$0xf]  ;;  %v6814_v41 = vor.u32 %v9504_v34, %v6811_v35 }
 0x11b   : > { %v7337_v3 = vld [vmem:[%s15240_s1 + $0x808] sm:$0xf]  ;;  %v9638_v32 = vld [vmem:[%s15240_s1 + $0x814] sm:$0xf0]  ;;  %v7738_v15 = vor.u32 %v9738_v56, %v7737_v0  ;;  %v6411_v55 = vld [vmem:[%s15240_s1 + $0xd8] sm:$0xf0] }
 0x11c   : > { %3037 = vmatpush.bf16.msra.mxu2 %v7674_v61  ;;  %3050 = vmatpush.bf16.msra.mxu3 %v7802_v2  ;;  %v2773_v61 = vpop.f32.mrf.mxu1  ;;  %v9706_v2 = vld [vmem:[%s15240_s1 + $0xa34] sm:$0xf0]  ;;  %v7593_v13 = vld [vmem:[%s15240_s1 + $0xa08] sm:$0xf]  ;;  %v7338_v23 = vor.u32 %v9638_v32, %v7337_v3  ;;  %v9436_v1 = vld [vmem:[%s15240_s1 + $0x1cc] sm:$0xf]  ;;  %v6414_v51 = vor.u32 %v9404_v40, %v6411_v55 }
 0x11d   : > { %3012 = vmatpush.bf16.msra.mxu0 %v7402_v5  ;;  %3025 = vmatpush.bf16.msra.mxu1 %v7530_v10  ;;  %v7482_v5 = vor.u32 %v9674_v63, %v7481_v59  ;;  %v7610_v7 = vor.u32 %v9706_v2, %v7609_v54  ;;  %v7465_v10 = vld [vmem:[%s15240_s1 + $0x908] sm:$0xf]  ;;  %v9702_v16 = vld [vmem:[%s15240_s1 + $0xa14] sm:$0xf0]  ;;  %v6539_v42 = vld [vmem:[%s15240_s1 + $0x1d8] sm:$0xf0] }
 0x11e   : > { %v2786_v14 = vpop.f32.mrf.mxu2  ;;  %v7721_v17 = vld [vmem:[%s15240_s1 + $0xb08] sm:$0xf]  ;;  %v2799_v19 = vpop.f32.mrf.mxu3  ;;  %v7594_v33 = vor.u32 %v9702_v16, %v7593_v13  ;;  %v6667_v45 = vld [vmem:[%s15240_s1 + $0x2d8] sm:$0xf0]  ;;  %v6542_v58 = vor.u32 %v9436_v1, %v6539_v42  ;;  %v9400_v61 = vld [vmem:[%s15240_s1 + $0xac] sm:$0xf] }
 0x11f   : > { %v9432_v63 = vld [vmem:[%s15240_s1 + $0x1ac] sm:$0xf]  ;;  %v6523_v2 = vld [vmem:[%s15240_s1 + $0x1b8] sm:$0xf0] }
 0x120   : > { %3038 = vmatpush.bf16.msra.mxu2 %v7658_v11  ;;  %3051 = vmatpush.bf16.msra.mxu3 %v7786_v18  ;;  %v9670_v11 = vld [vmem:[%s15240_s1 + $0x914] sm:$0xf0]  ;;  %v9464_v0 = vld [vmem:[%s15240_s1 + $0x2ac] sm:$0xf]  ;;  %v6651_v56 = vld [vmem:[%s15240_s1 + $0x2b8] sm:$0xf0] }
 0x121   : > { %3013 = vmatpush.bf16.msra.mxu0 %v7386_v27  ;;  %3026 = vmatpush.bf16.msra.mxu1 %v7514_v28  ;;  %v9734_v18 = vld [vmem:[%s15240_s1 + $0xb14] sm:$0xf0]  ;;  %v9472_v27 = vld [vmem:[%s15240_s1 + $0x2ec] sm:$0xf]  ;;  %v6683_v28 = vld [vmem:[%s15240_s1 + $0x2f8] sm:$0xf0] }
 0x122   : > { %v7722_v36 = vor.u32 %v9734_v18, %v7721_v17  ;;  %v6686_v39 = vor.u32 %v9472_v27, %v6683_v28  ;;  %v6779_v3 = vld [vmem:[%s15240_s1 + $0x3b8] sm:$0xf0]  ;;  %v9428_v13 = vld [vmem:[%s15240_s1 + $0x18c] sm:$0xf] }
 0x123   : > { %v9460_v16 = vld [vmem:[%s15240_s1 + $0x28c] sm:$0xf]  ;;  %v6635_v17 = vld [vmem:[%s15240_s1 + $0x298] sm:$0xf0] }
 0x124   : > { %3039 = vmatpush.bf16.msra.mxu2 %v7642_v29  ;;  %3052 = vmatpush.bf16.msra.mxu3 %v7770_v62  ;;  %v7466_v29 = vor.u32 %v9670_v11, %v7465_v10  ;;  %v6430_v62 = vor.u32 %v9408_v20, %v6427_v21  ;;  %v9396_v10 = vld [vmem:[%s15240_s1 + $0x8c] sm:$0xf]  ;;  %v6379_v11 = vld [vmem:[%s15240_s1 + $0x98] sm:$0xf0] }
 0x125   : > { %3014 = vmatpush.bf16.msra.mxu0 %v7370_v43  ;;  %3027 = vmatpush.bf16.msra.mxu1 %v7498_v46  ;;  %v9468_v43 = vld [vmem:[%s15240_s1 + $0x2cc] sm:$0xf]  ;;  %v6763_v19 = vld [vmem:[%s15240_s1 + $0x398] sm:$0xf0]  ;;  %v6382_v20 = vor.u32 %v9396_v10, %v6379_v11 }
 0x126   : > { %v9500_v46 = vld [vmem:[%s15240_s1 + $0x3cc] sm:$0xf]  ;;  %v6670_v59 = vor.u32 %v9468_v43, %v6667_v45  ;;  %v6363_v27 = vld [vmem:[%s15240_s1 + $0x78] sm:$0xf0] }
 0x127   : > { %v9492_v18 = vld [vmem:[%s15240_s1 + $0x38c] sm:$0xf]  ;;  %v6491_v35 = vld [vmem:[%s15240_s1 + $0x178] sm:$0xf0] }
 0x128   : > { %3040 = vmatpush.bf16.msra.mxu2 %v7626_v48  ;;  %3053 = vmatpush.bf16.msra.mxu3 %v7754_v60  ;;  %v6795_v48 = vld [vmem:[%s15240_s1 + $0x3d8] sm:$0xf0]  ;;  %v9392_v24 = vld [vmem:[%s15240_s1 + $0x6c] sm:$0xf]  ;;  %v6766_v34 = vor.u32 %v9492_v18, %v6763_v19 }
 0x129   : > { %3015 = vmatpush.bf16.msra.mxu0 %v7354_v44  ;;  %3028 = vmatpush.bf16.msra.mxu1 %v7482_v5  ;;  %v6395_v60 = vld [vmem:[%s15240_s1 + $0xb8] sm:$0xf0]  ;;  %v6798_v54 = vor.u32 %v9500_v46, %v6795_v48  ;;  %v9496_v44 = vld [vmem:[%s15240_s1 + $0x3ac] sm:$0xf]  ;;  %v6526_v5 = vor.u32 %v9432_v63, %v6523_v2  ;;  %v6366_v40 = vor.u32 %v9392_v24, %v6363_v27 }
 0x12a   : > { %v6398_v32 = vor.u32 %v9400_v61, %v6395_v60  ;;  %v6782_v14 = vor.u32 %v9496_v44, %v6779_v3  ;;  %v9424_v28 = vld [vmem:[%s15240_s1 + $0x16c] sm:$0xf]  ;;  %v6347_v42 = vld [vmem:[%s15240_s1 + $0x58] sm:$0xf0] }
 0x12b   : > { %v6494_v55 = vor.u32 %v9424_v28, %v6491_v35  ;;  %v9420_v43 = vld [vmem:[%s15240_s1 + $0x14c] sm:$0xf]  ;;  %v6475_v48 = vld [vmem:[%s15240_s1 + $0x158] sm:$0xf0] }
 0x12c   : > { %3041 = vmatpush.bf16.msra.mxu2 %v7610_v7  ;;  %3054 = vmatpush.bf16.msra.mxu3 %v7738_v15  ;;  %v6654_v7 = vor.u32 %v9464_v0, %v6651_v56  ;;  %v6507_v15 = vld [vmem:[%s15240_s1 + $0x198] sm:$0xf0]  ;;  %v9484_v60 = vld [vmem:[%s15240_s1 + $0x34c] sm:$0xf]  ;;  %v6478_v56 = vor.u32 %v9420_v43, %v6475_v48 }
 0x12d   : > { %3016 = vmatpush.bf16.msra.mxu0 %v7338_v23  ;;  %3029 = vmatpush.bf16.msra.mxu1 %v7466_v29  ;;  %v6510_v22 = vor.u32 %v9428_v13, %v6507_v15  ;;  %v6638_v23 = vor.u32 %v9460_v16, %v6635_v17  ;;  %v6731_v63 = vld [vmem:[%s15240_s1 + $0x358] sm:$0xf0]  ;;  %v9384_v3 = vld [vmem:[%s15240_s1 + $0x2c] sm:$0xf] }
 0x12e   : > { %v6734_v10 = vor.u32 %v9484_v60, %v6731_v63  ;;  %v6459_v11 = vld [vmem:[%s15240_s1 + $0x138] sm:$0xf0]  ;;  %v9448_v13 = vld [vmem:[%s15240_s1 + $0x22c] sm:$0xf] }
 0x12f   : > { %v2810_v21 = vpop.f32.mrf.mxu0  ;;  %v9480_v15 = vld [vmem:[%s15240_s1 + $0x32c] sm:$0xf]  ;;  %v6715_v16 = vld [vmem:[%s15240_s1 + $0x338] sm:$0xf0] }
 0x130   : > { %3042 = vmatpush.bf16.msra.mxu2 %v7594_v33  ;;  %3055 = vmatpush.bf16.msra.mxu3 %v7722_v36  ;;  %v2811_v29 = vadd.f32 %v2810_v21, %v12035_v57  ;;  %v2823_v33 = vpop.f32.mrf.mxu1  ;;  %v9456_v36 = vld [vmem:[%s15240_s1 + $0x26c] sm:$0xf]  ;;  %v6747_v57 = vld [vmem:[%s15240_s1 + $0x378] sm:$0xf0]  ;;  %v6718_v28 = vor.u32 %v9480_v15, %v6715_v16 }
 0x131   : > { %3061 = vmatpush.bf16.msrb.mxu0 %v6430_v62  ;;  %3074 = vmatpush.bf16.msrb.mxu1 %v6558_v38  ;;  %v6619_v62 = vld [vmem:[%s15240_s1 + $0x278] sm:$0xf0]  ;;  %v9488_v38 = vld [vmem:[%s15240_s1 + $0x36c] sm:$0xf] }
 0x132   : > { %3017 = vmatmul.bf16.vlgmr.msra.gmra.mxu0 %v10923_v4  ;;  %3030 = vmatmul.bf16.vlgmr.msra.gmra.mxu1 %v10937_v9  ;;  %v6622_v1 = vor.u32 %v9456_v36, %v6619_v62  ;;  %v6750_v46 = vor.u32 %v9488_v38, %v6747_v57  ;;  %v9380_v18 = vld [vmem:[%s15240_s1 + $0xc] sm:$0xf]  ;;  %v6315_v19 = vld [vmem:[%s15240_s1 + $0x18] sm:$0xf0] }
 0x133   : > { %3043 = vmatmul.bf16.vlgmr.msra.gmra.mxu2 %v10933_v8  ;;  %3056 = vmatmul.bf16.vlgmr.msra.gmra.mxu3 %v10944_v12  ;;  %v9444_v24 = vld [vmem:[%s15240_s1 + $0x20c] sm:$0xf]  ;;  %v6939_v62 = vld [vmem:[%s15240_s1 + $0x4f8] sm:$0xf0]  ;;  %v6318_v57 = vor.u32 %v9380_v18, %v6315_v19 }
 0x134   : > { %3087 = vmatpush.bf16.msrb.mxu2 %v6686_v39  ;;  %3100 = vmatpush.bf16.msrb.mxu3 %v6814_v41  ;;  %v2824_v39 = vadd.f32 %v2823_v33, %v2811_v29  ;;  %v9388_v41 = vld [vmem:[%s15240_s1 + $0x4c] sm:$0xf]  ;;  %v6571_v29 = vld [vmem:[%s15240_s1 + $0x218] sm:$0xf0] }
 0x135   : > { %3062 = vmatpush.bf16.msrb.mxu0 %v6414_v51  ;;  %3075 = vmatpush.bf16.msrb.mxu1 %v6542_v58  ;;  %v9452_v51 = vld [vmem:[%s15240_s1 + $0x24c] sm:$0xf]  ;;  %v6603_v58 = vld [vmem:[%s15240_s1 + $0x258] sm:$0xf0] }
 0x136   : > { %v2836_v45 = vpop.f32.mrf.mxu2  ;;  %v2849_v61 = vpop.f32.mrf.mxu3  ;;  %v6606_v44 = vor.u32 %v9452_v51, %v6603_v58  ;;  %v9476_v33 = vld [vmem:[%s15240_s1 + $0x30c] sm:$0xf]  ;;  %v7323_v43 = vld [vmem:[%s15240_s1 + $0x7f8] sm:$0xf0] }
 0x137   : > { %v2812_v0 = vpop.f32.mrf.mxu0  ;;  %v9536_v36 = vld [vmem:[%s15240_s1 + $0x4ec] sm:$0xf]  ;;  %v7051_v63 = vld [vmem:[%s15240_s1 + $0x5d8] sm:$0xf0] }
 0x138   : > { %3088 = vmatpush.bf16.msrb.mxu2 %v6670_v59  ;;  %3101 = vmatpush.bf16.msrb.mxu3 %v6798_v54  ;;  %v2837_v59 = vadd.f32 %v2836_v45, %v2824_v39  ;;  %v6350_v54 = vor.u32 %v9388_v41, %v6347_v42  ;;  %v9568_v38 = vld [vmem:[%s15240_s1 + $0x5ec] sm:$0xf]  ;;  %v7067_v39 = vld [vmem:[%s15240_s1 + $0x5f8] sm:$0xf0]  ;;  %v6574_v41 = vor.u32 %v9444_v24, %v6571_v29 }
 0x139   : > { %3063 = vmatpush.bf16.msrb.mxu0 %v6398_v32  ;;  %3076 = vmatpush.bf16.msrb.mxu1 %v6526_v5  ;;  %v6331_v32 = vld [vmem:[%s15240_s1 + $0x38] sm:$0xf0]  ;;  %v9416_v5 = vld [vmem:[%s15240_s1 + $0x12c] sm:$0xf]  ;;  %v7070_v48 = vor.u32 %v9568_v38, %v7067_v39 }
 0x13a   : > { %v12234_v2 = vadd.f32 %v2849_v61, %v2837_v59  ;;  %v6334_v17 = vor.u32 %v9384_v3, %v6331_v32  ;;  %v9632_v42 = vld [vmem:[%s15240_s1 + $0x7ec] sm:$0xf]  ;;  %v6923_v59 = vld [vmem:[%s15240_s1 + $0x4d8] sm:$0xf0] }
 0x13b   : > { %v9532_v58 = vld [vmem:[%s15240_s1 + $0x4cc] sm:$0xf]  ;;  %v7326_v60 = vor.u32 %v9632_v42, %v7323_v43  ;;  %v7179_v0 = vld [vmem:[%s15240_s1 + $0x6d8] sm:$0xf0] }
 0x13c   : > { %3089 = vmatpush.bf16.msrb.mxu2 %v6654_v7  ;;  %3102 = vmatpush.bf16.msrb.mxu3 %v6782_v14  ;;  %v2825_v7 = vpop.f32.mrf.mxu1  ;;  %v6587_v14 = vld [vmem:[%s15240_s1 + $0x238] sm:$0xf0]  ;;  %v9564_v61 = vld [vmem:[%s15240_s1 + $0x5cc] sm:$0xf]  ;;  %v6926_v3 = vor.u32 %v9532_v58, %v6923_v59 }
 0x13d   : > { %3064 = vmatpush.bf16.msrb.mxu0 %v6382_v20  ;;  %3077 = vmatpush.bf16.msrb.mxu1 %v6510_v22  ;;  %v6462_v20 = vor.u32 %v9416_v5, %v6459_v11  ;;  %v6590_v21 = vor.u32 %v9448_v13, %v6587_v14  ;;  %v9412_v22 = vld [vmem:[%s15240_s1 + $0x10c] sm:$0xf]  ;;  %v7054_v32 = vor.u32 %v9564_v61, %v7051_v63  ;;  %v7035_v14 = vld [vmem:[%s15240_s1 + $0x5b8] sm:$0xf0] }
 0x13e   : > { %v2838_v27 = vpop.f32.mrf.mxu2  ;;  %v2851_v35 = vpop.f32.mrf.mxu3  ;;  %v9528_v7 = vld [vmem:[%s15240_s1 + $0x4ac] sm:$0xf]  ;;  %v7163_v16 = vld [vmem:[%s15240_s1 + $0x6b8] sm:$0xf0] }
 0x13f   : > { %v9560_v11 = vld [vmem:[%s15240_s1 + $0x5ac] sm:$0xf]  ;;  %v7291_v18 = vld [vmem:[%s15240_s1 + $0x7b8] sm:$0xf0] }
 0x140   : > { %3090 = vmatpush.bf16.msrb.mxu2 %v6638_v23  ;;  %3103 = vmatpush.bf16.msrb.mxu3 %v6766_v34  ;;  %v6443_v23 = vld [vmem:[%s15240_s1 + $0x118] sm:$0xf0]  ;;  %v9592_v15 = vld [vmem:[%s15240_s1 + $0x6ac] sm:$0xf] }
 0x141   : > { %3065 = vmatpush.bf16.msrb.mxu0 %v6366_v40  ;;  %3078 = vmatpush.bf16.msrb.mxu1 %v6494_v55  ;;  %v6699_v34 = vld [vmem:[%s15240_s1 + $0x318] sm:$0xf0]  ;;  %v9600_v40 = vld [vmem:[%s15240_s1 + $0x6ec] sm:$0xf] }
 0x142   : > { %v7195_v55 = vld [vmem:[%s15240_s1 + $0x6f8] sm:$0xf0]  ;;  %v6702_v45 = vor.u32 %v9476_v33, %v6699_v34  ;;  %v9520_v38 = vld [vmem:[%s15240_s1 + $0x46c] sm:$0xf] }
 0x143   : > { %v7198_v51 = vor.u32 %v9600_v40, %v7195_v55  ;;  %v7147_v24 = vld [vmem:[%s15240_s1 + $0x698] sm:$0xf0]  ;;  %v9552_v39 = vld [vmem:[%s15240_s1 + $0x56c] sm:$0xf] }
 0x144   : > { %3091 = vmatpush.bf16.msrb.mxu2 %v6622_v1  ;;  %3104 = vmatpush.bf16.msrb.mxu3 %v6750_v46  ;;  %v6446_v1 = vor.u32 %v9412_v22, %v6443_v23  ;;  %v6942_v46 = vor.u32 %v9536_v36, %v6939_v62  ;;  %v6891_v22 = vld [vmem:[%s15240_s1 + $0x498] sm:$0xf0]  ;;  %v9588_v23 = vld [vmem:[%s15240_s1 + $0x68c] sm:$0xf] }
 0x145   : > { %3066 = vmatpush.bf16.msrb.mxu0 %v6350_v54  ;;  %3079 = vmatpush.bf16.msrb.mxu1 %v6478_v56  ;;  %v9596_v54 = vld [vmem:[%s15240_s1 + $0x6cc] sm:$0xf]  ;;  %v7275_v29 = vld [vmem:[%s15240_s1 + $0x798] sm:$0xf0]  ;;  %v7150_v62 = vor.u32 %v9588_v23, %v7147_v24 }
 0x146   : > { %v9628_v56 = vld [vmem:[%s15240_s1 + $0x7cc] sm:$0xf]  ;;  %v7182_v5 = vor.u32 %v9596_v54, %v7179_v0  ;;  %v7259_v42 = vld [vmem:[%s15240_s1 + $0x778] sm:$0xf0] }
 0x147   : > { %v9584_v55 = vld [vmem:[%s15240_s1 + $0x66c] sm:$0xf]  ;;  %v6859_v58 = vld [vmem:[%s15240_s1 + $0x458] sm:$0xf0] }
 0x148   : > { %3092 = vmatpush.bf16.msrb.mxu2 %v6606_v44  ;;  %3105 = vmatpush.bf16.msrb.mxu3 %v6734_v10  ;;  %v7307_v44 = vld [vmem:[%s15240_s1 + $0x7d8] sm:$0xf0]  ;;  %v9548_v59 = vld [vmem:[%s15240_s1 + $0x54c] sm:$0xf] }
 0x149   : > { %3067 = vmatpush.bf16.msrb.mxu0 %v6334_v17  ;;  %3080 = vmatpush.bf16.msrb.mxu1 %v6462_v20  ;;  %v6907_v10 = vld [vmem:[%s15240_s1 + $0x4b8] sm:$0xf0]  ;;  %v7310_v13 = vor.u32 %v9628_v56, %v7307_v44  ;;  %v9624_v17 = vld [vmem:[%s15240_s1 + $0x7ac] sm:$0xf]  ;;  %v7038_v20 = vor.u32 %v9560_v11, %v7035_v14 }
 0x14a   : > { %v6910_v19 = vor.u32 %v9528_v7, %v6907_v10  ;;  %v6987_v63 = vld [vmem:[%s15240_s1 + $0x558] sm:$0xf0]  ;;  %v9580_v54 = vld [vmem:[%s15240_s1 + $0x64c] sm:$0xf] }
 0x14b   : > { %v7115_v0 = vld [vmem:[%s15240_s1 + $0x658] sm:$0xf0]  ;;  %v9508_v23 = vld [vmem:[%s15240_s1 + $0x40c] sm:$0xf] }
 0x14c   : > { %3093 = vmatpush.bf16.msrb.mxu2 %v6590_v21  ;;  %3106 = vmatpush.bf16.msrb.mxu3 %v6718_v28  ;;  %v9524_v21 = vld [vmem:[%s15240_s1 + $0x48c] sm:$0xf]  ;;  %v7118_v14 = vor.u32 %v9580_v54, %v7115_v0  ;;  %v6827_v24 = vld [vmem:[%s15240_s1 + $0x418] sm:$0xf0] }
 0x14d   : > { %3068 = vmatpush.bf16.msrb.mxu0 %v6318_v57  ;;  %3081 = vmatpush.bf16.msrb.mxu1 %v6446_v1  ;;  %v9620_v28 = vld [vmem:[%s15240_s1 + $0x78c] sm:$0xf]  ;;  %v6894_v33 = vor.u32 %v9524_v21, %v6891_v22  ;;  %v6875_v57 = vld [vmem:[%s15240_s1 + $0x478] sm:$0xf0]  ;;  %v3217_v21 = vmax.f32 %v11836_v37, 0.0 }
 0x14e   : > { %v7278_v40 = vor.u32 %v9620_v28, %v7275_v29  ;;  %v7131_v1 = vld [vmem:[%s15240_s1 + $0x678] sm:$0xf0]  ;;  %v6878_v43 = vor.u32 %v9520_v38, %v6875_v57  ;;  %v9540_v29 = vld [vmem:[%s15240_s1 + $0x50c] sm:$0xf] }
 0x14f   : > { %v2862_v27 = vpop.f32.mrf.mxu0  ;;  %v2875_v34 = vpop.f32.mrf.mxu1  ;;  %v7211_v38 = vld [vmem:[%s15240_s1 + $0x718] sm:$0xf0]  ;;  %v9692_v0 = vld [vmem:[%s15240_s1 + $0x9cc] sm:$0xf] }
 0x150   : > { %3094 = vmatpush.bf16.msrb.mxu2 %v6574_v41  ;;  %3107 = vmatpush.bf16.msrb.mxu3 %v6702_v45  ;;  %v2863_v35 = vadd.f32 %v2862_v27, %v12234_v2  ;;  %v7003_v2 = vld [vmem:[%s15240_s1 + $0x578] sm:$0xf0]  ;;  %v9616_v41 = vld [vmem:[%s15240_s1 + $0x76c] sm:$0xf] }
 0x151   : > { %3113 = vmatpush.bf16.msra.mxu0 %v6942_v46  ;;  %3126 = vmatpush.bf16.msra.mxu1 %v7070_v48  ;;  %v7006_v46 = vor.u32 %v9552_v39, %v7003_v2  ;;  %v7134_v48 = vor.u32 %v9584_v55, %v7131_v1  ;;  %v7262_v61 = vor.u32 %v9616_v41, %v7259_v42  ;;  %v9664_v39 = vld [vmem:[%s15240_s1 + $0x8ec] sm:$0xf]  ;;  %v7579_v41 = vld [vmem:[%s15240_s1 + $0x9f8] sm:$0xf0] }
 0x152   : > { %3069 = vmatmul.bf16.vlgmr.msrb.gmra.mxu0 %v10655_v30  ;;  %3082 = vmatmul.bf16.vlgmr.msrb.gmra.mxu1 %v10660_v31  ;;  %v7294_v30 = vor.u32 %v9624_v17, %v7291_v18  ;;  %v7019_v31 = vld [vmem:[%s15240_s1 + $0x598] sm:$0xf0]  ;;  %v2876_v45 = vadd.f32 %v2875_v34, %v2863_v35  ;;  %v9544_v17 = vld [vmem:[%s15240_s1 + $0x52c] sm:$0xf]  ;;  %v6830_v1 = vor.u32 %v9508_v23, %v6827_v24 }
 0x153   : > { %3095 = vmatmul.bf16.vlgmr.msrb.gmra.mxu2 %v10640_v25  ;;  %3108 = vmatmul.bf16.vlgmr.msrb.gmra.mxu3 %v10644_v26  ;;  %v7166_v25 = vor.u32 %v9592_v15, %v7163_v16  ;;  %v9556_v26 = vld [vmem:[%s15240_s1 + $0x58c] sm:$0xf]  ;;  %v6843_v16 = vld [vmem:[%s15240_s1 + $0x438] sm:$0xf0] }
 0x154   : > { %3139 = vmatpush.bf16.msra.mxu2 %v7198_v51  ;;  %3152 = vmatpush.bf16.msra.mxu3 %v7326_v60  ;;  %v7022_v36 = vor.u32 %v9556_v26, %v7019_v31  ;;  %v9516_v51 = vld [vmem:[%s15240_s1 + $0x44c] sm:$0xf]  ;;  %v7435_v54 = vld [vmem:[%s15240_s1 + $0x8d8] sm:$0xf0] }
 0x155   : > { %3114 = vmatpush.bf16.msra.mxu0 %v6926_v3  ;;  %3127 = vmatpush.bf16.msra.mxu1 %v7054_v32  ;;  %v9612_v3 = vld [vmem:[%s15240_s1 + $0x74c] sm:$0xf]  ;;  %v7243_v32 = vld [vmem:[%s15240_s1 + $0x758] sm:$0xf0]  ;;  %v6862_v7 = vor.u32 %v9516_v51, %v6859_v58 }
 0x156   : > { %v2888_v60 = vpop.f32.mrf.mxu2  ;;  %v2901_v44 = vpop.f32.mrf.mxu3  ;;  %v9512_v15 = vld [vmem:[%s15240_s1 + $0x42c] sm:$0xf]  ;;  %v7246_v18 = vor.u32 %v9612_v3, %v7243_v32  ;;  %v7835_v51 = vld [vmem:[%s15240_s1 + $0xbf8] sm:$0xf0] }
 0x157   : > { %v2889_v56 = vadd.f32 %v2888_v60, %v2876_v45  ;;  %v2877_v10 = vpop.f32.mrf.mxu1  ;;  %v9608_v26 = vld [vmem:[%s15240_s1 + $0x72c] sm:$0xf]  ;;  %v6846_v31 = vor.u32 %v9512_v15, %v6843_v16  ;;  %v7691_v32 = vld [vmem:[%s15240_s1 + $0xad8] sm:$0xf0] }
 0x158   : > { %3140 = vmatpush.bf16.msra.mxu2 %v7182_v5  ;;  %3153 = vmatpush.bf16.msra.mxu3 %v7310_v13  ;;  %v2864_v5 = vpop.f32.mrf.mxu0  ;;  %v6990_v13 = vor.u32 %v9548_v59, %v6987_v63  ;;  %v9572_v34 = vld [vmem:[%s15240_s1 + $0x60c] sm:$0xf]  ;;  %v7419_v15 = vld [vmem:[%s15240_s1 + $0x8b8] sm:$0xf0] }
 0x159   : > { %3115 = vmatpush.bf16.msra.mxu0 %v6910_v19  ;;  %3128 = vmatpush.bf16.msra.mxu1 %v7038_v20  ;;  %v2902_v11 = vadd.f32 %v2901_v44, %v2889_v56  ;;  %v6971_v19 = vld [vmem:[%s15240_s1 + $0x538] sm:$0xf0]  ;;  %v9576_v20 = vld [vmem:[%s15240_s1 + $0x62c] sm:$0xf] }
 0x15a   : > { %v6974_v27 = vor.u32 %v9544_v17, %v6971_v19  ;;  %v9696_v2 = vld [vmem:[%s15240_s1 + $0x9ec] sm:$0xf]  ;;  %v7563_v44 = vld [vmem:[%s15240_s1 + $0x9d8] sm:$0xf0] }
 0x15b   : > { %v3218_v22 = vmax.f32 %v2902_v11, 0.0  ;;  %v9728_v42 = vld [vmem:[%s15240_s1 + $0xaec] sm:$0xf]  ;;  %v7566_v11 = vor.u32 %v9692_v0, %v7563_v44  ;;  %v7531_v24 = vld [vmem:[%s15240_s1 + $0x998] sm:$0xf0] }
 0x15c   : > { %3141 = vmatpush.bf16.msra.mxu2 %v7166_v25  ;;  %3154 = vmatpush.bf16.msra.mxu3 %v7294_v30  ;;  %v7099_v25 = vld [vmem:[%s15240_s1 + $0x638] sm:$0xf0]  ;;  %v9660_v63 = vld [vmem:[%s15240_s1 + $0x8cc] sm:$0xf] }
 0x15d   : > { %3116 = vmatpush.bf16.msra.mxu0 %v6894_v33  ;;  %3129 = vmatpush.bf16.msra.mxu1 %v7022_v36  ;;  %v7227_v30 = vld [vmem:[%s15240_s1 + $0x738] sm:$0xf0]  ;;  %v12464_v37 = vpack.c.bf16 %v3218_v22, %v3217_v21  ;;  %v7102_v28 = vor.u32 %v9576_v20, %v7099_v25  ;;  %v9724_v3 = vld [vmem:[%s15240_s1 + $0xacc] sm:$0xf]  ;;  %v7438_v10 = vor.u32 %v9660_v63, %v7435_v54 }
 0x15e   : > { %v6955_v33 = vld [vmem:[%s15240_s1 + $0x518] sm:$0xf0]  ;;  %v7230_v35 = vor.u32 %v9608_v26, %v7227_v30  ;;  %v2890_v57 = vpop.f32.mrf.mxu2  ;;  %v2903_v55 = vpop.f32.mrf.mxu3  ;;  %v9756_v5 = vld [vmem:[%s15240_s1 + $0xbcc] sm:$0xf] }
 0x15f   : > { %v7083_v36 = vld [vmem:[%s15240_s1 + $0x618] sm:$0xf0]  ;;  %v6958_v45 = vor.u32 %v9540_v29, %v6955_v33  ;;  %v9688_v16 = vld [vmem:[%s15240_s1 + $0x9ac] sm:$0xf] }
 0x160   : > { %3142 = vmatpush.bf16.msra.mxu2 %v7150_v62  ;;  %3155 = vmatpush.bf16.msra.mxu3 %v7278_v40  ;;  %v9604_v62 = vld [vmem:[%s15240_s1 + $0x70c] sm:$0xf]  ;;  %v7451_v40 = vld [vmem:[%s15240_s1 + $0x8f8] sm:$0xf0] }
 0x161   : > { %3117 = vmatpush.bf16.msra.mxu0 %v6878_v43  ;;  %3130 = vmatpush.bf16.msra.mxu1 %v7006_v46  ;;  %v7707_v43 = vld [vmem:[%s15240_s1 + $0xaf8] sm:$0xf0]  ;;  %v7086_v46 = vor.u32 %v9572_v34, %v7083_v36  ;;  %v7214_v58 = vor.u32 %v9604_v62, %v7211_v38  ;;  %v7454_v59 = vor.u32 %v9664_v39, %v7451_v40  ;;  %v9720_v19 = vld [vmem:[%s15240_s1 + $0xaac] sm:$0xf] }
 0x162   : > { %v7710_v60 = vor.u32 %v9728_v42, %v7707_v43  ;;  %v7675_v20 = vld [vmem:[%s15240_s1 + $0xab8] sm:$0xf0]  ;;  %v9752_v25 = vld [vmem:[%s15240_s1 + $0xbac] sm:$0xf] }
 0x163   : > { %v9652_v22 = vld [vmem:[%s15240_s1 + $0x88c] sm:$0xf]  ;;  %v7678_v30 = vor.u32 %v9720_v19, %v7675_v20  ;;  %v7787_v33 = vld [vmem:[%s15240_s1 + $0xb98] sm:$0xf0] }
 0x164   : > { %3143 = vmatpush.bf16.msra.mxu2 %v7134_v48  ;;  %3156 = vmatpush.bf16.msra.mxu3 %v7262_v61  ;;  %v9760_v48 = vld [vmem:[%s15240_s1 + $0xbec] sm:$0xf]  ;;  %v7582_v61 = vor.u32 %v9696_v2, %v7579_v41  ;;  %v7387_v57 = vld [vmem:[%s15240_s1 + $0x878] sm:$0xf0] }
 0x165   : > { %3118 = vmatpush.bf16.msra.mxu0 %v6862_v7  ;;  %3131 = vmatpush.bf16.msra.mxu1 %v6990_v13  ;;  %v7838_v56 = vor.u32 %v9760_v48, %v7835_v51  ;;  %v7819_v7 = vld [vmem:[%s15240_s1 + $0xbd8] sm:$0xf0]  ;;  %v7694_v13 = vor.u32 %v9724_v3, %v7691_v32  ;;  %v9748_v29 = vld [vmem:[%s15240_s1 + $0xb8c] sm:$0xf] }
 0x166   : > { %v7822_v17 = vor.u32 %v9756_v5, %v7819_v7  ;;  %v9648_v38 = vld [vmem:[%s15240_s1 + $0x86c] sm:$0xf]  ;;  %v7790_v55 = vor.u32 %v9748_v29, %v7787_v33  ;;  %v7643_v42 = vld [vmem:[%s15240_s1 + $0xa78] sm:$0xf0] }
 0x167   : > { %v9680_v39 = vld [vmem:[%s15240_s1 + $0x96c] sm:$0xf]  ;;  %v7390_v48 = vor.u32 %v9648_v38, %v7387_v57  ;;  %v7499_v0 = vld [vmem:[%s15240_s1 + $0x958] sm:$0xf0]  ;;  %v7953_v38 = vld [vmem:[%s15241_s2 + $0xe0] sm:$0xf] }
 0x168   : > { %3144 = vmatpush.bf16.msra.mxu2 %v7118_v14  ;;  %3157 = vmatpush.bf16.msra.mxu3 %v7246_v18  ;;  %v9656_v14 = vld [vmem:[%s15240_s1 + $0x8ac] sm:$0xf]  ;;  %v7547_v18 = vld [vmem:[%s15240_s1 + $0x9b8] sm:$0xf0]  ;;  %v9793_v57 = vld [vmem:[%s15241_s2 + $0xec] sm:$0xf0] }
 0x169   : > { %3119 = vmatpush.bf16.msra.mxu0 %v6846_v31  ;;  %3132 = vmatpush.bf16.msra.mxu1 %v6974_v27  ;;  %v7422_v21 = vor.u32 %v9656_v14, %v7419_v15  ;;  %v7550_v26 = vor.u32 %v9688_v16, %v7547_v18  ;;  %v7403_v31 = vld [vmem:[%s15240_s1 + $0x898] sm:$0xf0]  ;;  %v9716_v27 = vld [vmem:[%s15240_s1 + $0xa8c] sm:$0xf] }
 0x16a   : > { %v7406_v34 = vor.u32 %v9652_v22, %v7403_v31  ;;  %v9712_v41 = vld [vmem:[%s15240_s1 + $0xa6c] sm:$0xf]  ;;  %v7627_v44 = vld [vmem:[%s15240_s1 + $0xa58] sm:$0xf0] }
 0x16b   : > { %v9744_v43 = vld [vmem:[%s15240_s1 + $0xb6c] sm:$0xf]  ;;  %v7755_v7 = vld [vmem:[%s15240_s1 + $0xb58] sm:$0xf0] }
 0x16c   : > { %3145 = vmatpush.bf16.msra.mxu2 %v7102_v28  ;;  %3158 = vmatpush.bf16.msra.mxu3 %v7230_v35  ;;  %v7659_v28 = vld [vmem:[%s15240_s1 + $0xa98] sm:$0xf0]  ;;  %v9740_v5 = vld [vmem:[%s15240_s1 + $0xb4c] sm:$0xf] }
 0x16d   : > { %3120 = vmatpush.bf16.msra.mxu0 %v6830_v1  ;;  %3133 = vmatpush.bf16.msra.mxu1 %v6958_v45  ;;  %v7662_v62 = vor.u32 %v9716_v27, %v7659_v28  ;;  %v7515_v1 = vld [vmem:[%s15240_s1 + $0x978] sm:$0xf0]  ;;  %v9640_v16 = vld [vmem:[%s15240_s1 + $0x82c] sm:$0xf]  ;;  %v7758_v20 = vor.u32 %v9740_v5, %v7755_v7  ;;  %v7889_v7 = vld [vmem:[%s15241_s2 + $0x60] sm:$0xf] }
 0x16e   : > { %v7771_v45 = vld [vmem:[%s15240_s1 + $0xb78] sm:$0xf0]  ;;  %v7518_v51 = vor.u32 %v9680_v39, %v7515_v1  ;;  %v9672_v18 = vld [vmem:[%s15240_s1 + $0x92c] sm:$0xf] }
 0x16f   : > { %v2914_v35 = vpop.f32.mrf.mxu0  ;;  %v2927_v2 = vpop.f32.mrf.mxu1  ;;  %v7774_v54 = vor.u32 %v9744_v43, %v7771_v45  ;;  %v9736_v22 = vld [vmem:[%s15240_s1 + $0xb2c] sm:$0xf]  ;;  %v7467_v27 = vld [vmem:[%s15240_s1 + $0x918] sm:$0xf0]  ;;  %v7937_v45 = vld [vmem:[%s15241_s2 + $0xc0] sm:$0xf] }
 0x170   : > { %3146 = vmatpush.bf16.msra.mxu2 %v7086_v46  ;;  %3159 = vmatpush.bf16.msra.mxu3 %v7214_v58  ;;  %v7646_v58 = vor.u32 %v9712_v41, %v7643_v42  ;;  %v9636_v31 = vld [vmem:[%s15240_s1 + $0x80c] sm:$0xf]  ;;  %v7954_v42 = vor.u32 %v9793_v57, %v7953_v38 }
 0x171   : > { %3165 = vmatpush.bf16.msrb.mxu0 %v7454_v59  ;;  %3178 = vmatpush.bf16.msrb.mxu1 %v7582_v61  ;;  %v9644_v59 = vld [vmem:[%s15240_s1 + $0x84c] sm:$0xf]  ;;  %v7371_v61 = vld [vmem:[%s15240_s1 + $0x858] sm:$0xf0] }
 0x172   : > { %3121 = vmatmul.bf16.vlgmr.msra.gmra.mxu0 %v10559_v52  ;;  %3134 = vmatmul.bf16.vlgmr.msra.gmra.mxu1 %v10561_v53  ;;  %v12572_v52 = vld [vmem:[%s15242_s3] ss:$2 sm:$0xf]  ;;  %v9700_v33 = vld [vmem:[%s15240_s1 + $0xa0c] sm:$0xf] }
 0x173   : > { %3147 = vmatmul.bf16.vlgmr.msra.gmra.mxu2 %v10555_v49  ;;  %v7803_v49 = vld [vmem:[%s15240_s1 + $0xbb8] sm:$0xf0]  ;;  %3160 = vmatmul.bf16.vlgmr.msra.gmra.mxu3 %v10557_v50  ;;  %v9684_v50 = vld [vmem:[%s15240_s1 + $0x98c] sm:$0xf]  ;;  %v667_v53 = vperm.slane %v12572_v52, 2 }
 0x174   : > { %3191 = vmatpush.bf16.msrb.mxu2 %v7710_v60  ;;  %3204 = vmatpush.bf16.msrb.mxu3 %v7838_v56  ;;  %v7806_v23 = vor.u32 %v9752_v25, %v7803_v49  ;;  %v7534_v36 = vor.u32 %v9684_v50, %v7531_v24  ;;  %v9676_v60 = vld [vmem:[%s15240_s1 + $0x94c] sm:$0xf]  ;;  %v7483_v25 = vld [vmem:[%s15240_s1 + $0x938] sm:$0xf0] }
 0x175   : > { %3166 = vmatpush.bf16.msrb.mxu0 %v7438_v10  ;;  %3179 = vmatpush.bf16.msrb.mxu1 %v7566_v11  ;;  %v2915_v40 = vadd.f32 %v2914_v35, %v667_v53  ;;  %v9708_v56 = vld [vmem:[%s15240_s1 + $0xa4c] sm:$0xf]  ;;  %v7374_v10 = vor.u32 %v9644_v59, %v7371_v61  ;;  %v7502_v14 = vor.u32 %v9676_v60, %v7499_v0  ;;  %v7921_v61 = vld [vmem:[%s15241_s2 + $0xa0] sm:$0xf]  ;;  %v9785_v60 = vld [vmem:[%s15241_s2 + $0xac] sm:$0xf0] }
 0x176   : > { %v2940_v63 = vpop.f32.mrf.mxu2  ;;  %v2953_v32 = vpop.f32.mrf.mxu3  ;;  %v7630_v15 = vor.u32 %v9708_v56, %v7627_v44  ;;  %v9704_v49 = vld [vmem:[%s15240_s1 + $0xa2c] sm:$0xf]  ;;  %v7486_v50 = vor.u32 %v9672_v18, %v7483_v25  ;;  %v8033_v56 = vld [vmem:[%s15241_s2 + $0x180] sm:$0xf]  ;;  %v3225_v44 = vunpack.c.l.b16 %v12464_v37 }
 0x177   : > { %v2928_v46 = vadd.f32 %v2927_v2, %v2915_v40  ;;  %v2929_v19 = vpop.f32.mrf.mxu1  ;;  %v9668_v24 = vld [vmem:[%s15240_s1 + $0x90c] sm:$0xf]  ;;  %v8081_v40 = vld [vmem:[%s15241_s2 + $0x1e0] sm:$0xf]  ;;  %v9825_v2 = vld [vmem:[%s15241_s2 + $0x1ec] sm:$0xf0] }
 0x178   : > { %3192 = vmatpush.bf16.msrb.mxu2 %v7694_v13  ;;  %3205 = vmatpush.bf16.msrb.mxu3 %v7822_v17  ;;  %v2916_v13 = vpop.f32.mrf.mxu0  ;;  %v7355_v17 = vld [vmem:[%s15240_s1 + $0x838] sm:$0xf0]  ;;  %v9732_v35 = vld [vmem:[%s15240_s1 + $0xb0c] sm:$0xf]  ;;  %v8082_v43 = vor.u32 %v9825_v2, %v8081_v40  ;;  %v12755_v19 = vpack.c.b16 %v3225_v44, %v3225_v44  ;;  %v9765_v40 = vld [vmem:[%s15241_s2 + $0xc] sm:$0xf0] }
 0x179   : > { %3167 = vmatpush.bf16.msrb.mxu0 %v7422_v21  ;;  %3180 = vmatpush.bf16.msrb.mxu1 %v7550_v26  ;;  %v2941_v3 = vadd.f32 %v2940_v63, %v2928_v46  ;;  %v7611_v21 = vld [vmem:[%s15240_s1 + $0xa38] sm:$0xf0]  ;;  %v9789_v46 = vld [vmem:[%s15241_s2 + $0xcc] sm:$0xf0]  ;;  %v8049_v63 = vld [vmem:[%s15241_s2 + $0x1a0] sm:$0xf] }
 0x17a   : > { %v7739_v26 = vld [vmem:[%s15240_s1 + $0xb38] sm:$0xf0]  ;;  %v7614_v53 = vor.u32 %v9704_v49, %v7611_v21  ;;  %v9773_v49 = vld [vmem:[%s15241_s2 + $0x4c] sm:$0xf0]  ;;  %v7969_v2 = vld [vmem:[%s15241_s2 + $0x100] sm:$0xf] }
 0x17b   : > { %v12638_v11 = vadd.f32 %v2953_v32, %v2941_v3  ;;  %v7742_v29 = vor.u32 %v9736_v22, %v7739_v26  ;;  %v9805_v22 = vld [vmem:[%s15241_s2 + $0x14c] sm:$0xf0] }
 0x17c   : > { %3193 = vmatpush.bf16.msrb.mxu2 %v7678_v30  ;;  %3206 = vmatpush.bf16.msrb.mxu3 %v7806_v23  ;;  %v7358_v30 = vor.u32 %v9640_v16, %v7355_v17  ;;  %v7339_v23 = vld [vmem:[%s15240_s1 + $0x818] sm:$0xf0]  ;;  %v9809_v16 = vld [vmem:[%s15241_s2 + $0x16c] sm:$0xf0]  ;;  %v3226_v17 = vunpack.c.h.b16 %v12464_v37  ;;  %v8001_v37 = vld [vmem:[%s15241_s2 + $0x140] sm:$0xf] }
 0x17d   : > { %3168 = vmatpush.bf16.msrb.mxu0 %v7406_v34  ;;  %3181 = vmatpush.bf16.msrb.mxu1 %v7534_v36  ;;  %v7595_v34 = vld [vmem:[%s15240_s1 + $0xa18] sm:$0xf0]  ;;  %v7342_v39 = vor.u32 %v9636_v31, %v7339_v23  ;;  %v3234_v23 = vshrl.u32 %v12755_v19, 16 }
 0x17e   : > { %v2942_v28 = vpop.f32.mrf.mxu2  ;;  %v2955_v36 = vpop.f32.mrf.mxu3  ;;  %v7598_v1 = vor.u32 %v9700_v33, %v7595_v34  ;;  %v12769_v31 = vpack.c.b16 %v3226_v17, %v3226_v17  ;;  %v7985_v34 = vld [vmem:[%s15241_s2 + $0x120] sm:$0xf]  ;;  %v9909_v17 = vld [vmem:[%s15241_s2 + $0x48c] sm:$0xf0] }
 0x17f   : > { %v7857_v28 = vld [vmem:[%s15241_s2 + $0x20] sm:$0xf]  ;;  %v3236_v38 = vrot.slane %v3234_v23, 7 }
 0x180   : > { %3194 = vmatpush.bf16.msrb.mxu2 %v7662_v62  ;;  %3207 = vmatpush.bf16.msrb.mxu3 %v7790_v55  ;;  %v7723_v62 = vld [vmem:[%s15240_s1 + $0xb18] sm:$0xf0]  ;;  %v7470_v55 = vor.u32 %v9668_v24, %v7467_v27  ;;  %v8002_v27 = vor.u32 %v9805_v22, %v8001_v37  ;;  %v3241_v36 = vshrl.u32 %v12769_v31, 16  ;;  %v8401_v22 = vld [vmem:[%s15241_s2 + $0x460] sm:$0xf] }
 0x181   : > { %3169 = vmatpush.bf16.msrb.mxu0 %v7390_v48  ;;  %3182 = vmatpush.bf16.msrb.mxu1 %v7518_v51  ;;  %v7726_v41 = vor.u32 %v9732_v35, %v7723_v62  ;;  %v8065_v48 = vld [vmem:[%s15241_s2 + $0x1c0] sm:$0xf]  ;;  %v9821_v51 = vld [vmem:[%s15241_s2 + $0x1cc] sm:$0xf0] }
 0x182   : > { %v8066_v59 = vor.u32 %v9821_v51, %v8065_v48  ;;  %v9801_v35 = vld [vmem:[%s15241_s2 + $0x12c] sm:$0xf0]  ;;  %v3243_v48 = vrot.slane %v3241_v36, 7 }
 0x183   : > { %v7986_v57 = vor.u32 %v9801_v35, %v7985_v34  ;;  %v9933_v34 = vld [vmem:[%s15241_s2 + $0x54c] sm:$0xf0] }
 0x184   : > { %3195 = vmatpush.bf16.msrb.mxu2 %v7646_v58  ;;  %3208 = vmatpush.bf16.msrb.mxu3 %v7774_v54  ;;  %v7938_v58 = vor.u32 %v9789_v46, %v7937_v45  ;;  %v7922_v54 = vor.u32 %v9785_v60, %v7921_v61  ;;  %v8593_v45 = vld [vmem:[%s15241_s2 + $0x5e0] sm:$0xf]  ;;  %v9953_v46 = vld [vmem:[%s15241_s2 + $0x5ec] sm:$0xf0]  ;;  %v3244_v60 = vshll.u32 %v12769_v31, 16 }
 0x185   : > { %3170 = vmatpush.bf16.msrb.mxu0 %v7374_v10  ;;  %3183 = vmatpush.bf16.msrb.mxu1 %v7502_v14  ;;  %v9777_v10 = vld [vmem:[%s15241_s2 + $0x6c] sm:$0xf0] }
 0x188   : > { %3196 = vmatpush.bf16.msrb.mxu2 %v7630_v15  ;;  %3209 = vmatpush.bf16.msrb.mxu3 %v7758_v20  ;;  %v8017_v15 = vld [vmem:[%s15241_s2 + $0x160] sm:$0xf]  ;;  %v7890_v20 = vor.u32 %v9777_v10, %v7889_v7 }
 0x189   : > { %3171 = vmatpush.bf16.msrb.mxu0 %v7358_v30  ;;  %3184 = vmatpush.bf16.msrb.mxu1 %v7486_v50  ;;  %v8018_v25 = vor.u32 %v9809_v16, %v8017_v15  ;;  %v8561_v10 = vld [vmem:[%s15241_s2 + $0x5a0] sm:$0xf] }
 0x18a   : > { %v8417_v16 = vld [vmem:[%s15241_s2 + $0x480] sm:$0xf] }
 0x18c   : > { %3197 = vmatpush.bf16.msrb.mxu2 %v7614_v53  ;;  %3210 = vmatpush.bf16.msrb.mxu3 %v7742_v29  ;;  %v9769_v29 = vld [vmem:[%s15241_s2 + $0x2c] sm:$0xf0] }
 0x18d   : > { %3172 = vmatpush.bf16.msrb.mxu0 %v7342_v39  ;;  %3185 = vmatpush.bf16.msrb.mxu1 %v7470_v55  ;;  %v7858_v62 = vor.u32 %v9769_v29, %v7857_v28  ;;  %v7841_v39 = vld [vmem:[%s15241_s2] sm:$0xf]  ;;  %v9901_v29 = vld [vmem:[%s15241_s2 + $0x44c] sm:$0xf0] }
 0x18e   : > { %v7842_v51 = vor.u32 %v9765_v40, %v7841_v39  ;;  %v8385_v28 = vld [vmem:[%s15241_s2 + $0x440] sm:$0xf] }
 0x18f   : > { %v2966_v32 = vpop.f32.mrf.mxu0  ;;  %v2979_v14 = vpop.f32.mrf.mxu1 }
 0x190   : > { %3198 = vmatpush.bf16.msrb.mxu2 %v7598_v1  ;;  %3211 = vmatpush.bf16.msrb.mxu3 %v7726_v41  ;;  %v2967_v13 = vadd.f32 %v2966_v32, %v12638_v11  ;;  %v7873_v11 = vld [vmem:[%s15241_s2 + $0x40] sm:$0xf]  ;;  %v9797_v1 = vld [vmem:[%s15241_s2 + $0x10c] sm:$0xf0] }
 0x191   : > { %5593 = vmatpush.bf16.msra.mxu0 %v7954_v42  ;;  %5606 = vmatpush.bf16.msra.mxu1 %v8082_v43  ;;  %v7874_v50 = vor.u32 %v9773_v49, %v7873_v11  ;;  %v8465_v41 = vld [vmem:[%s15241_s2 + $0x4e0] sm:$0xf]  ;;  %v9921_v42 = vld [vmem:[%s15241_s2 + $0x4ec] sm:$0xf0]  ;;  %v8418_v11 = vor.u32 %v9909_v17, %v8417_v16 }
 0x192   : > { %3173 = vmatmul.bf16.vlgmr.msrb.gmra.mxu0 %v10923_v4  ;;  %3186 = vmatmul.bf16.vlgmr.msrb.gmra.mxu1 %v10937_v9  ;;  %v9817_v4 = vld [vmem:[%s15241_s2 + $0x1ac] sm:$0xf0]  ;;  %v7905_v9 = vld [vmem:[%s15241_s2 + $0x80] sm:$0xf]  ;;  %v2980_v18 = vadd.f32 %v2979_v14, %v2967_v13  ;;  %v8466_v61 = vor.u32 %v9921_v42, %v8465_v41 }
 0x193   : > { %3199 = vmatmul.bf16.vlgmr.msrb.gmra.mxu2 %v10933_v8  ;;  %3212 = vmatmul.bf16.vlgmr.msrb.gmra.mxu3 %v10944_v12  ;;  %v8050_v0 = vor.u32 %v9817_v4, %v8049_v63  ;;  %v9781_v8 = vld [vmem:[%s15241_s2 + $0x8c] sm:$0xf0]  ;;  %v8594_v63 = vor.u32 %v9953_v46, %v8593_v45  ;;  %v8433_v32 = vld [vmem:[%s15241_s2 + $0x4a0] sm:$0xf] }
 0x194   : > { %v9813_v12 = vld [vmem:[%s15241_s2 + $0x18c] sm:$0xf0]  ;;  %v7906_v3 = vor.u32 %v9781_v8, %v7905_v9  ;;  %v3246_v9 = vor.u32 %v3244_v60, %v3243_v48  ;;  %v8577_v8 = vld [vmem:[%s15241_s2 + $0x5c0] sm:$0xf] }
 0x195   : > { %5594 = vmatpush.bf16.msra.mxu0 %v7938_v58  ;;  %5607 = vmatpush.bf16.msra.mxu1 %v8066_v59  ;;  %v8034_v5 = vor.u32 %v9813_v12, %v8033_v56  ;;  %v3237_v58 = vshll.u32 %v12755_v19, 16  ;;  %v7970_v59 = vor.u32 %v9797_v1, %v7969_v2  ;;  %v9949_v56 = vld [vmem:[%s15241_s2 + $0x5cc] sm:$0xf0]  ;;  %v8369_v2 = vld [vmem:[%s15241_s2 + $0x420] sm:$0xf] }
 0x196   : > { %v2992_v21 = vpop.f32.mrf.mxu2  ;;  %v3005_v30 = vpop.f32.mrf.mxu3  ;;  %v12846_v7 = vsel %vm10595_vm2, 0, %v3246_v9  ;;  %v9945_v13 = vld [vmem:[%s15241_s2 + $0x5ac] sm:$0xf0]  ;;  %v8497_v42 = vld [vmem:[%s15241_s2 + $0x520] sm:$0xf] }
 0x197   : > { %v2993_v26 = vadd.f32 %v2992_v21, %v2980_v18  ;;  %v2968_v24 = vpop.f32.mrf.mxu0  ;;  %v2981_v33 = vpop.f32.mrf.mxu1  ;;  %v3239_v4 = vor.u32 %v3237_v58, %v3236_v38  ;;  %v8562_v15 = vor.u32 %v9945_v13, %v8561_v10  ;;  %v8545_v18 = vld [vmem:[%s15241_s2 + $0x580] sm:$0xf]  ;;  %v10045_v10 = vld [vmem:[%s15241_s2 + $0x8cc] sm:$0xf0] }
 0x198   : > { %v8513_v33 = vld [vmem:[%s15241_s2 + $0x540] sm:$0xf] }
 0x199   : > { %5595 = vmatpush.bf16.msra.mxu0 %v7922_v54  ;;  %5608 = vmatpush.bf16.msra.mxu1 %v8050_v0  ;;  %v12771_v53 = vadd.f32 %v3005_v30, %v2993_v26  ;;  %v8449_v54 = vld [vmem:[%s15241_s2 + $0x4c0] sm:$0xf]  ;;  %v9917_v0 = vld [vmem:[%s15241_s2 + $0x4cc] sm:$0xf0]  ;;  %v12835_v44 = vsel %vm10595_vm2, 0, %v3239_v4  ;;  %v8514_v40 = vor.u32 %v9933_v34, %v8513_v33 }
 0x19a   : > { %v8450_v12 = vor.u32 %v9917_v0, %v8449_v54  ;;  %v9905_v26 = vld [vmem:[%s15241_s2 + $0x46c] sm:$0xf0]  ;;  %v8529_v30 = vld [vmem:[%s15241_s2 + $0x560] sm:$0xf] }
 0x19b   : > { %v8353_v48 = vld [vmem:[%s15241_s2 + $0x400] sm:$0xf]  ;;  %v10049_v4 = vld [vmem:[%s15241_s2 + $0x8ec] sm:$0xf0] }
 0x19c   : > { %v9105_v54 = vld [vmem:[%s15241_s2 + $0x9e0] sm:$0xf]  ;;  %v10081_v0 = vld [vmem:[%s15241_s2 + $0x9ec] sm:$0xf0] }
 0x19d   : > { %5596 = vmatpush.bf16.msra.mxu0 %v7906_v3  ;;  %5609 = vmatpush.bf16.msra.mxu1 %v8034_v5  ;;  %v8578_v3 = vor.u32 %v9949_v56, %v8577_v8  ;;  %v9913_v5 = vld [vmem:[%s15241_s2 + $0x4ac] sm:$0xf0]  ;;  %v9089_v13 = vld [vmem:[%s15241_s2 + $0x9c0] sm:$0xf] }
 0x19e   : > { %v2994_v55 = vpop.f32.mrf.mxu2  ;;  %v3007_v43 = vpop.f32.mrf.mxu3  ;;  %v8434_v14 = vor.u32 %v9913_v5, %v8433_v32  ;;  %v9106_v32 = vor.u32 %v10081_v0, %v9105_v54  ;;  %v8961_v5 = vld [vmem:[%s15241_s2 + $0x8c0] sm:$0xf]  ;;  %v9853_v33 = vld [vmem:[%s15241_s2 + $0x2cc] sm:$0xf0] }
 0x19f   : > { %v9897_v55 = vld [vmem:[%s15241_s2 + $0x42c] sm:$0xf0]  ;;  %v8945_v16 = vld [vmem:[%s15241_s2 + $0x8a0] sm:$0xf] }
 0x1a0   : > { %v9929_v43 = vld [vmem:[%s15241_s2 + $0x52c] sm:$0xf0]  ;;  %v8370_v45 = vor.u32 %v9897_v55, %v8369_v2  ;;  %v8321_v34 = vld [vmem:[%s15241_s2 + $0x3c0] sm:$0xf] }
 0x1a1   : > { %5597 = vmatpush.bf16.msra.mxu0 %v7890_v20  ;;  %5610 = vmatpush.bf16.msra.mxu1 %v8018_v25  ;;  %v9941_v20 = vld [vmem:[%s15241_s2 + $0x58c] sm:$0xf0]  ;;  %v8498_v46 = vor.u32 %v9929_v43, %v8497_v42  ;;  %v9041_v55 = vld [vmem:[%s15241_s2 + $0x960] sm:$0xf] }
 0x1a2   : > { %v8546_v21 = vor.u32 %v9941_v20, %v8545_v18  ;;  %v10041_v18 = vld [vmem:[%s15241_s2 + $0x8ac] sm:$0xf0]  ;;  %v9073_v20 = vld [vmem:[%s15241_s2 + $0x9a0] sm:$0xf] }
 0x1a3   : > { %v10033_v2 = vld [vmem:[%s15241_s2 + $0x86c] sm:$0xf0]  ;;  %v8177_v43 = vld [vmem:[%s15241_s2 + $0x2a0] sm:$0xf] }
 0x1a4   : > { %v10029_v0 = vld [vmem:[%s15241_s2 + $0x84c] sm:$0xf0] }
 0x1a5   : > { %5598 = vmatpush.bf16.msra.mxu0 %v7874_v50  ;;  %5611 = vmatpush.bf16.msra.mxu1 %v8002_v27  ;;  %v9937_v50 = vld [vmem:[%s15241_s2 + $0x56c] sm:$0xf0] }
 0x1a6   : > { %v8530_v27 = vor.u32 %v9937_v50, %v8529_v30  ;;  %v8929_v30 = vld [vmem:[%s15241_s2 + $0x880] sm:$0xf] }
 0x1a9   : > { %5599 = vmatpush.bf16.msra.mxu0 %v7858_v62  ;;  %5612 = vmatpush.bf16.msra.mxu1 %v7986_v57  ;;  %v8386_v57 = vor.u32 %v9901_v29, %v8385_v28  ;;  %v10069_v28 = vld [vmem:[%s15241_s2 + $0x98c] sm:$0xf0]  ;;  %v8193_v29 = vld [vmem:[%s15241_s2 + $0x2c0] sm:$0xf] }
 0x1ad   : > { %5600 = vmatpush.bf16.msra.mxu0 %v7842_v51  ;;  %5613 = vmatpush.bf16.msra.mxu1 %v7970_v59  ;;  %v9893_v51 = vld [vmem:[%s15241_s2 + $0x40c] sm:$0xf0]  ;;  %v8481_v59 = vld [vmem:[%s15241_s2 + $0x500] sm:$0xf] }
 0x1ae   : > { %v8354_v8 = vor.u32 %v9893_v51, %v8353_v48 }
 0x1af   : > { %v3018_v25 = vpop.f32.mrf.mxu0  ;;  %v3031_v37 = vpop.f32.mrf.mxu1 }
 0x1b0   : > { %5601 = vmatmul.bf16.vlgmr.msra.gmra.mxu0 %v12835_v44  ;;  %5614 = vmatmul.bf16.vlgmr.msra.gmra.mxu1 %v12846_v7  ;;  %v3019_v49 = vadd.f32 %v3018_v25, %v12771_v53  ;;  %v8402_v53 = vor.u32 %v9905_v26, %v8401_v22  ;;  %v10073_v25 = vld [vmem:[%s15241_s2 + $0x9ac] sm:$0xf0]  ;;  %v8946_v26 = vor.u32 %v10041_v18, %v8945_v16 }
 0x1b1   : > { %5645 = vmatpush.bf16.msrb.mxu0 %v8466_v61  ;;  %5658 = vmatpush.bf16.msrb.mxu1 %v8594_v63  ;;  %v9925_v61 = vld [vmem:[%s15241_s2 + $0x50c] sm:$0xf0]  ;;  %v8977_v63 = vld [vmem:[%s15241_s2 + $0x8e0] sm:$0xf] }
 0x1b2   : > { %v3032_v24 = vadd.f32 %v3031_v37, %v3019_v49  ;;  %v9857_v49 = vld [vmem:[%s15241_s2 + $0x2ec] sm:$0xf0] }
 0x1b3   : > { %v9889_v22 = vld [vmem:[%s15241_s2 + $0x3ec] sm:$0xf0] }
 0x1b4   : > { %v10025_v18 = vld [vmem:[%s15241_s2 + $0x82c] sm:$0xf0] }
 0x1b5   : > { %5646 = vmatpush.bf16.msrb.mxu0 %v8450_v12  ;;  %5659 = vmatpush.bf16.msrb.mxu1 %v8578_v3  ;;  %v8482_v12 = vor.u32 %v9925_v61, %v8481_v59  ;;  %v8978_v3 = vor.u32 %v10049_v4, %v8977_v63  ;;  %v9881_v59 = vld [vmem:[%s15241_s2 + $0x3ac] sm:$0xf0]  ;;  %v8897_v63 = vld [vmem:[%s15241_s2 + $0x840] sm:$0xf] }
 0x1b6   : > { %v3044_v35 = vpop.f32.mrf.mxu2  ;;  %v3057_v38 = vpop.f32.mrf.mxu3 }
 0x1b7   : > { %v3045_v62 = vadd.f32 %v3044_v35, %v3032_v24  ;;  %v3020_v39 = vpop.f32.mrf.mxu0  ;;  %v3033_v1 = vpop.f32.mrf.mxu1  ;;  %v9074_v24 = vor.u32 %v10073_v25, %v9073_v20  ;;  %v8194_v35 = vor.u32 %v9853_v33, %v8193_v29  ;;  %v9009_v20 = vld [vmem:[%s15241_s2 + $0x920] sm:$0xf]  ;;  %v10057_v25 = vld [vmem:[%s15241_s2 + $0x92c] sm:$0xf0] }
 0x1b8   : > { %v10065_v1 = vld [vmem:[%s15241_s2 + $0x96c] sm:$0xf0]  ;;  %v9010_v29 = vor.u32 %v10057_v25, %v9009_v20  ;;  %v9815_v20 = vld [vmem:[%s15241_s2 + $0x1a4] sm:$0xf]  ;;  %v8051_v25 = vld [vmem:[%s15241_s2 + $0x1b0] sm:$0xf0] }
 0x1b9   : > { %5647 = vmatpush.bf16.msrb.mxu0 %v8434_v14  ;;  %5660 = vmatpush.bf16.msrb.mxu1 %v8562_v15  ;;  %v12898_v41 = vadd.f32 %v3057_v38, %v3045_v62  ;;  %v10077_v14 = vld [vmem:[%s15241_s2 + $0x9cc] sm:$0xf0]  ;;  %v8962_v15 = vor.u32 %v10045_v10, %v8961_v5  ;;  %v9042_v54 = vor.u32 %v10065_v1, %v9041_v55 }
 0x1ba   : > { %v9090_v17 = vor.u32 %v10077_v14, %v9089_v13  ;;  %v9885_v62 = vld [vmem:[%s15241_s2 + $0x3cc] sm:$0xf0]  ;;  %v8898_v13 = vor.u32 %v10029_v0, %v8897_v63  ;;  %v8881_v14 = vld [vmem:[%s15241_s2 + $0x820] sm:$0xf]  ;;  %v7939_v0 = vld [vmem:[%s15241_s2 + $0xd0] sm:$0xf0] }
 0x1bb   : > { %v8322_v39 = vor.u32 %v9885_v62, %v8321_v34  ;;  %v9877_v10 = vld [vmem:[%s15241_s2 + $0x38c] sm:$0xf0]  ;;  %v9791_v34 = vld [vmem:[%s15241_s2 + $0xe4] sm:$0xf]  ;;  %v8129_v62 = vld [vmem:[%s15241_s2 + $0x240] sm:$0xf] }
 0x1bc   : > { %v10053_v33 = vld [vmem:[%s15241_s2 + $0x90c] sm:$0xf0] }
 0x1bd   : > { %5648 = vmatpush.bf16.msrb.mxu0 %v8418_v11  ;;  %5661 = vmatpush.bf16.msrb.mxu1 %v8546_v21  ;;  %v8209_v11 = vld [vmem:[%s15241_s2 + $0x2e0] sm:$0xf]  ;;  %v9869_v1 = vld [vmem:[%s15241_s2 + $0x34c] sm:$0xf0] }
 0x1be   : > { %v3046_v9 = vpop.f32.mrf.mxu2  ;;  %v3059_v56 = vpop.f32.mrf.mxu3  ;;  %v8337_v21 = vld [vmem:[%s15241_s2 + $0x3e0] sm:$0xf]  ;;  %v8210_v37 = vor.u32 %v9857_v49, %v8209_v11 }
 0x1bf   : > { %v8338_v50 = vor.u32 %v9889_v22, %v8337_v21  ;;  %v9025_v9 = vld [vmem:[%s15241_s2 + $0x940] sm:$0xf]  ;;  %v9841_v21 = vld [vmem:[%s15241_s2 + $0x26c] sm:$0xf0]  ;;  %v3269_v22 = vrot.slane %v3237_v58, 1 }
 0x1c0   : > { %5619 = vmatpush.bf16.msra.mxu2 %v8210_v37  ;;  %v8161_v56 = vld [vmem:[%s15241_s2 + $0x280] sm:$0xf] }
 0x1c1   : > { %5649 = vmatpush.bf16.msrb.mxu0 %v8402_v53  ;;  %5662 = vmatpush.bf16.msrb.mxu1 %v8530_v27  ;;  %v10037_v53 = vld [vmem:[%s15241_s2 + $0x88c] sm:$0xf0]  ;;  %v9057_v27 = vld [vmem:[%s15241_s2 + $0x980] sm:$0xf] }
 0x1c2   : > { %5632 = vmatpush.bf16.msra.mxu3 %v8338_v50  ;;  %v8930_v38 = vor.u32 %v10037_v53, %v8929_v30  ;;  %v8145_v49 = vld [vmem:[%s15241_s2 + $0x260] sm:$0xf]  ;;  %v8882_v53 = vor.u32 %v10025_v18, %v8881_v14  ;;  %v9783_v14 = vld [vmem:[%s15241_s2 + $0xa4] sm:$0xf]  ;;  %v7923_v18 = vld [vmem:[%s15241_s2 + $0xb0] sm:$0xf0] }
 0x1c3   : > { %v8273_v37 = vld [vmem:[%s15241_s2 + $0x360] sm:$0xf]  ;;  %v8146_v50 = vor.u32 %v9841_v21, %v8145_v49  ;;  %v9829_v49 = vld [vmem:[%s15241_s2 + $0x20c] sm:$0xf0] }
 0x1c4   : > { %5620 = vmatpush.bf16.msra.mxu2 %v8194_v35  ;;  %v8993_v58 = vld [vmem:[%s15241_s2 + $0x900] sm:$0xf]  ;;  %v7955_v35 = vld [vmem:[%s15241_s2 + $0xf0] sm:$0xf0] }
 0x1c5   : > { %5650 = vmatpush.bf16.msrb.mxu0 %v8386_v57  ;;  %5663 = vmatpush.bf16.msrb.mxu1 %v8514_v40  ;;  %v8913_v57 = vld [vmem:[%s15241_s2 + $0x860] sm:$0xf]  ;;  %v9058_v40 = vor.u32 %v10069_v28, %v9057_v27  ;;  %v10021_v28 = vld [vmem:[%s15241_s2 + $0x80c] sm:$0xf0] }
 0x1c6   : > { %5633 = vmatpush.bf16.msra.mxu3 %v8322_v39  ;;  %v8914_v61 = vor.u32 %v10033_v2, %v8913_v57  ;;  %v8865_v27 = vld [vmem:[%s15241_s2 + $0x800] sm:$0xf]  ;;  %v9823_v39 = vld [vmem:[%s15241_s2 + $0x1e4] sm:$0xf] }
 0x1c7   : > { %v8257_v57 = vld [vmem:[%s15241_s2 + $0x340] sm:$0xf] }
 0x1c8   : > { %v8225_v21 = vld [vmem:[%s15241_s2 + $0x300] sm:$0xf] }
 0x1c9   : > { %5651 = vmatpush.bf16.msrb.mxu0 %v8370_v45  ;;  %5664 = vmatpush.bf16.msrb.mxu1 %v8498_v46  ;;  %v9849_v45 = vld [vmem:[%s15241_s2 + $0x2ac] sm:$0xf0]  ;;  %v8305_v46 = vld [vmem:[%s15241_s2 + $0x3a0] sm:$0xf] }
 0x1ca   : > { %v8178_v51 = vor.u32 %v9849_v45, %v8177_v43  ;;  %v8306_v4 = vor.u32 %v9881_v59, %v8305_v46  ;;  %v8866_v43 = vor.u32 %v10021_v28, %v8865_v27  ;;  %v3270_v45 = vor.u32 %v3269_v22, %v3234_v23  ;;  %v9819_v23 = vld [vmem:[%s15241_s2 + $0x1c4] sm:$0xf]  ;;  %v9861_v22 = vld [vmem:[%s15241_s2 + $0x30c] sm:$0xf0]  ;;  %v8849_v27 = vld [vmem:[%s15241_s2 + $0x7e0] sm:$0xf] }
 0x1cb   : > { %v8994_v59 = vor.u32 %v10053_v33, %v8993_v58  ;;  %v10017_v28 = vld [vmem:[%s15241_s2 + $0x7ec] sm:$0xf0]  ;;  %v8054_v58 = vor.u32 %v9815_v20, %v8051_v25 }
 0x1cc   : > { %5621 = vmatpush.bf16.msra.mxu2 %v8178_v51  ;;  %5634 = vmatpush.bf16.msra.mxu3 %v8306_v4  ;;  %v8258_v51 = vor.u32 %v9869_v1, %v8257_v57  ;;  %v9787_v4 = vld [vmem:[%s15241_s2 + $0xc4] sm:$0xf]  ;;  %v8850_v33 = vor.u32 %v10017_v28, %v8849_v27  ;;  %v9981_v57 = vld [vmem:[%s15241_s2 + $0x6cc] sm:$0xf0]  ;;  %v8657_v27 = vld [vmem:[%s15241_s2 + $0x660] sm:$0xf] }
 0x1cd   : > { %5652 = vmatpush.bf16.msrb.mxu0 %v8354_v8  ;;  %5665 = vmatpush.bf16.msrb.mxu1 %v8482_v12  ;;  %v10061_v8 = vld [vmem:[%s15241_s2 + $0x94c] sm:$0xf0] }
 0x1ce   : > { %v9845_v12 = vld [vmem:[%s15241_s2 + $0x28c] sm:$0xf0] }
 0x1cf   : > { %v13004_v42 = vpop.f32.mrf.mxu0  ;;  %v13015_v48 = vpop.f32.mrf.mxu1  ;;  %v8162_v5 = vor.u32 %v9845_v12, %v8161_v56  ;;  %v8241_v56 = vld [vmem:[%s15241_s2 + $0x320] sm:$0xf]  ;;  %v9969_v28 = vld [vmem:[%s15241_s2 + $0x66c] sm:$0xf0] }
 0x1d0   : > { %5653 = vmatmul.bf16.vlgmr.msrb.gmra.mxu0 %v12755_v19  ;;  %5666 = vmatmul.bf16.vlgmr.msrb.gmra.mxu1 %v12769_v31 }
 0x1d1   : > { %5697 = vmatpush.bf16.msra.mxu0 %v8978_v3  ;;  %5710 = vmatpush.bf16.msra.mxu1 %v9106_v32  ;;  %v8289_v3 = vld [vmem:[%s15241_s2 + $0x380] sm:$0xf] }
 0x1d2   : > { %v8290_v16 = vor.u32 %v9877_v10, %v8289_v3  ;;  %5622 = vmatpush.bf16.msra.mxu2 %v8162_v5  ;;  %v9865_v3 = vld [vmem:[%s15241_s2 + $0x32c] sm:$0xf0]  ;;  %v13142_v5 = vsel %vm10893_vm5, %v3270_v45, 0  ;;  %v9807_v45 = vld [vmem:[%s15241_s2 + $0x164] sm:$0xf] }
 0x1d4   : > { %5635 = vmatpush.bf16.msra.mxu3 %v8290_v16  ;;  %v8242_v16 = vor.u32 %v9865_v3, %v8241_v56  ;;  %v9803_v3 = vld [vmem:[%s15241_s2 + $0x144] sm:$0xf] }
 0x1d5   : > { %5698 = vmatpush.bf16.msra.mxu0 %v8962_v15  ;;  %5711 = vmatpush.bf16.msra.mxu1 %v9090_v17  ;;  %v9026_v17 = vor.u32 %v10061_v8, %v9025_v9  ;;  %v8067_v9 = vld [vmem:[%s15241_s2 + $0x1d0] sm:$0xf0]  ;;  %v9833_v8 = vld [vmem:[%s15241_s2 + $0x22c] sm:$0xf0] }
 0x1d6   : > { %v13041_v32 = vpop.f32.mrf.mxu2  ;;  %v13049_v15 = vpop.f32.mrf.mxu3  ;;  %5623 = vmatpush.bf16.msra.mxu2 %v8146_v50  ;;  %v7926_v50 = vor.u32 %v9783_v14, %v7923_v18  ;;  %v8801_v18 = vld [vmem:[%s15241_s2 + $0x780] sm:$0xf] }
 0x1d7   : > { %v3072_v11 = vpop.f32.mrf.mxu0  ;;  %v3085_v30 = vpop.f32.mrf.mxu1 }
 0x1d8   : > { %v8097_v11 = vld [vmem:[%s15241_s2 + $0x200] sm:$0xf]  ;;  %v9985_v30 = vld [vmem:[%s15241_s2 + $0x6ec] sm:$0xf0] }
 0x1d9   : > { %5699 = vmatpush.bf16.msra.mxu0 %v8946_v26  ;;  %5712 = vmatpush.bf16.msra.mxu1 %v9074_v24  ;;  %v3271_v26 = vrot.slane %v3244_v60, 1  ;;  %v9873_v24 = vld [vmem:[%s15241_s2 + $0x36c] sm:$0xf0] }
 0x1da   : > { %v8274_v60 = vor.u32 %v9873_v24, %v8273_v37  ;;  %v8098_v37 = vor.u32 %v9829_v49, %v8097_v11  ;;  %v8226_v24 = vor.u32 %v9861_v22, %v8225_v21  ;;  %v7859_v22 = vld [vmem:[%s15241_s2 + $0x30] sm:$0xf0] }
 0x1db   : > { %v3272_v63 = vor.u32 %v3271_v26, %v3241_v36  ;;  %v8113_v36 = vld [vmem:[%s15241_s2 + $0x220] sm:$0xf] }
 0x1dc   : > { %5636 = vmatpush.bf16.msra.mxu3 %v8274_v60  ;;  %v8114_v12 = vor.u32 %v9833_v8, %v8113_v36  ;;  %v8721_v26 = vld [vmem:[%s15241_s2 + $0x6e0] sm:$0xf]  ;;  %v9779_v60 = vld [vmem:[%s15241_s2 + $0x84] sm:$0xf] }
 0x1dd   : > { %5700 = vmatpush.bf16.msra.mxu0 %v8930_v38  ;;  %5713 = vmatpush.bf16.msra.mxu1 %v9058_v40  ;;  %v9837_v38 = vld [vmem:[%s15241_s2 + $0x24c] sm:$0xf0]  ;;  %v8083_v40 = vld [vmem:[%s15241_s2 + $0x1f0] sm:$0xf0]  ;;  %v13146_v10 = vsel %vm10893_vm5, %v3272_v63, 0 }
 0x1de   : > { %v3098_v2 = vpop.f32.mrf.mxu2  ;;  %v8130_v55 = vor.u32 %v9837_v38, %v8129_v62  ;;  %v3111_v46 = vpop.f32.mrf.mxu3  ;;  %v8035_v62 = vld [vmem:[%s15241_s2 + $0x190] sm:$0xf0]  ;;  %v8705_v38 = vld [vmem:[%s15241_s2 + $0x6c0] sm:$0xf] }
 0x1df   : > { %v8706_v2 = vor.u32 %v9981_v57, %v8705_v38  ;;  %v8019_v46 = vld [vmem:[%s15241_s2 + $0x170] sm:$0xf0]  ;;  %v8817_v63 = vld [vmem:[%s15241_s2 + $0x7a0] sm:$0xf]  ;;  %v9795_v38 = vld [vmem:[%s15241_s2 + $0x104] sm:$0xf] }
 0x1e0   : > { %5624 = vmatpush.bf16.msra.mxu2 %v8130_v55  ;;  %5637 = vmatpush.bf16.msra.mxu3 %v8258_v51  ;;  %v10013_v55 = vld [vmem:[%s15241_s2 + $0x7cc] sm:$0xf0]  ;;  %v8022_v56 = vor.u32 %v9807_v45, %v8019_v46  ;;  %v7971_v57 = vld [vmem:[%s15241_s2 + $0x110] sm:$0xf0]  ;;  %v8769_v46 = vld [vmem:[%s15241_s2 + $0x740] sm:$0xf] }
 0x1e1   : > { %5701 = vmatpush.bf16.msra.mxu0 %v8914_v61  ;;  %5714 = vmatpush.bf16.msra.mxu1 %v9042_v54  ;;  %v7958_v61 = vor.u32 %v9791_v34, %v7955_v35  ;;  %v8086_v54 = vor.u32 %v9823_v39, %v8083_v40  ;;  %v668_v34 = vperm.slane %v12572_v52, 3  ;;  %v9811_v35 = vld [vmem:[%s15241_s2 + $0x184] sm:$0xf]  ;;  %v8833_v52 = vld [vmem:[%s15241_s2 + $0x7c0] sm:$0xf] }
 0x1e2   : > { %v9775_v40 = vld [vmem:[%s15241_s2 + $0x64] sm:$0xf]  ;;  %v8038_v1 = vor.u32 %v9811_v35, %v8035_v62  ;;  %v8834_v51 = vor.u32 %v10013_v55, %v8833_v52  ;;  %v10001_v35 = vld [vmem:[%s15241_s2 + $0x76c] sm:$0xf0]  ;;  %v8595_v55 = vld [vmem:[%s15241_s2 + $0x5f0] sm:$0xf0] }
 0x1e3   : > { %v9919_v52 = vld [vmem:[%s15241_s2 + $0x4e4] sm:$0xf]  ;;  %v9965_v45 = vld [vmem:[%s15241_s2 + $0x64c] sm:$0xf0] }
 0x1e4   : > { %5625 = vmatpush.bf16.msra.mxu2 %v8114_v12  ;;  %5638 = vmatpush.bf16.msra.mxu3 %v8242_v16  ;;  %v9771_v12 = vld [vmem:[%s15241_s2 + $0x44] sm:$0xf]  ;;  %v8673_v16 = vld [vmem:[%s15241_s2 + $0x680] sm:$0xf] }
 0x1e5   : > { %5702 = vmatpush.bf16.msra.mxu0 %v8898_v13  ;;  %5715 = vmatpush.bf16.msra.mxu1 %v9026_v17  ;;  %v7942_v13 = vor.u32 %v9787_v4, %v7939_v0  ;;  %v8070_v17 = vor.u32 %v9819_v23, %v8067_v9  ;;  %v3071_v4 = vadd.f32 %v13004_v42, %v668_v34  ;;  %v10009_v23 = vld [vmem:[%s15241_s2 + $0x7ac] sm:$0xf0]  ;;  %v7875_v42 = vld [vmem:[%s15241_s2 + $0x50] sm:$0xf0] }
 0x1e6   : > { %v8818_v8 = vor.u32 %v10009_v23, %v8817_v63  ;;  %v7878_v20 = vor.u32 %v9771_v12, %v7875_v42  ;;  %v8658_v34 = vor.u32 %v9969_v28, %v8657_v27  ;;  %v7974_v63 = vor.u32 %v9795_v38, %v7971_v57  ;;  %v9915_v23 = vld [vmem:[%s15241_s2 + $0x4c4] sm:$0xf]  ;;  %v8579_v42 = vld [vmem:[%s15241_s2 + $0x5d0] sm:$0xf0] }
 0x1e7   : > { %v3084_v14 = vadd.f32 %v13015_v48, %v3071_v4  ;;  %v10005_v48 = vld [vmem:[%s15241_s2 + $0x78c] sm:$0xf0]  ;;  %v9947_v12 = vld [vmem:[%s15241_s2 + $0x5c4] sm:$0xf] }
 0x1e8   : > { %5626 = vmatpush.bf16.msra.mxu2 %v8098_v37  ;;  %5639 = vmatpush.bf16.msra.mxu3 %v8226_v24  ;;  %v9767_v37 = vld [vmem:[%s15241_s2 + $0x24] sm:$0xf] }
 0x1e9   : > { %5703 = vmatpush.bf16.msra.mxu0 %v8882_v53  ;;  %5716 = vmatpush.bf16.msra.mxu1 %v9010_v29  ;;  %v8722_v53 = vor.u32 %v9985_v30, %v8721_v26  ;;  %v7907_v29 = vld [vmem:[%s15241_s2 + $0x90] sm:$0xf0]  ;;  %v8802_v26 = vor.u32 %v10005_v48, %v8801_v18  ;;  %v9799_v30 = vld [vmem:[%s15241_s2 + $0x124] sm:$0xf]  ;;  %v3097_v24 = vadd.f32 %v13041_v32, %v3084_v14  ;;  %v9961_v14 = vld [vmem:[%s15241_s2 + $0x62c] sm:$0xf0] }
 0x1ea   : > { %v7910_v39 = vor.u32 %v9779_v60, %v7907_v29  ;;  %v7862_v60 = vor.u32 %v9767_v37, %v7859_v22  ;;  %v9763_v32 = vld [vmem:[%s15241_s2 + $0x4] sm:$0xf]  ;;  %v9993_v18 = vld [vmem:[%s15241_s2 + $0x72c] sm:$0xf0]  ;;  %v8582_v48 = vor.u32 %v9947_v12, %v8579_v42  ;;  %v8563_v22 = vld [vmem:[%s15241_s2 + $0x5b0] sm:$0xf0] }
 0x1eb   : > { %v9943_v37 = vld [vmem:[%s15241_s2 + $0x5a4] sm:$0xf]  ;;  %v8499_v12 = vld [vmem:[%s15241_s2 + $0x530] sm:$0xf0] }
 0x1ec   : > { %5671 = vmatpush.bf16.msrb.mxu2 %v8722_v53  ;;  %5684 = vmatpush.bf16.msrb.mxu3 %v8850_v33  ;;  %v7843_v33 = vld [vmem:[%s15241_s2 + $0x10] sm:$0xf0]  ;;  %v9903_v38 = vld [vmem:[%s15241_s2 + $0x464] sm:$0xf] }
 0x1ed   : > { %5704 = vmatpush.bf16.msra.mxu0 %v8866_v43  ;;  %5717 = vmatpush.bf16.msra.mxu1 %v8994_v59  ;;  %v7891_v43 = vld [vmem:[%s15241_s2 + $0x70] sm:$0xf0]  ;;  %v8689_v59 = vld [vmem:[%s15241_s2 + $0x6a0] sm:$0xf] }
 0x1ee   : > { %v7894_v9 = vor.u32 %v9775_v40, %v7891_v43  ;;  %v8467_v40 = vld [vmem:[%s15241_s2 + $0x4f0] sm:$0xf0]  ;;  %v8641_v43 = vld [vmem:[%s15241_s2 + $0x640] sm:$0xf] }
 0x1ef   : > { %v13238_v36 = vpop.f32.mrf.mxu1  ;;  %v8470_v4 = vor.u32 %v9919_v52, %v8467_v40  ;;  %v8531_v40 = vld [vmem:[%s15241_s2 + $0x570] sm:$0xf0] }
 0x1f0   : > { %5705 = vmatmul.bf16.vlgmr.msra.gmra.mxu0 %v13142_v5  ;;  %5718 = vmatmul.bf16.vlgmr.msra.gmra.mxu1 %v13146_v10 }
 0x1f1   : > { %5749 = vmatpush.bf16.msrb.mxu0 %v7958_v61  ;;  %5762 = vmatpush.bf16.msrb.mxu1 %v8086_v54  ;;  %v9977_v61 = vld [vmem:[%s15241_s2 + $0x6ac] sm:$0xf0]  ;;  %v13233_v54 = vpop.f32.mrf.mxu0 }
 0x1f2   : > { %5672 = vmatpush.bf16.msrb.mxu2 %v8706_v2  ;;  %5685 = vmatpush.bf16.msrb.mxu3 %v8834_v51  ;;  %v8690_v0 = vor.u32 %v9977_v61, %v8689_v59  ;;  %v9951_v2 = vld [vmem:[%s15241_s2 + $0x5e4] sm:$0xf]  ;;  %v7846_v51 = vor.u32 %v9763_v32, %v7843_v33  ;;  %v8642_v61 = vor.u32 %v9965_v45, %v8641_v43 }
 0x1f3   : > { %v9939_v33 = vld [vmem:[%s15241_s2 + $0x584] sm:$0xf] }
 0x1f4   : > { %v9899_v45 = vld [vmem:[%s15241_s2 + $0x444] sm:$0xf] }
 0x1f5   : > { %5750 = vmatpush.bf16.msrb.mxu0 %v7942_v13  ;;  %5763 = vmatpush.bf16.msrb.mxu1 %v8070_v17  ;;  %v8003_v13 = vld [vmem:[%s15241_s2 + $0x150] sm:$0xf0]  ;;  %v9973_v17 = vld [vmem:[%s15241_s2 + $0x68c] sm:$0xf0] }
 0x1f6   : > { %5673 = vmatpush.bf16.msrb.mxu2 %v8690_v0  ;;  %5686 = vmatpush.bf16.msrb.mxu3 %v8818_v8  ;;  %v13262_v25 = vpop.f32.mrf.mxu2  ;;  %v8674_v11 = vor.u32 %v9973_v17, %v8673_v16  ;;  %v8006_v49 = vor.u32 %v9803_v3, %v8003_v13  ;;  %v13267_v21 = vpop.f32.mrf.mxu3  ;;  %v8598_v8 = vor.u32 %v9951_v2, %v8595_v55  ;;  %v8625_v13 = vld [vmem:[%s15241_s2 + $0x620] sm:$0xf] }
 0x1f7   : > { %v3137_v29 = vpop.f32.mrf.mxu1  ;;  %v8753_v16 = vld [vmem:[%s15241_s2 + $0x720] sm:$0xf]  ;;  %v8626_v17 = vor.u32 %v9961_v14, %v8625_v13  ;;  %v9891_v14 = vld [vmem:[%s15241_s2 + $0x404] sm:$0xf] }
 0x1f8   : > { %v8419_v29 = vld [vmem:[%s15241_s2 + $0x490] sm:$0xf0] }
 0x1f9   : > { %5751 = vmatpush.bf16.msrb.mxu0 %v7926_v50  ;;  %5764 = vmatpush.bf16.msrb.mxu1 %v8054_v58  ;;  %v7987_v50 = vld [vmem:[%s15241_s2 + $0x130] sm:$0xf0]  ;;  %v3124_v53 = vpop.f32.mrf.mxu0  ;;  %v8785_v58 = vld [vmem:[%s15241_s2 + $0x760] sm:$0xf] }
 0x1fa   : > { %5674 = vmatpush.bf16.msrb.mxu2 %v8674_v11  ;;  %5687 = vmatpush.bf16.msrb.mxu3 %v8802_v26  ;;  %v7990_v62 = vor.u32 %v9799_v30, %v7987_v50  ;;  %v8754_v11 = vor.u32 %v9993_v18, %v8753_v16  ;;  %v8609_v30 = vld [vmem:[%s15241_s2 + $0x600] sm:$0xf]  ;;  %v9957_v50 = vld [vmem:[%s15241_s2 + $0x60c] sm:$0xf0]  ;;  %v9923_v18 = vld [vmem:[%s15241_s2 + $0x504] sm:$0xf] }
 0x1fb   : > { %v8610_v53 = vor.u32 %v9957_v50, %v8609_v30 }
 0x1fd   : > { %5752 = vmatpush.bf16.msrb.mxu0 %v7910_v39  ;;  %5765 = vmatpush.bf16.msrb.mxu1 %v8038_v1  ;;  %v8786_v39 = vor.u32 %v10001_v35, %v8785_v58  ;;  %v3110_v1 = vadd.f32 %v13049_v15, %v3097_v24  ;;  %v9997_v15 = vld [vmem:[%s15241_s2 + $0x74c] sm:$0xf0]  ;;  %v8737_v24 = vld [vmem:[%s15241_s2 + $0x700] sm:$0xf]  ;;  %v8566_v58 = vor.u32 %v9943_v37, %v8563_v22  ;;  %v10079_v37 = vld [vmem:[%s15241_s2 + $0x9e4] sm:$0xf] }
 0x1fe   : > { %5675 = vmatpush.bf16.msrb.mxu2 %v8658_v34  ;;  %v3150_v59 = vpop.f32.mrf.mxu2  ;;  %v3163_v0 = vpop.f32.mrf.mxu3  ;;  %v8547_v34 = vld [vmem:[%s15241_s2 + $0x590] sm:$0xf0] }
 0x1ff   : > { %5688 = vmatpush.bf16.msrb.mxu3 %v8786_v39  ;;  %v3123_v3 = vadd.f32 %v13233_v54, %v3110_v1  ;;  %v9935_v39 = vld [vmem:[%s15241_s2 + $0x564] sm:$0xf]  ;;  %v8371_v0 = vld [vmem:[%s15241_s2 + $0x430] sm:$0xf0] }
 0x200   : > { %v8534_v43 = vor.u32 %v9935_v39, %v8531_v40  ;;  %v9107_v22 = vld [vmem:[%s15241_s2 + $0x9f0] sm:$0xf0]  ;;  %v9361_v39 = vld [vmem:[%s15241_s2 + $0xbe0] sm:$0xf]  ;;  %v10145_v40 = vld [vmem:[%s15241_s2 + $0xbec] sm:$0xf0] }
 0x201   : > { %5753 = vmatpush.bf16.msrb.mxu0 %v7894_v9  ;;  %5766 = vmatpush.bf16.msrb.mxu1 %v8022_v56  ;;  %v8770_v9 = vor.u32 %v9997_v15, %v8769_v46  ;;  %v8451_v56 = vld [vmem:[%s15241_s2 + $0x4d0] sm:$0xf0]  ;;  %v3136_v26 = vadd.f32 %v13238_v36, %v3123_v3  ;;  %v9989_v36 = vld [vmem:[%s15241_s2 + $0x70c] sm:$0xf0]  ;;  %v9931_v46 = vld [vmem:[%s15241_s2 + $0x544] sm:$0xf] }
 0x202   : > { %5676 = vmatpush.bf16.msrb.mxu2 %v8642_v61  ;;  %v8454_v54 = vor.u32 %v9915_v23, %v8451_v56  ;;  %v8738_v28 = vor.u32 %v9989_v36, %v8737_v24  ;;  %v9927_v56 = vld [vmem:[%s15241_s2 + $0x524] sm:$0xf] }
 0x203   : > { %5689 = vmatpush.bf16.msrb.mxu3 %v8770_v9  ;;  %v3149_v32 = vadd.f32 %v13262_v25, %v3136_v26  ;;  %v8403_v25 = vld [vmem:[%s15241_s2 + $0x470] sm:$0xf0]  ;;  %v8502_v16 = vor.u32 %v9927_v56, %v8499_v12  ;;  %v10141_v56 = vld [vmem:[%s15241_s2 + $0xbcc] sm:$0xf0]  ;;  %v10035_v12 = vld [vmem:[%s15241_s2 + $0x884] sm:$0xf] }
 0x204   : > { %v8406_v1 = vor.u32 %v9903_v38, %v8403_v25  ;;  %v10113_v38 = vld [vmem:[%s15241_s2 + $0xaec] sm:$0xf0] }
 0x205   : > { %5754 = vmatpush.bf16.msrb.mxu0 %v7878_v20  ;;  %5767 = vmatpush.bf16.msrb.mxu1 %v8006_v49  ;;  %v9911_v20 = vld [vmem:[%s15241_s2 + $0x4a4] sm:$0xf]  ;;  %v8435_v49 = vld [vmem:[%s15241_s2 + $0x4b0] sm:$0xf0]  ;;  %v3162_v57 = vadd.f32 %v13267_v21, %v3149_v32 }
 0x206   : > { %5677 = vmatpush.bf16.msrb.mxu2 %v8626_v17  ;;  %v8438_v27 = vor.u32 %v9911_v20, %v8435_v49  ;;  %v8387_v21 = vld [vmem:[%s15241_s2 + $0x450] sm:$0xf0]  ;;  %v3219_v20 = vmax.f32 %v12898_v41, 0.0 }
 0x207   : > { %5690 = vmatpush.bf16.msrb.mxu3 %v8754_v11  ;;  %v8390_v61 = vor.u32 %v9899_v45, %v8387_v21  ;;  %v8355_v17 = vld [vmem:[%s15241_s2 + $0x410] sm:$0xf0] }
 0x208   : > { %v8979_v49 = vld [vmem:[%s15241_s2 + $0x8f0] sm:$0xf0]  ;;  %v8358_v41 = vor.u32 %v9891_v14, %v8355_v17  ;;  %v10067_v14 = vld [vmem:[%s15241_s2 + $0x984] sm:$0xf] }
 0x209   : > { %5755 = vmatpush.bf16.msrb.mxu0 %v7862_v60  ;;  %5768 = vmatpush.bf16.msrb.mxu1 %v7990_v62  ;;  %v9907_v60 = vld [vmem:[%s15241_s2 + $0x484] sm:$0xf]  ;;  %v8550_v62 = vor.u32 %v9939_v33, %v8547_v34  ;;  %v9091_v32 = vld [vmem:[%s15241_s2 + $0x9d0] sm:$0xf0] }
 0x20a   : > { %5678 = vmatpush.bf16.msrb.mxu2 %v8610_v53  ;;  %v8422_v35 = vor.u32 %v9907_v60, %v8419_v29  ;;  %v8963_v60 = vld [vmem:[%s15241_s2 + $0x8d0] sm:$0xf0]  ;;  %v10075_v29 = vld [vmem:[%s15241_s2 + $0x9c4] sm:$0xf] }
 0x20b   : > { %5691 = vmatpush.bf16.msrb.mxu3 %v8738_v28  ;;  %v9110_v28 = vor.u32 %v10079_v37, %v9107_v22  ;;  %v9094_v25 = vor.u32 %v10075_v29, %v9091_v32  ;;  %v10031_v37 = vld [vmem:[%s15241_s2 + $0x864] sm:$0xf]  ;;  %v9313_v29 = vld [vmem:[%s15241_s2 + $0xb80] sm:$0xf]  ;;  %v10133_v32 = vld [vmem:[%s15241_s2 + $0xb8c] sm:$0xf0] }
 0x20d   : > { %5756 = vmatpush.bf16.msrb.mxu0 %v7846_v51  ;;  %5769 = vmatpush.bf16.msrb.mxu1 %v7974_v63  ;;  %v8515_v51 = vld [vmem:[%s15241_s2 + $0x550] sm:$0xf0] }
 0x20e   : > { %v8518_v63 = vor.u32 %v9931_v46, %v8515_v51  ;;  %v9075_v51 = vld [vmem:[%s15241_s2 + $0x9b0] sm:$0xf0] }
 0x20f   : > { %v3174_v52 = vpop.f32.mrf.mxu0  ;;  %v3187_v2 = vpop.f32.mrf.mxu1 }
 0x210   : > { %5757 = vmatmul.bf16.vlgmr.msrb.gmra.mxu0 %v12835_v44  ;;  %5770 = vmatmul.bf16.vlgmr.msrb.gmra.mxu1 %v12846_v7  ;;  %v3175_v55 = vadd.f32 %v3174_v52, %v3162_v57 }
 0x211   : > { %5801 = vmatpush.bf16.msra.mxu0 %v8470_v4  ;;  %5814 = vmatpush.bf16.msra.mxu1 %v8598_v8  ;;  %v9895_v4 = vld [vmem:[%s15241_s2 + $0x424] sm:$0xf] }
 0x212   : > { %v3188_v59 = vadd.f32 %v3187_v2, %v3175_v55  ;;  %v8374_v13 = vor.u32 %v9895_v4, %v8371_v0  ;;  %v10039_v2 = vld [vmem:[%s15241_s2 + $0x8a4] sm:$0xf]  ;;  %v8947_v55 = vld [vmem:[%s15241_s2 + $0x8b0] sm:$0xf0]  ;;  %v9217_v4 = vld [vmem:[%s15241_s2 + $0xac0] sm:$0xf] }
 0x213   : > { %v10109_v0 = vld [vmem:[%s15241_s2 + $0xacc] sm:$0xf0] }
 0x214   : > { %v9218_v17 = vor.u32 %v10109_v0, %v9217_v4  ;;  %v9011_v4 = vld [vmem:[%s15241_s2 + $0x930] sm:$0xf0] }
 0x215   : > { %5802 = vmatpush.bf16.msra.mxu0 %v8454_v54  ;;  %5815 = vmatpush.bf16.msra.mxu1 %v8582_v48  ;;  %v8483_v54 = vld [vmem:[%s15241_s2 + $0x510] sm:$0xf0]  ;;  %v10047_v48 = vld [vmem:[%s15241_s2 + $0x8e4] sm:$0xf] }
 0x216   : > { %v3200_v15 = vpop.f32.mrf.mxu2  ;;  %v3213_v9 = vpop.f32.mrf.mxu3  ;;  %v8486_v50 = vor.u32 %v9923_v18, %v8483_v54  ;;  %v8982_v24 = vor.u32 %v10047_v48, %v8979_v49  ;;  %v10105_v54 = vld [vmem:[%s15241_s2 + $0xaac] sm:$0xf0]  ;;  %v9329_v48 = vld [vmem:[%s15241_s2 + $0xba0] sm:$0xf] }
 0x217   : > { %v3201_v23 = vadd.f32 %v3200_v15, %v3188_v59  ;;  %v3176_v8 = vpop.f32.mrf.mxu0  ;;  %v3189_v42 = vpop.f32.mrf.mxu1  ;;  %v10137_v49 = vld [vmem:[%s15241_s2 + $0xbac] sm:$0xf0] }
 0x218   : > { %v8931_v42 = vld [vmem:[%s15241_s2 + $0x890] sm:$0xf0] }
 0x219   : > { %5803 = vmatpush.bf16.msra.mxu0 %v8438_v27  ;;  %5816 = vmatpush.bf16.msra.mxu1 %v8566_v58  ;;  %v3214_v3 = vadd.f32 %v3213_v9, %v3201_v23  ;;  %v10043_v58 = vld [vmem:[%s15241_s2 + $0x8c4] sm:$0xf]  ;;  %v9345_v23 = vld [vmem:[%s15241_s2 + $0xbc0] sm:$0xf]  ;;  %v8950_v9 = vor.u32 %v10039_v2, %v8947_v55  ;;  %v10097_v55 = vld [vmem:[%s15241_s2 + $0xa6c] sm:$0xf0] }
 0x21a   : > { %v9346_v18 = vor.u32 %v10141_v56, %v9345_v23  ;;  %v9169_v2 = vld [vmem:[%s15241_s2 + $0xa60] sm:$0xf]  ;;  %v10093_v56 = vld [vmem:[%s15241_s2 + $0xa4c] sm:$0xf0] }
 0x21b   : > { %v3220_v11 = vmax.f32 %v3214_v3, 0.0  ;;  %v9170_v23 = vor.u32 %v10097_v55, %v9169_v2 }
 0x21d   : > { %5804 = vmatpush.bf16.msra.mxu0 %v8422_v35  ;;  %5817 = vmatpush.bf16.msra.mxu1 %v8550_v62  ;;  %v3222_v26 = vpack.c.bf16 %v3220_v11, %v3219_v20  ;;  %v8966_v35 = vor.u32 %v10043_v58, %v8963_v60  ;;  %v9233_v62 = vld [vmem:[%s15241_s2 + $0xae0] sm:$0xf]  ;;  %v8934_v20 = vor.u32 %v10035_v12, %v8931_v42 }
 0x21e   : > { %v3202_v30 = vpop.f32.mrf.mxu2  ;;  %v3215_v27 = vpop.f32.mrf.mxu3  ;;  %v9234_v15 = vor.u32 %v10113_v38, %v9233_v62  ;;  %v8899_v62 = vld [vmem:[%s15241_s2 + $0x850] sm:$0xf0]  ;;  %v10059_v38 = vld [vmem:[%s15241_s2 + $0x944] sm:$0xf]  ;;  %v9281_v12 = vld [vmem:[%s15241_s2 + $0xb40] sm:$0xf] }
 0x21f   : > { %v3227_v53 = vunpack.c.l.b16 %v3222_v26  ;;  %v3228_v36 = vunpack.c.h.b16 %v3222_v26  ;;  %v8915_v26 = vld [vmem:[%s15241_s2 + $0x870] sm:$0xf0]  ;;  %v9185_v27 = vld [vmem:[%s15241_s2 + $0xa80] sm:$0xf] }
 0x220   : > { %v9043_v30 = vld [vmem:[%s15241_s2 + $0x970] sm:$0xf0]  ;;  %v8918_v58 = vor.u32 %v10031_v37, %v8915_v26 }
 0x221   : > { %5805 = vmatpush.bf16.msra.mxu0 %v8406_v1  ;;  %5818 = vmatpush.bf16.msra.mxu1 %v8534_v43  ;;  %v13470_v33 = vpack.c.b16 %v3227_v53, %v3227_v53  ;;  %v13472_v34 = vpack.c.b16 %v3228_v36, %v3228_v36  ;;  %v10071_v1 = vld [vmem:[%s15241_s2 + $0x9a4] sm:$0xf]  ;;  %v9202_v53 = vor.u32 %v10105_v54, %v9201_v6  ;;  %v8995_v54 = vld [vmem:[%s15241_s2 + $0x910] sm:$0xf0] }
 0x222   : > { %v9078_v8 = vor.u32 %v10071_v1, %v9075_v51  ;;  %v9330_v36 = vor.u32 %v10137_v49, %v9329_v48  ;;  %v10129_v51 = vld [vmem:[%s15241_s2 + $0xb6c] sm:$0xf0]  ;;  %v10051_v6 = vld [vmem:[%s15241_s2 + $0x904] sm:$0xf]  ;;  %v8089_v48 = vld [vmem:[%s15241_s2 + $0x1e8] sm:$0xf] }
 0x223   : > { %v3248_v57 = vshrl.u32 %v13470_v33, 16  ;;  %v3255_v52 = vshrl.u32 %v13472_v34, 16  ;;  %v3251_v45 = vshll.u32 %v13470_v33, 16  ;;  %v3258_v46 = vshll.u32 %v13472_v34, 16  ;;  %v9826_v49 = vld [vmem:[%s15241_s2 + $0x1f4] sm:$0xf0] }
 0x225   : > { %5806 = vmatpush.bf16.msra.mxu0 %v8390_v61  ;;  %5819 = vmatpush.bf16.msra.mxu1 %v8518_v63  ;;  %v3250_v43 = vrot.slane %v3248_v57, 7  ;;  %v3257_v21 = vrot.slane %v3255_v52, 7  ;;  %v9362_v63 = vor.u32 %v10145_v40, %v9361_v39  ;;  %v9314_v40 = vor.u32 %v10133_v32, %v9313_v29  ;;  %v8073_v29 = vld [vmem:[%s15241_s2 + $0x1c8] sm:$0xf]  ;;  %v9822_v32 = vld [vmem:[%s15241_s2 + $0x1d4] sm:$0xf0] }
 0x226   : > { %v8074_v55 = vor.u32 %v9822_v32, %v8073_v29  ;;  %v9843_v32 = vld [vmem:[%s15241_s2 + $0x284] sm:$0xf] }
 0x227   : > { %v3253_v59 = vor.u32 %v3251_v45, %v3250_v43  ;;  %v3260_v61 = vor.u32 %v3258_v46, %v3257_v21  ;;  %v9297_v21 = vld [vmem:[%s15241_s2 + $0xb60] sm:$0xf] }
 0x229   : > { %5807 = vmatpush.bf16.msra.mxu0 %v8374_v13  ;;  %5820 = vmatpush.bf16.msra.mxu1 %v8502_v16  ;;  %v13532_v3 = vsel %vm10595_vm2, 0, %v3253_v59  ;;  %v13536_v13 = vsel %vm10595_vm2, 0, %v3260_v61  ;;  %v9059_v16 = vld [vmem:[%s15241_s2 + $0x990] sm:$0xf0]  ;;  %v10023_v59 = vld [vmem:[%s15241_s2 + $0x824] sm:$0xf] }
 0x22a   : > { %5627 = vmatmul.bf16.vlgmr.msra.gmra.mxu2 %v13532_v3  ;;  %5640 = vmatmul.bf16.vlgmr.msra.gmra.mxu3 %v13536_v13  ;;  %v9062_v11 = vor.u32 %v10067_v14, %v9059_v16  ;;  %v10125_v16 = vld [vmem:[%s15241_s2 + $0xb4c] sm:$0xf0] }
 0x22b   : > { %5723 = vmatpush.bf16.msra.mxu2 %v9234_v15  ;;  %5736 = vmatpush.bf16.msra.mxu3 %v9362_v63  ;;  %v8883_v15 = vld [vmem:[%s15241_s2 + $0x830] sm:$0xf0]  ;;  %v10055_v63 = vld [vmem:[%s15241_s2 + $0x924] sm:$0xf] }
 0x22c   : > { %v8886_v42 = vor.u32 %v10023_v59, %v8883_v15  ;;  %v9014_v14 = vor.u32 %v10055_v63, %v9011_v4  ;;  %v9887_v59 = vld [vmem:[%s15241_s2 + $0x3e4] sm:$0xf]  ;;  %v7929_v15 = vld [vmem:[%s15241_s2 + $0xa8] sm:$0xf]  ;;  %v9818_v63 = vld [vmem:[%s15241_s2 + $0x1b4] sm:$0xf0] }
 0x22d   : > { %5808 = vmatpush.bf16.msra.mxu0 %v8358_v41  ;;  %5821 = vmatpush.bf16.msra.mxu1 %v8486_v50  ;;  %v5602_v22 = vpop.f32.mrf.mxu0  ;;  %v10063_v41 = vld [vmem:[%s15241_s2 + $0x964] sm:$0xf]  ;;  %v5615_v50 = vpop.f32.mrf.mxu1 }
 0x22e   : > { %v9046_v60 = vor.u32 %v10063_v41, %v9043_v30  ;;  %v8998_v41 = vor.u32 %v10051_v6, %v8995_v54  ;;  %v9137_v30 = vld [vmem:[%s15241_s2 + $0xa20] sm:$0xf]  ;;  %v8041_v6 = vld [vmem:[%s15241_s2 + $0x188] sm:$0xf]  ;;  %v9814_v54 = vld [vmem:[%s15241_s2 + $0x194] sm:$0xf0] }
 0x22f   : > { %5724 = vmatpush.bf16.msra.mxu2 %v9218_v17  ;;  %5737 = vmatpush.bf16.msra.mxu3 %v9346_v18  ;;  %v10019_v17 = vld [vmem:[%s15241_s2 + $0x804] sm:$0xf]  ;;  %v8867_v18 = vld [vmem:[%s15241_s2 + $0x810] sm:$0xf0] }
 0x230   : > { %5809 = vmatmul.bf16.vlgmr.msra.gmra.mxu0 %v12755_v19  ;;  %5822 = vmatmul.bf16.vlgmr.msra.gmra.mxu1 %v12769_v31  ;;  %v8870_v26 = vor.u32 %v10019_v17, %v8867_v18  ;;  %v9883_v17 = vld [vmem:[%s15241_s2 + $0x3c4] sm:$0xf]  ;;  %v9782_v18 = vld [vmem:[%s15241_s2 + $0x94] sm:$0xf0] }
 0x231   : > { %5853 = vmatpush.bf16.msrb.mxu0 %v8982_v24  ;;  %5866 = vmatpush.bf16.msrb.mxu1 %v9110_v28  ;;  %v13570_v24 = vadd.f32 %v5615_v50, %v5602_v22  ;;  %v10101_v28 = vld [vmem:[%s15241_s2 + $0xa8c] sm:$0xf0]  ;;  %v9282_v22 = vor.u32 %v10125_v16, %v9281_v12  ;;  %v9851_v12 = vld [vmem:[%s15241_s2 + $0x2c4] sm:$0xf] }
 0x232   : > { %v9186_v39 = vor.u32 %v10101_v28, %v9185_v27  ;;  %v10089_v50 = vld [vmem:[%s15241_s2 + $0xa2c] sm:$0xf0]  ;;  %v9265_v27 = vld [vmem:[%s15241_s2 + $0xb20] sm:$0xf] }
 0x233   : > { %5725 = vmatpush.bf16.msra.mxu2 %v9202_v53  ;;  %5738 = vmatpush.bf16.msra.mxu3 %v9330_v36  ;;  %v8090_v36 = vor.u32 %v9826_v49, %v8089_v48  ;;  %v10121_v28 = vld [vmem:[%s15241_s2 + $0xb2c] sm:$0xf0] }
 0x235   : > { %5854 = vmatpush.bf16.msrb.mxu0 %v8966_v35  ;;  %5867 = vmatpush.bf16.msrb.mxu1 %v9094_v25  ;;  %v10027_v35 = vld [vmem:[%s15241_s2 + $0x844] sm:$0xf]  ;;  %v9027_v25 = vld [vmem:[%s15241_s2 + $0x950] sm:$0xf0]  ;;  %v5604_v61 = vpop.f32.mrf.mxu0  ;;  %v5617_v0 = vpop.f32.mrf.mxu1 }
 0x236   : > { %v8902_v1 = vor.u32 %v10027_v35, %v8899_v62  ;;  %v9030_v43 = vor.u32 %v10059_v38, %v9027_v25  ;;  %v9121_v35 = vld [vmem:[%s15241_s2 + $0xa00] sm:$0xf]  ;;  %v9138_v62 = vor.u32 %v10089_v50, %v9137_v30  ;;  %v9266_v38 = vor.u32 %v10121_v28, %v9265_v27  ;;  %v10085_v25 = vld [vmem:[%s15241_s2 + $0xa0c] sm:$0xf0]  ;;  %v8339_v61 = vld [vmem:[%s15241_s2 + $0x3f0] sm:$0xf0] }
 0x237   : > { %5726 = vmatpush.bf16.msra.mxu2 %v9186_v39  ;;  %5739 = vmatpush.bf16.msra.mxu3 %v9314_v40  ;;  %v9249_v39 = vld [vmem:[%s15241_s2 + $0xb00] sm:$0xf]  ;;  %v10117_v40 = vld [vmem:[%s15241_s2 + $0xb0c] sm:$0xf0]  ;;  %v9122_v4 = vor.u32 %v10085_v25, %v9121_v35  ;;  %v8042_v30 = vor.u32 %v9814_v54, %v8041_v6  ;;  %v8307_v50 = vld [vmem:[%s15241_s2 + $0x3b0] sm:$0xf0] }
 0x238   : > { %v9250_v0 = vor.u32 %v10117_v40, %v9249_v39  ;;  %v9778_v27 = vld [vmem:[%s15241_s2 + $0x74] sm:$0xf0]  ;;  %v8025_v28 = vld [vmem:[%s15241_s2 + $0x168] sm:$0xf]  ;;  %v8310_v29 = vor.u32 %v9879_v47, %v8307_v50  ;;  %v8163_v35 = vld [vmem:[%s15241_s2 + $0x290] sm:$0xf0] }
 0x239   : > { %5855 = vmatpush.bf16.msrb.mxu0 %v8950_v9  ;;  %5868 = vmatpush.bf16.msrb.mxu1 %v9078_v8  ;;  %v9298_v9 = vor.u32 %v10129_v51, %v9297_v21  ;;  %v9153_v8 = vld [vmem:[%s15241_s2 + $0xa40] sm:$0xf]  ;;  %v3273_v21 = vrot.slane %v3251_v45, 1  ;;  %v3275_v51 = vrot.slane %v3258_v46, 1  ;;  %v9786_v45 = vld [vmem:[%s15241_s2 + $0xb4] sm:$0xf0] }
 0x23a   : > { %5679 = vmatmul.bf16.vlgmr.msrb.gmra.mxu2 %v13470_v33  ;;  %5692 = vmatmul.bf16.vlgmr.msrb.gmra.mxu3 %v13472_v34  ;;  %v9154_v37 = vor.u32 %v10093_v56, %v9153_v8  ;;  %v8057_v46 = vld [vmem:[%s15241_s2 + $0x1a8] sm:$0xf]  ;;  %v9875_v25 = vld [vmem:[%s15241_s2 + $0x384] sm:$0xf]  ;;  %v8291_v39 = vld [vmem:[%s15241_s2 + $0x390] sm:$0xf0] }
 0x23b   : > { %5727 = vmatpush.bf16.msra.mxu2 %v9170_v23  ;;  %5740 = vmatpush.bf16.msra.mxu3 %v9298_v9  ;;  %v8342_v9 = vor.u32 %v9887_v59, %v8339_v61  ;;  %v3274_v8 = vor.u32 %v3273_v21, %v3248_v57  ;;  %v3276_v56 = vor.u32 %v3275_v51, %v3255_v52  ;;  %v8323_v57 = vld [vmem:[%s15241_s2 + $0x3d0] sm:$0xf0]  ;;  %v7913_v52 = vld [vmem:[%s15241_s2 + $0x88] sm:$0xf]  ;;  %v9839_v51 = vld [vmem:[%s15241_s2 + $0x264] sm:$0xf] }
 0x23c   : > { %v8058_v16 = vor.u32 %v9818_v63, %v8057_v46  ;;  %v8326_v49 = vor.u32 %v9883_v17, %v8323_v57  ;;  %v7881_v40 = vld [vmem:[%s15241_s2 + $0x48] sm:$0xf]  ;;  %v8294_v21 = vor.u32 %v9875_v25, %v8291_v39  ;;  %v8147_v59 = vld [vmem:[%s15241_s2 + $0x270] sm:$0xf0]  ;;  %v9871_v46 = vld [vmem:[%s15241_s2 + $0x364] sm:$0xf] }
 0x23d   : > { %5856 = vmatpush.bf16.msrb.mxu0 %v8934_v20  ;;  %5869 = vmatpush.bf16.msrb.mxu1 %v9062_v11  ;;  %v7961_v20 = vld [vmem:[%s15241_s2 + $0xe8] sm:$0xf]  ;;  %v9794_v11 = vld [vmem:[%s15241_s2 + $0xf4] sm:$0xf0]  ;;  %v8275_v63 = vld [vmem:[%s15241_s2 + $0x370] sm:$0xf0] }
 0x23e   : > { %v7962_v53 = vor.u32 %v9794_v11, %v7961_v20  ;;  %v13754_v20 = vsel %vm10893_vm5, %v3274_v8, 0  ;;  %v13758_v11 = vsel %vm10893_vm5, %v3276_v56, 0  ;;  %v9802_v8 = vld [vmem:[%s15241_s2 + $0x134] sm:$0xf0]  ;;  %v8150_v56 = vor.u32 %v9839_v51, %v8147_v59  ;;  %v7977_v54 = vld [vmem:[%s15241_s2 + $0x108] sm:$0xf] }
 0x23f   : > { %5728 = vmatpush.bf16.msra.mxu2 %v9154_v37  ;;  %5741 = vmatpush.bf16.msra.mxu3 %v9282_v22  ;;  %v9847_v37 = vld [vmem:[%s15241_s2 + $0x2a4] sm:$0xf]  ;;  %v8179_v22 = vld [vmem:[%s15241_s2 + $0x2b0] sm:$0xf0]  ;;  %v9766_v6 = vld [vmem:[%s15241_s2 + $0x14] sm:$0xf0] }
 0x240   : > { %v9950_v25 = vld [vmem:[%s15241_s2 + $0x5d4] sm:$0xf0]  ;;  %v8227_v51 = vld [vmem:[%s15241_s2 + $0x310] sm:$0xf0]  ;;  %v9983_v59 = vld [vmem:[%s15241_s2 + $0x6e4] sm:$0xf] }
 0x241   : > { %5857 = vmatpush.bf16.msrb.mxu0 %v8918_v58  ;;  %5870 = vmatpush.bf16.msrb.mxu1 %v9046_v60  ;;  %v7945_v58 = vld [vmem:[%s15241_s2 + $0xc8] sm:$0xf]  ;;  %v9790_v60 = vld [vmem:[%s15241_s2 + $0xd4] sm:$0xf0] }
 0x242   : > { %v7946_v2 = vor.u32 %v9790_v60, %v7945_v58  ;;  %v9810_v58 = vld [vmem:[%s15241_s2 + $0x174] sm:$0xf0]  ;;  %v8182_v60 = vor.u32 %v9847_v37, %v8179_v22  ;;  %v8601_v22 = vld [vmem:[%s15241_s2 + $0x5e8] sm:$0xf] }
 0x243   : > { %5729 = vmatpush.bf16.msra.mxu2 %v9138_v62  ;;  %5742 = vmatpush.bf16.msra.mxu3 %v9266_v38  ;;  %v8026_v38 = vor.u32 %v9810_v58, %v8025_v28  ;;  %v9922_v37 = vld [vmem:[%s15241_s2 + $0x4f4] sm:$0xf0]  ;;  %v8115_v28 = vld [vmem:[%s15241_s2 + $0x230] sm:$0xf0] }
 0x245   : > { %5858 = vmatpush.bf16.msrb.mxu0 %v8902_v1  ;;  %5871 = vmatpush.bf16.msrb.mxu1 %v9030_v43  ;;  %v9855_v1 = vld [vmem:[%s15241_s2 + $0x2e4] sm:$0xf]  ;;  %v8211_v43 = vld [vmem:[%s15241_s2 + $0x2f0] sm:$0xf0] }
 0x246   : > { %v8214_v23 = vor.u32 %v9855_v1, %v8211_v43  ;;  %v9806_v1 = vld [vmem:[%s15241_s2 + $0x154] sm:$0xf0]  ;;  %v8166_v43 = vor.u32 %v9843_v32, %v8163_v35  ;;  %v8243_v32 = vld [vmem:[%s15241_s2 + $0x330] sm:$0xf0]  ;;  %v8457_v35 = vld [vmem:[%s15241_s2 + $0x4c8] sm:$0xf] }
 0x247   : > { %5730 = vmatpush.bf16.msra.mxu2 %v9122_v4  ;;  %5743 = vmatpush.bf16.msra.mxu3 %v9250_v0  ;;  %v7865_v4 = vld [vmem:[%s15241_s2 + $0x28] sm:$0xf] }
 0x249   : > { %5859 = vmatpush.bf16.msrb.mxu0 %v8886_v42  ;;  %5872 = vmatpush.bf16.msrb.mxu1 %v9014_v14  ;;  %v8195_v42 = vld [vmem:[%s15241_s2 + $0x2d0] sm:$0xf0]  ;;  %v7930_v14 = vor.u32 %v9786_v45, %v7929_v15 }
 0x24a   : > { %v8198_v48 = vor.u32 %v9851_v12, %v8195_v42  ;;  %5731 = vmatmul.bf16.vlgmr.msra.gmra.mxu2 %v13754_v20  ;;  %5744 = vmatmul.bf16.vlgmr.msra.gmra.mxu3 %v13758_v11  ;;  %v8278_v12 = vor.u32 %v9871_v46, %v8275_v63  ;;  %v9835_v42 = vld [vmem:[%s15241_s2 + $0x244] sm:$0xf]  ;;  %v8441_v46 = vld [vmem:[%s15241_s2 + $0x4a8] sm:$0xf]  ;;  %v9914_v63 = vld [vmem:[%s15241_s2 + $0x4b4] sm:$0xf0] }
 0x24b   : > { %5775 = vmatpush.bf16.msrb.mxu2 %v8214_v23  ;;  %5788 = vmatpush.bf16.msrb.mxu3 %v8342_v9  ;;  %v9770_v23 = vld [vmem:[%s15241_s2 + $0x34] sm:$0xf0]  ;;  %v7993_v9 = vld [vmem:[%s15241_s2 + $0x128] sm:$0xf] }
 0x24c   : > { %v7866_v17 = vor.u32 %v9770_v23, %v7865_v4  ;;  %v7994_v57 = vor.u32 %v9802_v8, %v7993_v9  ;;  %v8569_v4 = vld [vmem:[%s15241_s2 + $0x5a8] sm:$0xf] }
 0x24d   : > { %5860 = vmatpush.bf16.msrb.mxu0 %v8870_v26  ;;  %5873 = vmatpush.bf16.msrb.mxu1 %v8998_v41  ;;  %v13766_v26 = vpop.f32.mrf.mxu0  ;;  %v7914_v41 = vor.u32 %v9782_v18, %v7913_v52  ;;  %v8259_v52 = vld [vmem:[%s15241_s2 + $0x350] sm:$0xf0]  ;;  %v7849_v18 = vld [vmem:[%s15241_s2 + $0x8] sm:$0xf] }
 0x24e   : > { %v7850_v50 = vor.u32 %v9766_v6, %v7849_v18  ;;  %v9910_v18 = vld [vmem:[%s15241_s2 + $0x494] sm:$0xf0]  ;;  %v8553_v6 = vld [vmem:[%s15241_s2 + $0x588] sm:$0xf] }
 0x24f   : > { %5776 = vmatpush.bf16.msrb.mxu2 %v8198_v48  ;;  %5789 = vmatpush.bf16.msrb.mxu3 %v8326_v49  ;;  %v9798_v48 = vld [vmem:[%s15241_s2 + $0x114] sm:$0xf0]  ;;  %v8473_v49 = vld [vmem:[%s15241_s2 + $0x4e8] sm:$0xf] }
 0x250   : > { %5861 = vmatmul.bf16.vlgmr.msrb.gmra.mxu0 %v13142_v5  ;;  %5874 = vmatmul.bf16.vlgmr.msrb.gmra.mxu1 %v13146_v10  ;;  %v8474_v58 = vor.u32 %v9922_v37, %v8473_v49 }
 0x251   : > { %5905 = vmatpush.bf16.msra.mxu0 %v7962_v53  ;;  %5918 = vmatpush.bf16.msra.mxu1 %v8090_v36  ;;  %v7897_v53 = vld [vmem:[%s15241_s2 + $0x68] sm:$0xf]  ;;  %v13777_v36 = vpop.f32.mrf.mxu1 }
 0x252   : > { %v7898_v62 = vor.u32 %v9778_v27, %v7897_v53  ;;  %v7978_v53 = vor.u32 %v9798_v48, %v7977_v54  ;;  %v9831_v27 = vld [vmem:[%s15241_s2 + $0x224] sm:$0xf]  ;;  %v9942_v54 = vld [vmem:[%s15241_s2 + $0x594] sm:$0xf0] }
 0x253   : > { %5777 = vmatpush.bf16.msrb.mxu2 %v8182_v60  ;;  %5790 = vmatpush.bf16.msrb.mxu3 %v8310_v29  ;;  %v9863_v29 = vld [vmem:[%s15241_s2 + $0x324] sm:$0xf]  ;;  %v8118_v39 = vor.u32 %v9831_v27, %v8115_v28  ;;  %v8819_v27 = vld [vmem:[%s15241_s2 + $0x7b0] sm:$0xf0]  ;;  %v8409_v28 = vld [vmem:[%s15241_s2 + $0x468] sm:$0xf] }
 0x255   : > { %5906 = vmatpush.bf16.msra.mxu0 %v7946_v2  ;;  %5919 = vmatpush.bf16.msra.mxu1 %v8074_v55  ;;  %v9774_v2 = vld [vmem:[%s15241_s2 + $0x54] sm:$0xf0]  ;;  %v8009_v55 = vld [vmem:[%s15241_s2 + $0x148] sm:$0xf]  ;;  %v5656_v61 = vpop.f32.mrf.mxu0 }
 0x256   : > { %v7882_v15 = vor.u32 %v9774_v2, %v7881_v40  ;;  %v8010_v45 = vor.u32 %v9806_v1, %v8009_v55  ;;  %v8246_v40 = vor.u32 %v9863_v29, %v8243_v32  ;;  %v9827_v2 = vld [vmem:[%s15241_s2 + $0x204] sm:$0xf]  ;;  %v8099_v55 = vld [vmem:[%s15241_s2 + $0x210] sm:$0xf0]  ;;  %v9938_v29 = vld [vmem:[%s15241_s2 + $0x574] sm:$0xf0] }
 0x257   : > { %5778 = vmatpush.bf16.msrb.mxu2 %v8166_v43  ;;  %5791 = vmatpush.bf16.msrb.mxu3 %v8294_v21  ;;  %v9859_v1 = vld [vmem:[%s15241_s2 + $0x304] sm:$0xf]  ;;  %v8723_v61 = vld [vmem:[%s15241_s2 + $0x6f0] sm:$0xf0]  ;;  %v8102_v23 = vor.u32 %v9827_v2, %v8099_v55  ;;  %v8393_v55 = vld [vmem:[%s15241_s2 + $0x448] sm:$0xf] }
 0x258   : > { %v8230_v9 = vor.u32 %v9859_v1, %v8227_v51  ;;  %v8726_v8 = vor.u32 %v9983_v59, %v8723_v61  ;;  %v8803_v2 = vld [vmem:[%s15241_s2 + $0x790] sm:$0xf0]  ;;  %v9902_v1 = vld [vmem:[%s15241_s2 + $0x454] sm:$0xf0] }
 0x259   : > { %5907 = vmatpush.bf16.msra.mxu0 %v7930_v14  ;;  %5920 = vmatpush.bf16.msra.mxu1 %v8058_v16  ;;  %v5669_v0 = vpop.f32.mrf.mxu1  ;;  %v8131_v14 = vld [vmem:[%s15241_s2 + $0x250] sm:$0xf0]  ;;  %v9867_v16 = vld [vmem:[%s15241_s2 + $0x344] sm:$0xf] }
 0x25a   : > { %v8262_v47 = vor.u32 %v9867_v16, %v8259_v52  ;;  %v9946_v0 = vld [vmem:[%s15241_s2 + $0x5b4] sm:$0xf0]  ;;  %v8425_v52 = vld [vmem:[%s15241_s2 + $0x488] sm:$0xf] }
 0x25b   : > { %5779 = vmatpush.bf16.msrb.mxu2 %v8150_v56  ;;  %5792 = vmatpush.bf16.msrb.mxu3 %v8278_v12  ;;  %v9979_v12 = vld [vmem:[%s15241_s2 + $0x6c4] sm:$0xf]  ;;  %v8570_v16 = vor.u32 %v9946_v0, %v8569_v4 }
 0x25c   : > { %v9999_v0 = vld [vmem:[%s15241_s2 + $0x764] sm:$0xf] }
 0x25d   : > { %5908 = vmatpush.bf16.msra.mxu0 %v7914_v41  ;;  %5921 = vmatpush.bf16.msra.mxu1 %v8042_v30  ;;  %v9954_v41 = vld [vmem:[%s15241_s2 + $0x5f4] sm:$0xf0]  ;;  %v8134_v30 = vor.u32 %v9835_v42, %v8131_v14  ;;  %v8707_v42 = vld [vmem:[%s15241_s2 + $0x6d0] sm:$0xf0]  ;;  %v8442_v14 = vor.u32 %v9914_v63, %v8441_v46  ;;  %v8394_v63 = vor.u32 %v9902_v1, %v8393_v55 }
 0x25e   : > { %v8602_v60 = vor.u32 %v9954_v41, %v8601_v22  ;;  %v8710_v49 = vor.u32 %v9979_v12, %v8707_v42  ;;  %v9975_v22 = vld [vmem:[%s15241_s2 + $0x6a4] sm:$0xf]  ;;  %v8691_v41 = vld [vmem:[%s15241_s2 + $0x6b0] sm:$0xf0]  ;;  %v9930_v12 = vld [vmem:[%s15241_s2 + $0x534] sm:$0xf0] }
 0x25f   : > { %5780 = vmatpush.bf16.msrb.mxu2 %v8134_v30  ;;  %5793 = vmatpush.bf16.msrb.mxu3 %v8262_v47  ;;  %v8426_v47 = vor.u32 %v9910_v18, %v8425_v52  ;;  %v8694_v32 = vor.u32 %v9975_v22, %v8691_v41  ;;  %v9926_v22 = vld [vmem:[%s15241_s2 + $0x514] sm:$0xf0]  ;;  %v8985_v41 = vld [vmem:[%s15241_s2 + $0x8e8] sm:$0xf] }
 0x260   : > { %v10078_v55 = vld [vmem:[%s15241_s2 + $0x9d4] sm:$0xf0] }
 0x261   : > { %5909 = vmatpush.bf16.msra.mxu0 %v7898_v62  ;;  %5922 = vmatpush.bf16.msra.mxu1 %v8026_v38  ;;  %v9918_v62 = vld [vmem:[%s15241_s2 + $0x4d4] sm:$0xf0]  ;;  %v8585_v38 = vld [vmem:[%s15241_s2 + $0x5c8] sm:$0xf] }
 0x262   : > { %v8458_v43 = vor.u32 %v9918_v62, %v8457_v35  ;;  %v8586_v21 = vor.u32 %v9950_v25, %v8585_v38  ;;  %v9971_v62 = vld [vmem:[%s15241_s2 + $0x684] sm:$0xf]  ;;  %v8675_v38 = vld [vmem:[%s15241_s2 + $0x690] sm:$0xf0] }
 0x263   : > { %5781 = vmatpush.bf16.msrb.mxu2 %v8118_v39  ;;  %5794 = vmatpush.bf16.msrb.mxu3 %v8246_v40  ;;  %v10003_v40 = vld [vmem:[%s15241_s2 + $0x784] sm:$0xf]  ;;  %v8678_v59 = vor.u32 %v9971_v62, %v8675_v38 }
 0x264   : > { %v8806_v61 = vor.u32 %v10003_v40, %v8803_v2  ;;  %v9991_v38 = vld [vmem:[%s15241_s2 + $0x724] sm:$0xf]  ;;  %v10046_v40 = vld [vmem:[%s15241_s2 + $0x8d4] sm:$0xf0]  ;;  %v9097_v2 = vld [vmem:[%s15241_s2 + $0x9c8] sm:$0xf] }
 0x265   : > { %5910 = vmatpush.bf16.msra.mxu0 %v7882_v15  ;;  %5923 = vmatpush.bf16.msra.mxu1 %v8010_v45  ;;  %v10015_v15 = vld [vmem:[%s15241_s2 + $0x7e4] sm:$0xf]  ;;  %v8851_v45 = vld [vmem:[%s15241_s2 + $0x7f0] sm:$0xf0] }
 0x266   : > { %v8854_v56 = vor.u32 %v10015_v15, %v8851_v45  ;;  %v9967_v15 = vld [vmem:[%s15241_s2 + $0x664] sm:$0xf]  ;;  %v8659_v45 = vld [vmem:[%s15241_s2 + $0x670] sm:$0xf0] }
 0x267   : > { %5782 = vmatpush.bf16.msrb.mxu2 %v8102_v23  ;;  %5795 = vmatpush.bf16.msrb.mxu3 %v8230_v9  ;;  %v8787_v23 = vld [vmem:[%s15241_s2 + $0x770] sm:$0xf0]  ;;  %v8377_v9 = vld [vmem:[%s15241_s2 + $0x428] sm:$0xf]  ;;  %v8662_v42 = vor.u32 %v9967_v15, %v8659_v45  ;;  %v9098_v15 = vor.u32 %v10078_v55, %v9097_v2 }
 0x268   : > { %v8739_v45 = vld [vmem:[%s15241_s2 + $0x710] sm:$0xf0] }
 0x269   : > { %5911 = vmatpush.bf16.msra.mxu0 %v7866_v17  ;;  %5924 = vmatpush.bf16.msra.mxu1 %v7994_v57  ;;  %v10011_v17 = vld [vmem:[%s15241_s2 + $0x7c4] sm:$0xf]  ;;  %v8835_v57 = vld [vmem:[%s15241_s2 + $0x7d0] sm:$0xf0] }
 0x26a   : > { %v8838_v37 = vor.u32 %v10011_v17, %v8835_v57  ;;  %5783 = vmatmul.bf16.vlgmr.msrb.gmra.mxu2 %v13532_v3  ;;  %5796 = vmatmul.bf16.vlgmr.msrb.gmra.mxu3 %v13536_v13  ;;  %v8643_v17 = vld [vmem:[%s15241_s2 + $0x650] sm:$0xf0]  ;;  %v9995_v57 = vld [vmem:[%s15241_s2 + $0x744] sm:$0xf] }
 0x26b   : > { %5827 = vmatpush.bf16.msra.mxu2 %v8726_v8  ;;  %5840 = vmatpush.bf16.msra.mxu3 %v8854_v56  ;;  %v9898_v8 = vld [vmem:[%s15241_s2 + $0x434] sm:$0xf0]  ;;  %v8505_v56 = vld [vmem:[%s15241_s2 + $0x528] sm:$0xf] }
 0x26c   : > { %v8378_v52 = vor.u32 %v9898_v8, %v8377_v9  ;;  %v8506_v18 = vor.u32 %v9930_v12, %v8505_v56  ;;  %v10042_v9 = vld [vmem:[%s15241_s2 + $0x8b4] sm:$0xf0]  ;;  %v9081_v8 = vld [vmem:[%s15241_s2 + $0x9a8] sm:$0xf] }
 0x26d   : > { %5912 = vmatpush.bf16.msra.mxu0 %v7850_v50  ;;  %5925 = vmatpush.bf16.msra.mxu1 %v7978_v53  ;;  %v13960_v48 = vpop.f32.mrf.mxu0  ;;  %v13968_v30 = vpop.f32.mrf.mxu1  ;;  %v8554_v50 = vor.u32 %v9942_v54, %v8553_v6  ;;  %v10007_v53 = vld [vmem:[%s15241_s2 + $0x7a4] sm:$0xf]  ;;  %v8771_v6 = vld [vmem:[%s15241_s2 + $0x750] sm:$0xf0]  ;;  %v8361_v54 = vld [vmem:[%s15241_s2 + $0x408] sm:$0xf] }
 0x26e   : > { %v8822_v35 = vor.u32 %v10007_v53, %v8819_v27  ;;  %v10082_v53 = vld [vmem:[%s15241_s2 + $0x9f4] sm:$0xf0] }
 0x26f   : > { %5828 = vmatpush.bf16.msra.mxu2 %v8710_v49  ;;  %5841 = vmatpush.bf16.msra.mxu3 %v8838_v37  ;;  %v9894_v49 = vld [vmem:[%s15241_s2 + $0x414] sm:$0xf0]  ;;  %v8489_v37 = vld [vmem:[%s15241_s2 + $0x508] sm:$0xf] }
 0x270   : > { %5913 = vmatmul.bf16.vlgmr.msra.gmra.mxu0 %v12835_v44  ;;  %5926 = vmatmul.bf16.vlgmr.msra.gmra.mxu1 %v12846_v7  ;;  %v10074_v56 = vld [vmem:[%s15241_s2 + $0x9b4] sm:$0xf0] }
 0x271   : > { %5957 = vmatpush.bf16.msrb.mxu0 %v8474_v58  ;;  %5970 = vmatpush.bf16.msrb.mxu1 %v8602_v60  ;;  %v9906_v58 = vld [vmem:[%s15241_s2 + $0x474] sm:$0xf0]  ;;  %v8537_v60 = vld [vmem:[%s15241_s2 + $0x568] sm:$0xf] }
 0x272   : > { %v8410_v25 = vor.u32 %v9906_v58, %v8409_v28  ;;  %v8538_v39 = vor.u32 %v9938_v29, %v8537_v60  ;;  %v8774_v28 = vor.u32 %v9995_v57, %v8771_v6  ;;  %v8362_v58 = vor.u32 %v9894_v49, %v8361_v54  ;;  %v9959_v29 = vld [vmem:[%s15241_s2 + $0x624] sm:$0xf]  ;;  %v9219_v57 = vld [vmem:[%s15241_s2 + $0xad0] sm:$0xf0]  ;;  %v8937_v49 = vld [vmem:[%s15241_s2 + $0x888] sm:$0xf] }
 0x273   : > { %5829 = vmatpush.bf16.msra.mxu2 %v8694_v32  ;;  %5842 = vmatpush.bf16.msra.mxu3 %v8822_v35  ;;  %v8490_v60 = vor.u32 %v9926_v22, %v8489_v37  ;;  %v8627_v32 = vld [vmem:[%s15241_s2 + $0x630] sm:$0xf0]  ;;  %v10139_v6 = vld [vmem:[%s15241_s2 + $0xbc4] sm:$0xf]  ;;  %v10038_v37 = vld [vmem:[%s15241_s2 + $0x894] sm:$0xf0] }
 0x274   : > { %v8630_v1 = vor.u32 %v9959_v29, %v8627_v32  ;;  %v9347_v54 = vld [vmem:[%s15241_s2 + $0xbd0] sm:$0xf0]  ;;  %v9065_v22 = vld [vmem:[%s15241_s2 + $0x988] sm:$0xf]  ;;  %v8938_v29 = vor.u32 %v10038_v37, %v8937_v49  ;;  %v10091_v49 = vld [vmem:[%s15241_s2 + $0xa44] sm:$0xf] }
 0x275   : > { %5958 = vmatpush.bf16.msrb.mxu0 %v8458_v43  ;;  %5971 = vmatpush.bf16.msrb.mxu1 %v8586_v21  ;;  %v8521_v43 = vld [vmem:[%s15241_s2 + $0x548] sm:$0xf]  ;;  %v9934_v21 = vld [vmem:[%s15241_s2 + $0x554] sm:$0xf0]  ;;  %v5708_v51 = vpop.f32.mrf.mxu0  ;;  %v5721_v46 = vpop.f32.mrf.mxu1  ;;  %v9155_v37 = vld [vmem:[%s15241_s2 + $0xa50] sm:$0xf0] }
 0x276   : > { %v8522_v4 = vor.u32 %v9934_v21, %v8521_v43  ;;  %v9955_v21 = vld [vmem:[%s15241_s2 + $0x604] sm:$0xf]  ;;  %v8611_v51 = vld [vmem:[%s15241_s2 + $0x610] sm:$0xf0] }
 0x277   : > { %5830 = vmatpush.bf16.msra.mxu2 %v8678_v59  ;;  %5843 = vmatpush.bf16.msra.mxu3 %v8806_v61  ;;  %v9987_v59 = vld [vmem:[%s15241_s2 + $0x704] sm:$0xf]  ;;  %v8614_v12 = vor.u32 %v9955_v21, %v8611_v51 }
 0x278   : > { %v10111_v46 = vld [vmem:[%s15241_s2 + $0xae4] sm:$0xf] }
 0x279   : > { %5959 = vmatpush.bf16.msrb.mxu0 %v8442_v14  ;;  %5972 = vmatpush.bf16.msrb.mxu1 %v8570_v16  ;;  %v8790_v14 = vor.u32 %v9999_v0, %v8787_v23  ;;  %v9963_v16 = vld [vmem:[%s15241_s2 + $0x644] sm:$0xf]  ;;  %v9363_v0 = vld [vmem:[%s15241_s2 + $0xbf0] sm:$0xf0]  ;;  %v8953_v23 = vld [vmem:[%s15241_s2 + $0x8a8] sm:$0xf] }
 0x27a   : > { %v8646_v27 = vor.u32 %v9963_v16, %v8643_v17  ;;  %v10107_v17 = vld [vmem:[%s15241_s2 + $0xac4] sm:$0xf] }
 0x27b   : > { %5831 = vmatpush.bf16.msra.mxu2 %v8662_v42  ;;  %5844 = vmatpush.bf16.msra.mxu3 %v8790_v14  ;;  %v8742_v42 = vor.u32 %v9987_v59, %v8739_v45  ;;  %v10131_v59 = vld [vmem:[%s15241_s2 + $0xb84] sm:$0xf]  ;;  %v10030_v45 = vld [vmem:[%s15241_s2 + $0x854] sm:$0xf0] }
 0x27d   : > { %5960 = vmatpush.bf16.msrb.mxu0 %v8426_v47  ;;  %5973 = vmatpush.bf16.msrb.mxu1 %v8554_v50  ;;  %v10050_v47 = vld [vmem:[%s15241_s2 + $0x8f4] sm:$0xf0]  ;;  %v9113_v50 = vld [vmem:[%s15241_s2 + $0x9e8] sm:$0xf] }
 0x27e   : > { %v8986_v35 = vor.u32 %v10050_v47, %v8985_v41  ;;  %v9114_v62 = vor.u32 %v10082_v53, %v9113_v50  ;;  %v10070_v41 = vld [vmem:[%s15241_s2 + $0x994] sm:$0xf0]  ;;  %v9222_v53 = vor.u32 %v10107_v17, %v9219_v57  ;;  %v8889_v17 = vld [vmem:[%s15241_s2 + $0x828] sm:$0xf] }
 0x27f   : > { %5832 = vmatpush.bf16.msra.mxu2 %v8646_v27  ;;  %5845 = vmatpush.bf16.msra.mxu3 %v8774_v28  ;;  %v9350_v27 = vor.u32 %v10139_v6, %v9347_v54  ;;  %v10103_v28 = vld [vmem:[%s15241_s2 + $0xaa4] sm:$0xf]  ;;  %v9066_v32 = vor.u32 %v10070_v41, %v9065_v22  ;;  %v10026_v57 = vld [vmem:[%s15241_s2 + $0x834] sm:$0xf0] }
 0x280   : > { %v10123_v22 = vld [vmem:[%s15241_s2 + $0xb44] sm:$0xf]  ;;  %v8890_v41 = vor.u32 %v10026_v57, %v8889_v17  ;;  %v9784_v17 = vld [vmem:[%s15241_s2 + $0xac] sm:$0xf]  ;;  %v7931_v57 = vld [vmem:[%s15241_s2 + $0xb8] sm:$0xf0] }
 0x281   : > { %5961 = vmatpush.bf16.msrb.mxu0 %v8410_v25  ;;  %5974 = vmatpush.bf16.msrb.mxu1 %v8538_v39  ;;  %v8755_v25 = vld [vmem:[%s15241_s2 + $0x730] sm:$0xf0]  ;;  %v8969_v39 = vld [vmem:[%s15241_s2 + $0x8c8] sm:$0xf] }
 0x282   : > { %v8758_v43 = vor.u32 %v9991_v38, %v8755_v25  ;;  %v8970_v61 = vor.u32 %v10046_v40, %v8969_v39  ;;  %v8921_v38 = vld [vmem:[%s15241_s2 + $0x868] sm:$0xf]  ;;  %v10034_v25 = vld [vmem:[%s15241_s2 + $0x874] sm:$0xf0] }
 0x283   : > { %5833 = vmatpush.bf16.msra.mxu2 %v8630_v1  ;;  %v9049_v39 = vld [vmem:[%s15241_s2 + $0x968] sm:$0xf]  ;;  %v10066_v40 = vld [vmem:[%s15241_s2 + $0x974] sm:$0xf0]  ;;  %v10099_v1 = vld [vmem:[%s15241_s2 + $0xa84] sm:$0xf]  ;;  %v8922_v21 = vor.u32 %v10034_v25, %v8921_v38  ;;  %v9158_v38 = vor.u32 %v10091_v49, %v9155_v37 }
 0x284   : > { %5846 = vmatpush.bf16.msra.mxu3 %v8758_v43  ;;  %v9187_v43 = vld [vmem:[%s15241_s2 + $0xa90] sm:$0xf0]  ;;  %v9050_v51 = vor.u32 %v10066_v40, %v9049_v39 }
 0x285   : > { %5962 = vmatpush.bf16.msrb.mxu0 %v8394_v63  ;;  %5975 = vmatpush.bf16.msrb.mxu1 %v8522_v4  ;;  %v9235_v63 = vld [vmem:[%s15241_s2 + $0xaf0] sm:$0xf0]  ;;  %v10143_v4 = vld [vmem:[%s15241_s2 + $0xbe4] sm:$0xf] }
 0x286   : > { %v9238_v14 = vor.u32 %v10111_v46, %v9235_v63  ;;  %v9366_v16 = vor.u32 %v10143_v4, %v9363_v0  ;;  %v9033_v46 = vld [vmem:[%s15241_s2 + $0x948] sm:$0xf]  ;;  %v10062_v63 = vld [vmem:[%s15241_s2 + $0x954] sm:$0xf0] }
 0x287   : > { %5834 = vmatpush.bf16.msra.mxu2 %v8614_v12 }
 0x288   : > { %5847 = vmatpush.bf16.msra.mxu3 %v8742_v42  ;;  %v9034_v42 = vor.u32 %v10062_v63, %v9033_v46 }
 0x289   : > { %5963 = vmatpush.bf16.msrb.mxu0 %v8378_v52  ;;  %5976 = vmatpush.bf16.msrb.mxu1 %v8506_v18  ;;  %v8954_v52 = vor.u32 %v10042_v9, %v8953_v23  ;;  %v9082_v18 = vor.u32 %v10074_v56, %v9081_v8  ;;  %v9190_v23 = vor.u32 %v10099_v1, %v9187_v43  ;;  %v10095_v8 = vld [vmem:[%s15241_s2 + $0xa64] sm:$0xf]  ;;  %v9171_v56 = vld [vmem:[%s15241_s2 + $0xa70] sm:$0xf0] }
 0x28a   : > { %5835 = vmatmul.bf16.vlgmr.msra.gmra.mxu2 %v13470_v33  ;;  %v9174_v6 = vor.u32 %v10095_v8, %v9171_v56  ;;  %v9251_v56 = vld [vmem:[%s15241_s2 + $0xb10] sm:$0xf0] }
 0x28b   : > { %5879 = vmatpush.bf16.msrb.mxu2 %v9238_v14  ;;  %5848 = vmatmul.bf16.vlgmr.msra.gmra.mxu3 %v13472_v34  ;;  %v10127_v14 = vld [vmem:[%s15241_s2 + $0xb64] sm:$0xf] }
 0x28c   : > { %5892 = vmatpush.bf16.msrb.mxu3 %v9366_v16  ;;  %v9299_v16 = vld [vmem:[%s15241_s2 + $0xb70] sm:$0xf0] }
 0x28d   : > { %5964 = vmatpush.bf16.msrb.mxu0 %v8362_v58  ;;  %5977 = vmatpush.bf16.msrb.mxu1 %v8490_v60  ;;  %v5758_v47 = vpop.f32.mrf.mxu0  ;;  %v5771_v50 = vpop.f32.mrf.mxu1  ;;  %v9203_v58 = vld [vmem:[%s15241_s2 + $0xab0] sm:$0xf0]  ;;  %v9302_v54 = vor.u32 %v10127_v14, %v9299_v16  ;;  %v8345_v14 = vld [vmem:[%s15241_s2 + $0x3e8] sm:$0xf]  ;;  %v9890_v16 = vld [vmem:[%s15241_s2 + $0x3f4] sm:$0xf0] }
 0x28e   : > { %v14166_v60 = vadd.f32 %v5771_v50, %v5758_v47  ;;  %v9206_v2 = vor.u32 %v10103_v28, %v9203_v58  ;;  %v9283_v50 = vld [vmem:[%s15241_s2 + $0xb50] sm:$0xf0]  ;;  %v9001_v28 = vld [vmem:[%s15241_s2 + $0x908] sm:$0xf]  ;;  %v10054_v58 = vld [vmem:[%s15241_s2 + $0x914] sm:$0xf0]  ;;  %v8346_v37 = vor.u32 %v9890_v16, %v8345_v14 }
 0x28f   : > { %5880 = vmatpush.bf16.msrb.mxu2 %v9222_v53  ;;  %v8873_v53 = vld [vmem:[%s15241_s2 + $0x808] sm:$0xf]  ;;  %v9286_v25 = vor.u32 %v10123_v22, %v9283_v50  ;;  %v9002_v40 = vor.u32 %v10054_v58, %v9001_v28  ;;  %v9780_v28 = vld [vmem:[%s15241_s2 + $0x8c] sm:$0xf]  ;;  %v8011_v14 = vld [vmem:[%s15241_s2 + $0x158] sm:$0xf0] }
 0x290   : > { %5965 = vmatmul.bf16.vlgmr.msrb.gmra.mxu0 %v12755_v19  ;;  %5978 = vmatmul.bf16.vlgmr.msrb.gmra.mxu1 %v12769_v31  ;;  %v8201_v22 = vld [vmem:[%s15241_s2 + $0x2c8] sm:$0xf] }
 0x291   : > { %6009 = vmatpush.bf16.msra.mxu0 %v8986_v35  ;;  %6022 = vmatpush.bf16.msra.mxu1 %v9114_v62  ;;  %v10135_v35 = vld [vmem:[%s15241_s2 + $0xba4] sm:$0xf]  ;;  %v9331_v62 = vld [vmem:[%s15241_s2 + $0xbb0] sm:$0xf0] }
 0x292   : > { %5893 = vmatpush.bf16.msrb.mxu3 %v9350_v27  ;;  %v9334_v55 = vor.u32 %v10135_v35, %v9331_v62  ;;  %v10022_v27 = vld [vmem:[%s15241_s2 + $0x814] sm:$0xf0]  ;;  %v9824_v35 = vld [vmem:[%s15241_s2 + $0x1ec] sm:$0xf]  ;;  %v8091_v62 = vld [vmem:[%s15241_s2 + $0x1f8] sm:$0xf0] }
 0x293   : > { %5881 = vmatpush.bf16.msrb.mxu2 %v9206_v2  ;;  %v8874_v39 = vor.u32 %v10022_v27, %v8873_v53  ;;  %v10087_v2 = vld [vmem:[%s15241_s2 + $0xa24] sm:$0xf]  ;;  %v8094_v43 = vor.u32 %v9824_v35, %v8091_v62  ;;  %v8329_v53 = vld [vmem:[%s15241_s2 + $0x3c8] sm:$0xf]  ;;  %v9886_v27 = vld [vmem:[%s15241_s2 + $0x3d4] sm:$0xf0] }
 0x294   : > { %v8043_v35 = vld [vmem:[%s15241_s2 + $0x198] sm:$0xf0] }
 0x295   : > { %6010 = vmatpush.bf16.msra.mxu0 %v8970_v61  ;;  %6023 = vmatpush.bf16.msra.mxu1 %v9098_v15  ;;  %v9315_v61 = vld [vmem:[%s15241_s2 + $0xb90] sm:$0xf0]  ;;  %v8905_v15 = vld [vmem:[%s15241_s2 + $0x848] sm:$0xf]  ;;  %v5760_v4 = vpop.f32.mrf.mxu0  ;;  %v5773_v0 = vpop.f32.mrf.mxu1 }
 0x296   : > { %5894 = vmatpush.bf16.msrb.mxu3 %v9334_v55  ;;  %v9318_v9 = vor.u32 %v10131_v59, %v9315_v61  ;;  %v8906_v12 = vor.u32 %v10030_v45, %v8905_v15  ;;  %v9139_v55 = vld [vmem:[%s15241_s2 + $0xa30] sm:$0xf0]  ;;  %v9788_v59 = vld [vmem:[%s15241_s2 + $0xcc] sm:$0xf]  ;;  %v7947_v61 = vld [vmem:[%s15241_s2 + $0xd8] sm:$0xf0] }
 0x297   : > { %5882 = vmatpush.bf16.msrb.mxu2 %v9190_v23  ;;  %v9820_v15 = vld [vmem:[%s15241_s2 + $0x1cc] sm:$0xf]  ;;  %v8075_v45 = vld [vmem:[%s15241_s2 + $0x1d8] sm:$0xf0]  ;;  %v9142_v46 = vor.u32 %v10087_v2, %v9139_v55  ;;  %v10083_v4 = vld [vmem:[%s15241_s2 + $0xa04] sm:$0xf] }
 0x298   : > { %v9123_v0 = vld [vmem:[%s15241_s2 + $0xa10] sm:$0xf0]  ;;  %v10115_v23 = vld [vmem:[%s15241_s2 + $0xb04] sm:$0xf]  ;;  %v8078_v8 = vor.u32 %v9820_v15, %v8075_v45 }
 0x299   : > { %6011 = vmatpush.bf16.msra.mxu0 %v8954_v52  ;;  %6024 = vmatpush.bf16.msra.mxu1 %v9082_v18  ;;  %v9017_v52 = vld [vmem:[%s15241_s2 + $0x928] sm:$0xf]  ;;  %v10058_v18 = vld [vmem:[%s15241_s2 + $0x934] sm:$0xf0] }
 0x29a   : > { %5895 = vmatpush.bf16.msrb.mxu3 %v9318_v9  ;;  %v9018_v47 = vor.u32 %v10058_v18, %v9017_v52  ;;  %v7950_v9 = vor.u32 %v9788_v59, %v7947_v61  ;;  %v9816_v52 = vld [vmem:[%s15241_s2 + $0x1ac] sm:$0xf]  ;;  %v8059_v18 = vld [vmem:[%s15241_s2 + $0x1b8] sm:$0xf0] }
 0x29b   : > { %5883 = vmatpush.bf16.msrb.mxu2 %v9174_v6  ;;  %v9126_v6 = vor.u32 %v10083_v4, %v9123_v0  ;;  %v8062_v50 = vor.u32 %v9816_v52, %v8059_v18  ;;  %v9808_v59 = vld [vmem:[%s15241_s2 + $0x16c] sm:$0xf]  ;;  %v8027_v61 = vld [vmem:[%s15241_s2 + $0x178] sm:$0xf0]  ;;  %v8153_v52 = vld [vmem:[%s15241_s2 + $0x268] sm:$0xf] }
 0x29c   : > { %v8030_v0 = vor.u32 %v9808_v59, %v8027_v61  ;;  %v9842_v18 = vld [vmem:[%s15241_s2 + $0x274] sm:$0xf0]  ;;  %v9952_v59 = vld [vmem:[%s15241_s2 + $0x5ec] sm:$0xf]  ;;  %v8603_v61 = vld [vmem:[%s15241_s2 + $0x5f8] sm:$0xf0] }
 0x29d   : > { %6012 = vmatpush.bf16.msra.mxu0 %v8938_v29  ;;  %6025 = vmatpush.bf16.msra.mxu1 %v9066_v32  ;;  %v9792_v29 = vld [vmem:[%s15241_s2 + $0xec] sm:$0xf]  ;;  %v7963_v32 = vld [vmem:[%s15241_s2 + $0xf8] sm:$0xf0] }
 0x29e   : > { %5896 = vmatpush.bf16.msrb.mxu3 %v9302_v54  ;;  %v7966_v1 = vor.u32 %v9792_v29, %v7963_v32  ;;  %v9254_v54 = vor.u32 %v10115_v23, %v9251_v56  ;;  %v7915_v29 = vld [vmem:[%s15241_s2 + $0x98] sm:$0xf0]  ;;  %v9812_v32 = vld [vmem:[%s15241_s2 + $0x18c] sm:$0xf]  ;;  %v8297_v23 = vld [vmem:[%s15241_s2 + $0x388] sm:$0xf] }
 0x29f   : > { %5884 = vmatpush.bf16.msrb.mxu2 %v9158_v38  ;;  %v7918_v2 = vor.u32 %v9780_v28, %v7915_v29  ;;  %v8046_v55 = vor.u32 %v9812_v32, %v8043_v35  ;;  %v8154_v28 = vor.u32 %v9842_v18, %v8153_v52  ;;  %v8137_v32 = vld [vmem:[%s15241_s2 + $0x248] sm:$0xf]  ;;  %v9838_v35 = vld [vmem:[%s15241_s2 + $0x254] sm:$0xf0] }
 0x2a1   : > { %6013 = vmatpush.bf16.msra.mxu0 %v8922_v21  ;;  %6026 = vmatpush.bf16.msra.mxu1 %v9050_v51  ;;  %v10119_v21 = vld [vmem:[%s15241_s2 + $0xb24] sm:$0xf]  ;;  %v9267_v51 = vld [vmem:[%s15241_s2 + $0xb30] sm:$0xf0] }
 0x2a2   : > { %5897 = vmatpush.bf16.msrb.mxu3 %v9286_v25  ;;  %v9270_v63 = vor.u32 %v10119_v21, %v9267_v51  ;;  %v8330_v25 = vor.u32 %v9886_v27, %v8329_v53  ;;  %v9776_v21 = vld [vmem:[%s15241_s2 + $0x6c] sm:$0xf]  ;;  %v7899_v51 = vld [vmem:[%s15241_s2 + $0x78] sm:$0xf0] }
 0x2a3   : > { %5885 = vmatpush.bf16.msrb.mxu2 %v9142_v46  ;;  %v8169_v46 = vld [vmem:[%s15241_s2 + $0x288] sm:$0xf]  ;;  %v7902_v4 = vor.u32 %v9776_v21, %v7899_v51  ;;  %v9800_v53 = vld [vmem:[%s15241_s2 + $0x12c] sm:$0xf]  ;;  %v7995_v27 = vld [vmem:[%s15241_s2 + $0x138] sm:$0xf0] }
 0x2a4   : > { %v9920_v21 = vld [vmem:[%s15241_s2 + $0x4ec] sm:$0xf]  ;;  %v8475_v51 = vld [vmem:[%s15241_s2 + $0x4f8] sm:$0xf0] }
 0x2a5   : > { %6014 = vmatpush.bf16.msra.mxu0 %v8906_v12  ;;  %6027 = vmatpush.bf16.msra.mxu1 %v9034_v42  ;;  %v8217_v12 = vld [vmem:[%s15241_s2 + $0x2e8] sm:$0xf]  ;;  %v9858_v42 = vld [vmem:[%s15241_s2 + $0x2f4] sm:$0xf0] }
 0x2a6   : > { %5898 = vmatpush.bf16.msrb.mxu3 %v9270_v63  ;;  %v8218_v49 = vor.u32 %v9858_v42, %v8217_v12  ;;  %v9846_v63 = vld [vmem:[%s15241_s2 + $0x294] sm:$0xf0]  ;;  %v7883_v12 = vld [vmem:[%s15241_s2 + $0x58] sm:$0xf0]  ;;  %v9804_v42 = vld [vmem:[%s15241_s2 + $0x14c] sm:$0xf] }
 0x2a7   : > { %5886 = vmatpush.bf16.msrb.mxu2 %v9126_v6 }
 0x2a9   : > { %6015 = vmatpush.bf16.msra.mxu0 %v8890_v41  ;;  %6028 = vmatpush.bf16.msra.mxu1 %v9018_v47  ;;  %v9854_v41 = vld [vmem:[%s15241_s2 + $0x2d4] sm:$0xf0]  ;;  %v7934_v47 = vor.u32 %v9784_v17, %v7931_v57  ;;  %v8170_v17 = vor.u32 %v9846_v63, %v8169_v46 }
 0x2aa   : > { %5899 = vmatpush.bf16.msrb.mxu3 %v9254_v54  ;;  %v8202_v38 = vor.u32 %v9854_v41, %v8201_v22  ;;  %5887 = vmatmul.bf16.vlgmr.msrb.gmra.mxu2 %v13754_v20  ;;  %v8014_v54 = vor.u32 %v9804_v42, %v8011_v14  ;;  %v9768_v22 = vld [vmem:[%s15241_s2 + $0x2c] sm:$0xf]  ;;  %v9866_v42 = vld [vmem:[%s15241_s2 + $0x334] sm:$0xf0] }
 0x2ab   : > { %5931 = vmatpush.bf16.msra.mxu2 %v8218_v49  ;;  %v8281_v49 = vld [vmem:[%s15241_s2 + $0x368] sm:$0xf]  ;;  %v9916_v14 = vld [vmem:[%s15241_s2 + $0x4cc] sm:$0xf] }
 0x2ad   : > { %6016 = vmatpush.bf16.msra.mxu0 %v8874_v39  ;;  %6029 = vmatpush.bf16.msra.mxu1 %v9002_v40  ;;  %v14349_v58 = vpop.f32.mrf.mxu0  ;;  %v14360_v62 = vpop.f32.mrf.mxu1  ;;  %v8185_v39 = vld [vmem:[%s15241_s2 + $0x2a8] sm:$0xf]  ;;  %v9850_v40 = vld [vmem:[%s15241_s2 + $0x2b4] sm:$0xf0] }
 0x2ae   : > { %5944 = vmatpush.bf16.msra.mxu3 %v8346_v37  ;;  %v8186_v15 = vor.u32 %v9850_v40, %v8185_v39  ;;  %v9874_v37 = vld [vmem:[%s15241_s2 + $0x374] sm:$0xf0]  ;;  %v5628_v41 = vpop.f32.mrf.mxu2  ;;  %v7998_v39 = vor.u32 %v9800_v53, %v7995_v27  ;;  %v8857_v27 = vld [vmem:[%s15241_s2 + $0x7e8] sm:$0xf] }
 0x2af   : > { %5900 = vmatmul.bf16.vlgmr.msrb.gmra.mxu3 %v13758_v11  ;;  %5932 = vmatpush.bf16.msra.mxu2 %v8202_v38  ;;  %v8282_v29 = vor.u32 %v9874_v37, %v8281_v49  ;;  %v8265_v38 = vld [vmem:[%s15241_s2 + $0x348] sm:$0xf]  ;;  %v9870_v40 = vld [vmem:[%s15241_s2 + $0x354] sm:$0xf0] }
 0x2b0   : > { %6017 = vmatmul.bf16.vlgmr.msra.gmra.mxu0 %v13142_v5  ;;  %6030 = vmatmul.bf16.vlgmr.msra.gmra.mxu1 %v13146_v10  ;;  %v8266_v46 = vor.u32 %v9870_v40, %v8265_v38  ;;  %v9830_v49 = vld [vmem:[%s15241_s2 + $0x214] sm:$0xf0]  ;;  %v8233_v37 = vld [vmem:[%s15241_s2 + $0x308] sm:$0xf]  ;;  %v9944_v38 = vld [vmem:[%s15241_s2 + $0x5ac] sm:$0xf] }
 0x2b1   : > { %6061 = vmatpush.bf16.msrb.mxu0 %v7966_v1  ;;  %6074 = vmatpush.bf16.msrb.mxu1 %v8094_v43  ;;  %v8313_v1 = vld [vmem:[%s15241_s2 + $0x3a8] sm:$0xf]  ;;  %v9882_v43 = vld [vmem:[%s15241_s2 + $0x3b4] sm:$0xf0] }
 0x2b2   : > { %5945 = vmatpush.bf16.msra.mxu3 %v8330_v25  ;;  %v8314_v45 = vor.u32 %v9882_v43, %v8313_v1  ;;  %v9796_v1 = vld [vmem:[%s15241_s2 + $0x10c] sm:$0xf]  ;;  %v7979_v43 = vld [vmem:[%s15241_s2 + $0x118] sm:$0xf0]  ;;  %v9986_v53 = vld [vmem:[%s15241_s2 + $0x6f4] sm:$0xf0] }
 0x2b3   : > { %5933 = vmatpush.bf16.msra.mxu2 %v8186_v15  ;;  %v5629_v15 = vadd.f32 %v5628_v41, %v13570_v24 }
 0x2b5   : > { %6062 = vmatpush.bf16.msrb.mxu0 %v7950_v9  ;;  %6075 = vmatpush.bf16.msrb.mxu1 %v8078_v8  ;;  %v9878_v9 = vld [vmem:[%s15241_s2 + $0x394] sm:$0xf0]  ;;  %v9772_v8 = vld [vmem:[%s15241_s2 + $0x4c] sm:$0xf]  ;;  %v5812_v56 = vpop.f32.mrf.mxu0  ;;  %v5825_v16 = vpop.f32.mrf.mxu1 }
 0x2b6   : > { %5946 = vmatpush.bf16.msra.mxu3 %v8314_v45  ;;  %v8298_v57 = vor.u32 %v9878_v9, %v8297_v23  ;;  %v7886_v6 = vor.u32 %v9772_v8, %v7883_v12  ;;  %v8138_v45 = vor.u32 %v9838_v35, %v8137_v32  ;;  %v9834_v23 = vld [vmem:[%s15241_s2 + $0x234] sm:$0xf0]  ;;  %v8478_v9 = vor.u32 %v9920_v21, %v8475_v51  ;;  %v5630_v56 = vpop.f32.mrf.mxu2  ;;  %v8249_v12 = vld [vmem:[%s15241_s2 + $0x328] sm:$0xf]  ;;  %v8459_v16 = vld [vmem:[%s15241_s2 + $0x4d8] sm:$0xf0] }
 0x2b7   : > { %5934 = vmatpush.bf16.msra.mxu2 %v8170_v17  ;;  %v8606_v8 = vor.u32 %v9952_v59, %v8603_v61  ;;  %v9948_v17 = vld [vmem:[%s15241_s2 + $0x5cc] sm:$0xf]  ;;  %v8443_v35 = vld [vmem:[%s15241_s2 + $0x4b8] sm:$0xf0]  ;;  %v8841_v51 = vld [vmem:[%s15241_s2 + $0x7c8] sm:$0xf] }
 0x2b8   : > { %v10014_v59 = vld [vmem:[%s15241_s2 + $0x7d4] sm:$0xf0]  ;;  %v9908_v61 = vld [vmem:[%s15241_s2 + $0x48c] sm:$0xf] }
 0x2b9   : > { %6063 = vmatpush.bf16.msrb.mxu0 %v7934_v47  ;;  %6076 = vmatpush.bf16.msrb.mxu1 %v8062_v50  ;;  %v5641_v47 = vpop.f32.mrf.mxu3  ;;  %v7867_v50 = vld [vmem:[%s15241_s2 + $0x38] sm:$0xf0]  ;;  %v9978_v56 = vld [vmem:[%s15241_s2 + $0x6b4] sm:$0xf0] }
 0x2ba   : > { %5947 = vmatpush.bf16.msra.mxu3 %v8298_v57  ;;  %v7870_v25 = vor.u32 %v9768_v22, %v7867_v50  ;;  %v8587_v57 = vld [vmem:[%s15241_s2 + $0x5d8] sm:$0xf0]  ;;  %v5642_v52 = vadd.f32 %v5641_v47, %v5629_v15  ;;  %v8462_v22 = vor.u32 %v9916_v14, %v8459_v16  ;;  %v9862_v47 = vld [vmem:[%s15241_s2 + $0x314] sm:$0xf0]  ;;  %v8729_v50 = vld [vmem:[%s15241_s2 + $0x6e8] sm:$0xf] }
 0x2bb   : > { %5935 = vmatpush.bf16.msra.mxu2 %v8154_v28  ;;  %v8590_v41 = vor.u32 %v9948_v17, %v8587_v57  ;;  %v10018_v28 = vld [vmem:[%s15241_s2 + $0x7f4] sm:$0xf0]  ;;  %v9904_v16 = vld [vmem:[%s15241_s2 + $0x46c] sm:$0xf]  ;;  %v8411_v17 = vld [vmem:[%s15241_s2 + $0x478] sm:$0xf0] }
 0x2bc   : > { %v5655_v32 = vadd.f32 %v13766_v26, %v5642_v52  ;;  %v8234_v26 = vor.u32 %v9862_v47, %v8233_v37  ;;  %v10010_v14 = vld [vmem:[%s15241_s2 + $0x7b4] sm:$0xf0]  ;;  %v9936_v57 = vld [vmem:[%s15241_s2 + $0x56c] sm:$0xf]  ;;  %v8539_v52 = vld [vmem:[%s15241_s2 + $0x578] sm:$0xf0]  ;;  %v8414_v47 = vor.u32 %v9904_v16, %v8411_v17 }
 0x2bd   : > { %6064 = vmatpush.bf16.msrb.mxu0 %v7918_v2  ;;  %6077 = vmatpush.bf16.msrb.mxu1 %v8046_v55  ;;  %v9764_v2 = vld [vmem:[%s15241_s2 + $0xc] sm:$0xf]  ;;  %v7851_v55 = vld [vmem:[%s15241_s2 + $0x18] sm:$0xf0] }
 0x2be   : > { %5948 = vmatpush.bf16.msra.mxu3 %v8282_v29  ;;  %v7854_v63 = vor.u32 %v9764_v2, %v7851_v55  ;;  %v9912_v29 = vld [vmem:[%s15241_s2 + $0x4ac] sm:$0xf]  ;;  %v5680_v40 = vpop.f32.mrf.mxu2  ;;  %v8713_v55 = vld [vmem:[%s15241_s2 + $0x6c8] sm:$0xf]  ;;  %v5668_v15 = vadd.f32 %v13777_v36, %v5655_v32 }
 0x2bf   : > { %5936 = vmatpush.bf16.msra.mxu2 %v8138_v45  ;;  %v8427_v45 = vld [vmem:[%s15241_s2 + $0x498] sm:$0xf0]  ;;  %v9932_v32 = vld [vmem:[%s15241_s2 + $0x54c] sm:$0xf] }
 0x2c0   : > { %v5681_v36 = vadd.f32 %v5680_v40, %v5668_v15  ;;  %v9970_v40 = vld [vmem:[%s15241_s2 + $0x674] sm:$0xf0]  ;;  %v9924_v17 = vld [vmem:[%s15241_s2 + $0x50c] sm:$0xf] }
 0x2c1   : > { %6065 = vmatpush.bf16.msrb.mxu0 %v7902_v4  ;;  %6078 = vmatpush.bf16.msrb.mxu1 %v8030_v0  ;;  %v7982_v4 = vor.u32 %v9796_v1, %v7979_v43  ;;  %v8121_v0 = vld [vmem:[%s15241_s2 + $0x228] sm:$0xf]  ;;  %v5643_v24 = vpop.f32.mrf.mxu3  ;;  %v9982_v1 = vld [vmem:[%s15241_s2 + $0x6d4] sm:$0xf0]  ;;  %v8446_v43 = vor.u32 %v9912_v29, %v8443_v35  ;;  %v8395_v29 = vld [vmem:[%s15241_s2 + $0x458] sm:$0xf0] }
 0x2c2   : > { %5949 = vmatpush.bf16.msra.mxu3 %v8266_v46  ;;  %v8122_v18 = vor.u32 %v9834_v23, %v8121_v0  ;;  %v9940_v46 = vld [vmem:[%s15241_s2 + $0x58c] sm:$0xf]  ;;  %v8714_v23 = vor.u32 %v9982_v1, %v8713_v55  ;;  %v8430_v24 = vor.u32 %v9908_v61, %v8427_v45  ;;  %v8523_v35 = vld [vmem:[%s15241_s2 + $0x558] sm:$0xf0] }
 0x2c3   : > { %v8526_v1 = vor.u32 %v9932_v32, %v8523_v35  ;;  %v8507_v61 = vld [vmem:[%s15241_s2 + $0x538] sm:$0xf0]  ;;  %v8761_v32 = vld [vmem:[%s15241_s2 + $0x728] sm:$0xf]  ;;  %v9994_v35 = vld [vmem:[%s15241_s2 + $0x734] sm:$0xf0] }
 0x2c4   : > { %5937 = vmatpush.bf16.msra.mxu2 %v8122_v18 }
 0x2c5   : > { %6066 = vmatpush.bf16.msrb.mxu0 %v7886_v6  ;;  %6079 = vmatpush.bf16.msrb.mxu1 %v8014_v54  ;;  %v8250_v6 = vor.u32 %v9866_v42, %v8249_v12  ;;  %v8105_v54 = vld [vmem:[%s15241_s2 + $0x208] sm:$0xf] }
 0x2c6   : > { %v8825_v42 = vld [vmem:[%s15241_s2 + $0x7a8] sm:$0xf] }
 0x2c7   : > { %5950 = vmatpush.bf16.msra.mxu3 %v8250_v6 }
 0x2c9   : > { %6067 = vmatpush.bf16.msrb.mxu0 %v7870_v25  ;;  %6080 = vmatpush.bf16.msrb.mxu1 %v7998_v39  ;;  %v8571_v25 = vld [vmem:[%s15241_s2 + $0x5b8] sm:$0xf0]  ;;  %v8106_v39 = vor.u32 %v9830_v49, %v8105_v54  ;;  %v5693_v2 = vpop.f32.mrf.mxu3  ;;  %v8826_v54 = vor.u32 %v10010_v14, %v8825_v42  ;;  %v5682_v49 = vpop.f32.mrf.mxu2  ;;  %v9892_v42 = vld [vmem:[%s15241_s2 + $0x40c] sm:$0xf] }
 0x2ca   : > { %v8574_v21 = vor.u32 %v9944_v38, %v8571_v25  ;;  %v5694_v18 = vadd.f32 %v5693_v2, %v5681_v36  ;;  %v14625_v2 = vld [vmem:[%s15242_s3 + $0x1] ss:$2 sm:$0xf]  ;;  %v8649_v36 = vld [vmem:[%s15241_s2 + $0x648] sm:$0xf] }
 0x2cb   : > { %5938 = vmatpush.bf16.msra.mxu2 %v8106_v39  ;;  %5951 = vmatpush.bf16.msra.mxu3 %v8234_v26  ;;  %v8665_v39 = vld [vmem:[%s15241_s2 + $0x668] sm:$0xf]  ;;  %v6218_v15 = vperm.slane %v14625_v2, 0  ;;  %v8363_v14 = vld [vmem:[%s15241_s2 + $0x418] sm:$0xf0] }
 0x2cc   : > { %v5707_v26 = vadd.f32 %v13960_v48, %v5694_v18  ;;  %v8793_v48 = vld [vmem:[%s15241_s2 + $0x768] sm:$0xf]  ;;  %v8666_v45 = vor.u32 %v9970_v40, %v8665_v39  ;;  %v8987_v18 = vld [vmem:[%s15241_s2 + $0x8f8] sm:$0xf0]  ;;  %v10076_v39 = vld [vmem:[%s15241_s2 + $0x9cc] sm:$0xf] }
 0x2cd   : > { %6068 = vmatpush.bf16.msrb.mxu0 %v7854_v63  ;;  %6081 = vmatpush.bf16.msrb.mxu1 %v7982_v4  ;;  %v8555_v63 = vld [vmem:[%s15241_s2 + $0x598] sm:$0xf0]  ;;  %v14561_v4 = vpop.f32.mrf.mxu0  ;;  %v14563_v0 = vpop.f32.mrf.mxu1 }
 0x2ce   : > { %v8558_v12 = vor.u32 %v9940_v46, %v8555_v63  ;;  %5939 = vmatmul.bf16.vlgmr.msra.gmra.mxu2 %v13532_v3  ;;  %5952 = vmatmul.bf16.vlgmr.msra.gmra.mxu3 %v13536_v13  ;;  %v5720_v63 = vadd.f32 %v13968_v30, %v5707_v26  ;;  %v9998_v30 = vld [vmem:[%s15241_s2 + $0x754] sm:$0xf0]  ;;  %v9099_v26 = vld [vmem:[%s15241_s2 + $0x9d8] sm:$0xf0] }
 0x2d0   : > { %6069 = vmatmul.bf16.vlgmr.msrb.gmra.mxu0 %v12835_v44  ;;  %6082 = vmatmul.bf16.vlgmr.msrb.gmra.mxu1 %v12846_v7  ;;  %v8730_v44 = vor.u32 %v9986_v53, %v8729_v50  ;;  %v8858_v7 = vor.u32 %v10018_v28, %v8857_v27  ;;  %v8542_v50 = vor.u32 %v9936_v57, %v8539_v52  ;;  %v8809_v53 = vld [vmem:[%s15241_s2 + $0x788] sm:$0xf]  ;;  %v10006_v27 = vld [vmem:[%s15241_s2 + $0x794] sm:$0xf0]  ;;  %v9900_v28 = vld [vmem:[%s15241_s2 + $0x44c] sm:$0xf] }
 0x2d1   : > { %6113 = vmatpush.bf16.msra.mxu0 %v8478_v9  ;;  %6126 = vmatpush.bf16.msra.mxu1 %v8606_v8  ;;  %v8842_v9 = vor.u32 %v10014_v59, %v8841_v51  ;;  %v8697_v8 = vld [vmem:[%s15241_s2 + $0x6a8] sm:$0xf]  ;;  %v5695_v37 = vpop.f32.mrf.mxu3  ;;  %v8398_v55 = vor.u32 %v9900_v28, %v8395_v29  ;;  %v8379_v51 = vld [vmem:[%s15241_s2 + $0x438] sm:$0xf0]  ;;  %v9928_v59 = vld [vmem:[%s15241_s2 + $0x52c] sm:$0xf] }
 0x2d2   : > { %5983 = vmatpush.bf16.msrb.mxu2 %v8730_v44  ;;  %5996 = vmatpush.bf16.msrb.mxu3 %v8858_v7  ;;  %v8698_v6 = vor.u32 %v9978_v56, %v8697_v8  ;;  %v8810_v7 = vor.u32 %v10006_v27, %v8809_v53  ;;  %v8510_v56 = vor.u32 %v9928_v59, %v8507_v61  ;;  %v8491_v57 = vld [vmem:[%s15241_s2 + $0x518] sm:$0xf0]  ;;  %v10048_v52 = vld [vmem:[%s15241_s2 + $0x8ec] sm:$0xf]  ;;  %v9962_v53 = vld [vmem:[%s15241_s2 + $0x634] sm:$0xf0] }
 0x2d3   : > { %v8990_v28 = vor.u32 %v10048_v52, %v8987_v18  ;;  %v9102_v61 = vor.u32 %v10076_v39, %v9099_v26  ;;  %v10036_v52 = vld [vmem:[%s15241_s2 + $0x88c] sm:$0xf]  ;;  %v8939_v18 = vld [vmem:[%s15241_s2 + $0x898] sm:$0xf0] }
 0x2d4   : > { %v9051_v39 = vld [vmem:[%s15241_s2 + $0x978] sm:$0xf0] }
 0x2d5   : > { %6114 = vmatpush.bf16.msra.mxu0 %v8462_v22  ;;  %6127 = vmatpush.bf16.msra.mxu1 %v8590_v41  ;;  %v8681_v22 = vld [vmem:[%s15241_s2 + $0x688] sm:$0xf]  ;;  %v9974_v41 = vld [vmem:[%s15241_s2 + $0x694] sm:$0xf0]  ;;  %v5864_v38 = vpop.f32.mrf.mxu0  ;;  %v5877_v25 = vpop.f32.mrf.mxu1 }
 0x2d6   : > { %5984 = vmatpush.bf16.msrb.mxu2 %v8714_v23  ;;  %5997 = vmatpush.bf16.msrb.mxu3 %v8842_v9  ;;  %v8682_v44 = vor.u32 %v9974_v41, %v8681_v22  ;;  %v9966_v23 = vld [vmem:[%s15241_s2 + $0x654] sm:$0xf0]  ;;  %v8777_v9 = vld [vmem:[%s15241_s2 + $0x748] sm:$0xf]  ;;  %v8366_v41 = vor.u32 %v9892_v42, %v8363_v14  ;;  %v10044_v38 = vld [vmem:[%s15241_s2 + $0x8cc] sm:$0xf] }
 0x2d7   : > { %v8650_v37 = vor.u32 %v9966_v23, %v8649_v36  ;;  %v8778_v22 = vor.u32 %v9998_v30, %v8777_v9  ;;  %v8971_v25 = vld [vmem:[%s15241_s2 + $0x8d8] sm:$0xf0]  ;;  %v10146_v36 = vld [vmem:[%s15241_s2 + $0xbf4] sm:$0xf0]  ;;  %v10040_v23 = vld [vmem:[%s15241_s2 + $0x8ac] sm:$0xf] }
 0x2d8   : > { %v8974_v59 = vor.u32 %v10044_v38, %v8971_v25  ;;  %v8955_v9 = vld [vmem:[%s15241_s2 + $0x8b8] sm:$0xf0]  ;;  %v9225_v30 = vld [vmem:[%s15241_s2 + $0xac8] sm:$0xf]  ;;  %v10110_v42 = vld [vmem:[%s15241_s2 + $0xad4] sm:$0xf0] }
 0x2d9   : > { %6115 = vmatpush.bf16.msra.mxu0 %v8446_v43  ;;  %6128 = vmatpush.bf16.msra.mxu1 %v8574_v21  ;;  %v10002_v43 = vld [vmem:[%s15241_s2 + $0x774] sm:$0xf0]  ;;  %v9896_v21 = vld [vmem:[%s15241_s2 + $0x42c] sm:$0xf]  ;;  %v8958_v14 = vor.u32 %v10040_v23, %v8955_v9  ;;  %v8923_v38 = vld [vmem:[%s15241_s2 + $0x878] sm:$0xf0] }
 0x2da   : > { %5985 = vmatpush.bf16.msrb.mxu2 %v8698_v6  ;;  %5998 = vmatpush.bf16.msrb.mxu3 %v8826_v54  ;;  %v8794_v46 = vor.u32 %v10002_v43, %v8793_v48  ;;  %v8382_v8 = vor.u32 %v9896_v21, %v8379_v51  ;;  %v10080_v6 = vld [vmem:[%s15241_s2 + $0x9ec] sm:$0xf]  ;;  %v9115_v54 = vld [vmem:[%s15241_s2 + $0x9f8] sm:$0xf0]  ;;  %v8617_v43 = vld [vmem:[%s15241_s2 + $0x608] sm:$0xf] }
 0x2db   : > { %v9118_v29 = vor.u32 %v10080_v6, %v9115_v54  ;;  %v9958_v21 = vld [vmem:[%s15241_s2 + $0x614] sm:$0xf0]  ;;  %v8745_v51 = vld [vmem:[%s15241_s2 + $0x708] sm:$0xf]  ;;  %v10068_v6 = vld [vmem:[%s15241_s2 + $0x98c] sm:$0xf] }
 0x2dc   : > { %v9067_v54 = vld [vmem:[%s15241_s2 + $0x998] sm:$0xf0]  ;;  %v10064_v25 = vld [vmem:[%s15241_s2 + $0x96c] sm:$0xf]  ;;  %v10098_v23 = vld [vmem:[%s15241_s2 + $0xa74] sm:$0xf0] }
 0x2dd   : > { %6116 = vmatpush.bf16.msra.mxu0 %v8430_v24  ;;  %6129 = vmatpush.bf16.msra.mxu1 %v8558_v12  ;;  %v5732_v24 = vpop.f32.mrf.mxu2  ;;  %v5745_v12 = vpop.f32.mrf.mxu3 }
 0x2de   : > { %5986 = vmatpush.bf16.msrb.mxu2 %v8682_v44  ;;  %5999 = vmatpush.bf16.msrb.mxu3 %v8810_v7  ;;  %v5733_v16 = vadd.f32 %v5732_v24, %v5720_v63  ;;  %v10156_v44 = vld [vmem:[%s10531_s14] sm:$0xff]  ;;  %v9369_v63 = vld [vmem:[%s15241_s2 + $0xbe8] sm:$0xf]  ;;  %v8618_v24 = vor.u32 %v9958_v21, %v8617_v43  ;;  %v10134_v43 = vld [vmem:[%s15241_s2 + $0xb94] sm:$0xf0] }
 0x2df   : > { %v10028_v21 = vld [vmem:[%s15241_s2 + $0x84c] sm:$0xf] }
 0x2e0   : > { %v5746_v49 = vadd.f32 %v5745_v12, %v5733_v16 }
 0x2e1   : > { %6117 = vmatpush.bf16.msra.mxu0 %v8414_v47  ;;  %6130 = vmatpush.bf16.msra.mxu1 %v8542_v50  ;;  %v8494_v47 = vor.u32 %v9924_v17, %v8491_v57  ;;  %v8633_v50 = vld [vmem:[%s15241_s2 + $0x628] sm:$0xf]  ;;  %v10142_v57 = vld [vmem:[%s15241_s2 + $0xbd4] sm:$0xf0] }
 0x2e2   : > { %5987 = vmatpush.bf16.msrb.mxu2 %v8666_v45  ;;  %6000 = vmatpush.bf16.msrb.mxu3 %v8794_v46  ;;  %v6226_v27 = vadd.f32 %v6218_v15, %v5746_v49  ;;  %v8634_v40 = vor.u32 %v9962_v53, %v8633_v50  ;;  %v9990_v15 = vld [vmem:[%s15241_s2 + $0x714] sm:$0xf0]  ;;  %v9241_v45 = vld [vmem:[%s15241_s2 + $0xae8] sm:$0xf] }
 0x2e3   : > { %v10114_v46 = vld [vmem:[%s15241_s2 + $0xaf4] sm:$0xf0]  ;;  %v8746_v12 = vor.u32 %v9990_v15, %v8745_v51  ;;  %v9353_v17 = vld [vmem:[%s15241_s2 + $0xbc8] sm:$0xf]  ;;  %v8907_v51 = vld [vmem:[%s15241_s2 + $0x858] sm:$0xf0] }
 0x2e4   : > { %v6230_v7 = vadd.f32 %v10156_v44, %v6226_v27  ;;  %v9209_v50 = vld [vmem:[%s15241_s2 + $0xaa8] sm:$0xf]  ;;  %v10106_v53 = vld [vmem:[%s15241_s2 + $0xab4] sm:$0xf0]  ;;  %v8942_v27 = vor.u32 %v10036_v52, %v8939_v18  ;;  %v8910_v9 = vor.u32 %v10028_v21, %v8907_v51  ;;  %v8219_v21 = vld [vmem:[%s15241_s2 + $0x2f8] sm:$0xf0] }
 0x2e5   : > { %6118 = vmatpush.bf16.msra.mxu0 %v8398_v55  ;;  %6131 = vmatpush.bf16.msra.mxu1 %v8526_v1  ;;  %v8762_v55 = vor.u32 %v9994_v35, %v8761_v32  ;;  %v5734_v1 = vpop.f32.mrf.mxu2  ;;  %v5747_v48 = vpop.f32.mrf.mxu3  ;;  %v10138_v32 = vld [vmem:[%s15241_s2 + $0xbb4] sm:$0xf0]  ;;  %v10032_v35 = vld [vmem:[%s15241_s2 + $0x86c] sm:$0xf]  ;;  %v9210_v26 = vor.u32 %v10106_v53, %v9209_v50  ;;  %v9003_v50 = vld [vmem:[%s15241_s2 + $0x918] sm:$0xf0] }
 0x2e6   : > { %5988 = vmatpush.bf16.msrb.mxu2 %v8650_v37  ;;  %6001 = vmatpush.bf16.msrb.mxu3 %v8778_v22  ;;  %6234 = vst [vmem:[%s14703_s12] sm:$0xff] %v6230_v7  ;;  %v9193_v7 = vld [vmem:[%s15241_s2 + $0xa88] sm:$0xf]  ;;  %v9054_v1 = vor.u32 %v10064_v25, %v9051_v39  ;;  %v10122_v25 = vld [vmem:[%s15241_s2 + $0xb34] sm:$0xf0]  ;;  %v9888_v51 = vld [vmem:[%s15241_s2 + $0x3ec] sm:$0xf] }
 0x2e7   : > { %v9321_v48 = vld [vmem:[%s15241_s2 + $0xb88] sm:$0xf] }
 0x2e9   : > { %6119 = vmatpush.bf16.msra.mxu0 %v8382_v8  ;;  %6132 = vmatpush.bf16.msra.mxu1 %v8510_v56  ;;  %v10072_v8 = vld [vmem:[%s15241_s2 + $0x9ac] sm:$0xf]  ;;  %v9083_v56 = vld [vmem:[%s15241_s2 + $0x9b8] sm:$0xf0] }
 0x2ea   : > { %5989 = vmatpush.bf16.msrb.mxu2 %v8634_v40  ;;  %6002 = vmatpush.bf16.msrb.mxu3 %v8762_v55  ;;  %v9086_v16 = vor.u32 %v10072_v8, %v9083_v56  ;;  %v10102_v40 = vld [vmem:[%s15241_s2 + $0xa94] sm:$0xf0]  ;;  %v8926_v55 = vor.u32 %v10032_v35, %v8923_v38  ;;  %v9305_v56 = vld [vmem:[%s15241_s2 + $0xb68] sm:$0xf] }
 0x2eb   : > { %v10090_v35 = vld [vmem:[%s15241_s2 + $0xa34] sm:$0xf0]  ;;  %v9273_v38 = vld [vmem:[%s15241_s2 + $0xb28] sm:$0xf] }
 0x2ed   : > { %6120 = vmatpush.bf16.msra.mxu0 %v8366_v41  ;;  %6133 = vmatpush.bf16.msra.mxu1 %v8494_v47  ;;  %v5914_v49 = vpop.f32.mrf.mxu0  ;;  %v5927_v37 = vpop.f32.mrf.mxu1  ;;  %v9226_v41 = vor.u32 %v10110_v42, %v9225_v30  ;;  %v9354_v47 = vor.u32 %v10142_v57, %v9353_v17  ;;  %v9019_v30 = vld [vmem:[%s15241_s2 + $0x938] sm:$0xf0]  ;;  %v10094_v17 = vld [vmem:[%s15241_s2 + $0xa54] sm:$0xf0] }
 0x2ee   : > { %5990 = vmatpush.bf16.msrb.mxu2 %v8618_v24  ;;  %6003 = vmatpush.bf16.msrb.mxu3 %v8746_v12  ;;  %v14778_v22 = vadd.f32 %v5927_v37, %v5914_v49  ;;  %v10130_v24 = vld [vmem:[%s15241_s2 + $0xb74] sm:$0xf0]  ;;  %v10024_v12 = vld [vmem:[%s15241_s2 + $0x82c] sm:$0xf]  ;;  %v14860_v18 = vpop.f32.mrf.mxu2 }
 0x2ef   : > { %v10126_v49 = vld [vmem:[%s15241_s2 + $0xb54] sm:$0xf0]  ;;  %v10020_v37 = vld [vmem:[%s15241_s2 + $0x80c] sm:$0xf] }
 0x2f0   : > { %6121 = vmatmul.bf16.vlgmr.msra.gmra.mxu0 %v12755_v19  ;;  %6134 = vmatmul.bf16.vlgmr.msra.gmra.mxu1 %v12769_v31  ;;  %v9242_v19 = vor.u32 %v10114_v46, %v9241_v45  ;;  %v9370_v31 = vor.u32 %v10146_v36, %v9369_v63  ;;  %v9194_v46 = vor.u32 %v10102_v40, %v9193_v7  ;;  %v9177_v36 = vld [vmem:[%s15241_s2 + $0xa68] sm:$0xf] }
 0x2f1   : > { %6165 = vmatpush.bf16.msrb.mxu0 %v8990_v28  ;;  %6178 = vmatpush.bf16.msrb.mxu1 %v9118_v29  ;;  %v9070_v28 = vor.u32 %v10068_v6, %v9067_v54  ;;  %v9337_v29 = vld [vmem:[%s15241_s2 + $0xba8] sm:$0xf]  ;;  %v9322_v63 = vor.u32 %v10134_v43, %v9321_v48  ;;  %v9178_v42 = vor.u32 %v10098_v23, %v9177_v36  ;;  %v14862_v6 = vpop.f32.mrf.mxu3  ;;  %v10118_v48 = vld [vmem:[%s15241_s2 + $0xb14] sm:$0xf0]  ;;  %v9856_v43 = vld [vmem:[%s15241_s2 + $0x2ec] sm:$0xf] }
 0x2f2   : > { %6035 = vmatpush.bf16.msra.mxu2 %v9242_v19  ;;  %6048 = vmatpush.bf16.msra.mxu3 %v9370_v31  ;;  %v9338_v44 = vor.u32 %v10138_v32, %v9337_v29  ;;  %v8891_v19 = vld [vmem:[%s15241_s2 + $0x838] sm:$0xf0]  ;;  %v10056_v31 = vld [vmem:[%s15241_s2 + $0x92c] sm:$0xf]  ;;  %v9289_v54 = vld [vmem:[%s15241_s2 + $0xb48] sm:$0xf] }
 0x2f3   : > { %5991 = vmatmul.bf16.vlgmr.msrb.gmra.mxu2 %v13470_v33  ;;  %6004 = vmatmul.bf16.vlgmr.msrb.gmra.mxu3 %v13472_v34  ;;  %v8894_v57 = vor.u32 %v10024_v12, %v8891_v19  ;;  %v9022_v52 = vor.u32 %v10056_v31, %v9019_v30  ;;  %v9145_v32 = vld [vmem:[%s15241_s2 + $0xa28] sm:$0xf]  ;;  %v8203_v36 = vld [vmem:[%s15241_s2 + $0x2d8] sm:$0xf0]  ;;  %v9880_v19 = vld [vmem:[%s15241_s2 + $0x3ac] sm:$0xf] }
 0x2f4   : > { %v9146_v39 = vor.u32 %v10090_v35, %v9145_v32  ;;  %v9129_v40 = vld [vmem:[%s15241_s2 + $0xa08] sm:$0xf]  ;;  %v8187_v12 = vld [vmem:[%s15241_s2 + $0x2b8] sm:$0xf0] }
 0x2f5   : > { %6166 = vmatpush.bf16.msrb.mxu0 %v8974_v59  ;;  %6179 = vmatpush.bf16.msrb.mxu1 %v9102_v61  ;;  %v10060_v59 = vld [vmem:[%s15241_s2 + $0x94c] sm:$0xf]  ;;  %v9035_v61 = vld [vmem:[%s15241_s2 + $0x958] sm:$0xf0]  ;;  %v5916_v15 = vpop.f32.mrf.mxu0  ;;  %v5929_v45 = vpop.f32.mrf.mxu1 }
 0x2f6   : > { %6036 = vmatpush.bf16.msra.mxu2 %v9226_v41  ;;  %6049 = vmatpush.bf16.msra.mxu3 %v9354_v47  ;;  %v9038_v8 = vor.u32 %v10060_v59, %v9035_v61  ;;  %v8875_v41 = vld [vmem:[%s15241_s2 + $0x818] sm:$0xf0]  ;;  %v10052_v47 = vld [vmem:[%s15241_s2 + $0x90c] sm:$0xf]  ;;  %v8222_v45 = vor.u32 %v9856_v43, %v8219_v21 }
 0x2f7   : > { %v9006_v29 = vor.u32 %v10052_v47, %v9003_v50  ;;  %v8347_v59 = vld [vmem:[%s15241_s2 + $0x3f8] sm:$0xf0]  ;;  %v9872_v50 = vld [vmem:[%s15241_s2 + $0x36c] sm:$0xf] }
 0x2f8   : > { %v8315_v31 = vld [vmem:[%s15241_s2 + $0x3b8] sm:$0xf0]  ;;  %v9828_v21 = vld [vmem:[%s15241_s2 + $0x20c] sm:$0xf] }
 0x2f9   : > { %6167 = vmatpush.bf16.msrb.mxu0 %v8958_v14  ;;  %6180 = vmatpush.bf16.msrb.mxu1 %v9086_v16  ;;  %v9306_v14 = vor.u32 %v10130_v24, %v9305_v56  ;;  %v9161_v16 = vld [vmem:[%s15241_s2 + $0xa48] sm:$0xf]  ;;  %v5799_v7 = vpop.f32.mrf.mxu3  ;;  %v9848_v24 = vld [vmem:[%s15241_s2 + $0x2ac] sm:$0xf]  ;;  %v8155_v47 = vld [vmem:[%s15241_s2 + $0x278] sm:$0xf0] }
 0x2fa   : > { %6037 = vmatpush.bf16.msra.mxu2 %v9210_v26  ;;  %6050 = vmatpush.bf16.msra.mxu3 %v9338_v44  ;;  %v9162_v53 = vor.u32 %v10094_v17, %v9161_v16  ;;  %v9274_v26 = vor.u32 %v10122_v25, %v9273_v38  ;;  %v5786_v44 = vpop.f32.mrf.mxu2  ;;  %v8190_v30 = vor.u32 %v9848_v24, %v8187_v12  ;;  %v8171_v16 = vld [vmem:[%s15241_s2 + $0x298] sm:$0xf0]  ;;  %v9876_v17 = vld [vmem:[%s15241_s2 + $0x38c] sm:$0xf] }
 0x2fb   : > { %v8139_v38 = vld [vmem:[%s15241_s2 + $0x258] sm:$0xf0]  ;;  %v9868_v25 = vld [vmem:[%s15241_s2 + $0x34c] sm:$0xf] }
 0x2fc   : > { %v9980_v12 = vld [vmem:[%s15241_s2 + $0x6cc] sm:$0xf] }
 0x2fd   : > { %6168 = vmatpush.bf16.msrb.mxu0 %v8942_v27  ;;  %6181 = vmatpush.bf16.msrb.mxu1 %v9070_v28  ;;  %v9290_v27 = vor.u32 %v10126_v49, %v9289_v54  ;;  %v8878_v28 = vor.u32 %v10020_v37, %v8875_v41  ;;  %v9840_v41 = vld [vmem:[%s15241_s2 + $0x26c] sm:$0xf] }
 0x2fe   : > { %6038 = vmatpush.bf16.msra.mxu2 %v9194_v46  ;;  %6051 = vmatpush.bf16.msra.mxu3 %v9322_v63  ;;  %v8350_v46 = vor.u32 %v9888_v51, %v8347_v59  ;;  %v9852_v63 = vld [vmem:[%s15241_s2 + $0x2cc] sm:$0xf]  ;;  %v8107_v51 = vld [vmem:[%s15241_s2 + $0x218] sm:$0xf0] }
 0x301   : > { %6169 = vmatpush.bf16.msrb.mxu0 %v8926_v55  ;;  %6182 = vmatpush.bf16.msrb.mxu1 %v9054_v1  ;;  %v10086_v55 = vld [vmem:[%s15241_s2 + $0xa14] sm:$0xf0]  ;;  %v9257_v1 = vld [vmem:[%s15241_s2 + $0xb08] sm:$0xf] }
 0x302   : > { %6039 = vmatpush.bf16.msra.mxu2 %v9178_v42  ;;  %6052 = vmatpush.bf16.msra.mxu3 %v9306_v14  ;;  %v9130_v61 = vor.u32 %v10086_v55, %v9129_v40  ;;  %v9258_v15 = vor.u32 %v10118_v48, %v9257_v1  ;;  %v8318_v42 = vor.u32 %v9880_v19, %v8315_v31  ;;  %v9844_v14 = vld [vmem:[%s15241_s2 + $0x28c] sm:$0xf]  ;;  %v8123_v55 = vld [vmem:[%s15241_s2 + $0x238] sm:$0xf0] }
 0x303   : > { %v8174_v49 = vor.u32 %v9844_v14, %v8171_v16  ;;  %v9832_v40 = vld [vmem:[%s15241_s2 + $0x22c] sm:$0xf]  ;;  %v8715_v19 = vld [vmem:[%s15241_s2 + $0x6d8] sm:$0xf0] }
 0x304   : > { %v9864_v1 = vld [vmem:[%s15241_s2 + $0x32c] sm:$0xf]  ;;  %v8126_v48 = vor.u32 %v9832_v40, %v8123_v55  ;;  %v8718_v16 = vor.u32 %v9980_v12, %v8715_v19  ;;  %v8651_v55 = vld [vmem:[%s15241_s2 + $0x658] sm:$0xf0] }
 0x305   : > { %6170 = vmatpush.bf16.msrb.mxu0 %v8910_v9  ;;  %6183 = vmatpush.bf16.msrb.mxu1 %v9038_v8  ;;  %v8206_v8 = vor.u32 %v9852_v63, %v8203_v36  ;;  %v10016_v63 = vld [vmem:[%s15241_s2 + $0x7ec] sm:$0xf]  ;;  %v8859_v36 = vld [vmem:[%s15241_s2 + $0x7f8] sm:$0xf0] }
 0x306   : > { %6040 = vmatpush.bf16.msra.mxu2 %v9162_v53  ;;  %6053 = vmatpush.bf16.msra.mxu3 %v9290_v27  ;;  %v8283_v53 = vld [vmem:[%s15241_s2 + $0x378] sm:$0xf0]  ;;  %v8158_v27 = vor.u32 %v9840_v41, %v8155_v47  ;;  %v8862_v24 = vor.u32 %v10016_v63, %v8859_v36  ;;  %v10012_v31 = vld [vmem:[%s15241_s2 + $0x7cc] sm:$0xf] }
 0x307   : > { %v9972_v47 = vld [vmem:[%s15241_s2 + $0x68c] sm:$0xf]  ;;  %v8747_v12 = vld [vmem:[%s15241_s2 + $0x718] sm:$0xf0] }
 0x308   : > { %v10112_v19 = vld [vmem:[%s15241_s2 + $0xaec] sm:$0xf] }
 0x309   : > { %6171 = vmatpush.bf16.msrb.mxu0 %v8894_v57  ;;  %6184 = vmatpush.bf16.msrb.mxu1 %v9022_v52  ;;  %v8299_v57 = vld [vmem:[%s15241_s2 + $0x398] sm:$0xf0] }
 0x30a   : > { %6041 = vmatpush.bf16.msra.mxu2 %v9146_v39  ;;  %6054 = vmatpush.bf16.msra.mxu3 %v9274_v26  ;;  %v8302_v37 = vor.u32 %v9876_v17, %v8299_v57  ;;  %v8267_v39 = vld [vmem:[%s15241_s2 + $0x358] sm:$0xf0]  ;;  %v5785_v26 = vadd.f32 %v14860_v18, %v14166_v60  ;;  %v9976_v57 = vld [vmem:[%s15241_s2 + $0x6ac] sm:$0xf] }
 0x30b   : > { %v8270_v7 = vor.u32 %v9868_v25, %v8267_v39  ;;  %v8251_v60 = vld [vmem:[%s15241_s2 + $0x338] sm:$0xf0]  ;;  %v10000_v39 = vld [vmem:[%s15241_s2 + $0x76c] sm:$0xf] }
 0x30c   : > { %v5798_v18 = vadd.f32 %v14862_v6, %v5785_v26  ;;  %v8254_v43 = vor.u32 %v9864_v1, %v8251_v60  ;;  %v8235_v6 = vld [vmem:[%s15241_s2 + $0x318] sm:$0xf0]  ;;  %v9996_v1 = vld [vmem:[%s15241_s2 + $0x74c] sm:$0xf] }
 0x30d   : > { %6172 = vmatpush.bf16.msrb.mxu0 %v8878_v28  ;;  %6185 = vmatpush.bf16.msrb.mxu1 %v9006_v29  ;;  %v14932_v23 = vpop.f32.mrf.mxu0  ;;  %v14934_v9 = vpop.f32.mrf.mxu1  ;;  %v8286_v28 = vor.u32 %v9872_v50, %v8283_v53  ;;  %v9836_v29 = vld [vmem:[%s15241_s2 + $0x24c] sm:$0xf]  ;;  %v8683_v53 = vld [vmem:[%s15241_s2 + $0x698] sm:$0xf0] }
 0x30e   : > { %6042 = vmatpush.bf16.msra.mxu2 %v9130_v61  ;;  %6055 = vmatpush.bf16.msra.mxu3 %v9258_v15  ;;  %v5836_v32 = vpop.f32.mrf.mxu2  ;;  %v5849_v35 = vpop.f32.mrf.mxu3  ;;  %v8142_v44 = vor.u32 %v9836_v29, %v8139_v38  ;;  %v9860_v15 = vld [vmem:[%s15241_s2 + $0x30c] sm:$0xf]  ;;  %v8686_v29 = vor.u32 %v9972_v47, %v8683_v53  ;;  %v8667_v25 = vld [vmem:[%s15241_s2 + $0x678] sm:$0xf0] }
 0x30f   : > { %v8795_v26 = vld [vmem:[%s15241_s2 + $0x778] sm:$0xf0] }
 0x310   : > { %6173 = vmatmul.bf16.vlgmr.msrb.gmra.mxu0 %v13142_v5  ;;  %6186 = vmatmul.bf16.vlgmr.msrb.gmra.mxu1 %v13146_v10  ;;  %v9884_v5 = vld [vmem:[%s15241_s2 + $0x3cc] sm:$0xf]  ;;  %v8331_v10 = vld [vmem:[%s15241_s2 + $0x3d8] sm:$0xf0] }
 0x311   : > { %v8334_v56 = vor.u32 %v9884_v5, %v8331_v10  ;;  %6043 = vmatmul.bf16.vlgmr.msra.gmra.mxu2 %v13754_v20  ;;  %6056 = vmatmul.bf16.vlgmr.msra.gmra.mxu3 %v13758_v11  ;;  %v5811_v5 = vadd.f32 %v14349_v58, %v5798_v18  ;;  %v8110_v10 = vor.u32 %v9828_v21, %v8107_v51  ;;  %v8843_v58 = vld [vmem:[%s15241_s2 + $0x7d8] sm:$0xf0]  ;;  %v6219_v21 = vperm.slane %v14625_v2, 1 }
 0x312   : > { %6087 = vmatpush.bf16.msrb.mxu2 %v8222_v45  ;;  %6100 = vmatpush.bf16.msrb.mxu3 %v8350_v46  ;;  %v9984_v45 = vld [vmem:[%s15241_s2 + $0x6ec] sm:$0xf]  ;;  %v8731_v46 = vld [vmem:[%s15241_s2 + $0x6f8] sm:$0xf0]  ;;  %v8846_v17 = vor.u32 %v10012_v31, %v8843_v58 }
 0x313   : > { %v8779_v60 = vld [vmem:[%s15241_s2 + $0x758] sm:$0xf0] }
 0x314   : > { %v8782_v51 = vor.u32 %v9996_v1, %v8779_v60  ;;  %v9355_v47 = vld [vmem:[%s15241_s2 + $0xbd8] sm:$0xf0]  ;;  %v10128_v60 = vld [vmem:[%s15241_s2 + $0xb6c] sm:$0xf] }
 0x315   : > { %v5968_v52 = vpop.f32.mrf.mxu0  ;;  %v5981_v54 = vpop.f32.mrf.mxu1  ;;  %v9179_v1 = vld [vmem:[%s15241_s2 + $0xa78] sm:$0xf0] }
 0x316   : > { %6088 = vmatpush.bf16.msrb.mxu2 %v8206_v8  ;;  %6101 = vmatpush.bf16.msrb.mxu3 %v8334_v56  ;;  %v5838_v59 = vpop.f32.mrf.mxu2  ;;  %v5851_v61 = vpop.f32.mrf.mxu3  ;;  %v8238_v8 = vor.u32 %v9860_v15, %v8235_v6  ;;  %v8734_v56 = vor.u32 %v9984_v45, %v8731_v46  ;;  %v8699_v54 = vld [vmem:[%s15241_s2 + $0x6b8] sm:$0xf0]  ;;  %v9992_v6 = vld [vmem:[%s15241_s2 + $0x72c] sm:$0xf] }
 0x317   : > { %v9960_v59 = vld [vmem:[%s15241_s2 + $0x62c] sm:$0xf]  ;;  %v8635_v15 = vld [vmem:[%s15241_s2 + $0x638] sm:$0xf0] }
 0x318   : > { %v8763_v45 = vld [vmem:[%s15241_s2 + $0x738] sm:$0xf0]  ;;  %v8638_v63 = vor.u32 %v9960_v59, %v8635_v15 }
 0x319   : > { %v8766_v36 = vor.u32 %v9992_v6, %v8763_v45  ;;  %v9291_v59 = vld [vmem:[%s15241_s2 + $0xb58] sm:$0xf0] }
 0x31a   : > { %6089 = vmatpush.bf16.msrb.mxu2 %v8190_v30  ;;  %6102 = vmatpush.bf16.msrb.mxu3 %v8318_v42  ;;  %v5824_v30 = vadd.f32 %v14360_v62, %v5811_v5  ;;  %v10008_v62 = vld [vmem:[%s15241_s2 + $0x7ac] sm:$0xf] }
 0x31b   : > { %v9956_v5 = vld [vmem:[%s15241_s2 + $0x60c] sm:$0xf] }
 0x31c   : > { %v5837_v52 = vadd.f32 %v5836_v32, %v5824_v30  ;;  %v9243_v30 = vld [vmem:[%s15241_s2 + $0xaf8] sm:$0xf0] }
 0x31e   : > { %6090 = vmatpush.bf16.msrb.mxu2 %v8174_v49  ;;  %6103 = vmatpush.bf16.msrb.mxu3 %v8302_v37  ;;  %v8827_v49 = vld [vmem:[%s15241_s2 + $0x7b8] sm:$0xf0]  ;;  %v8702_v37 = vor.u32 %v9976_v57, %v8699_v54  ;;  %v5850_v50 = vadd.f32 %v5849_v35, %v5837_v52  ;;  %v9968_v35 = vld [vmem:[%s15241_s2 + $0x66c] sm:$0xf]  ;;  %v9246_v54 = vor.u32 %v10112_v19, %v9243_v30 }
 0x31f   : > { %v8830_v41 = vor.u32 %v10008_v62, %v8827_v49  ;;  %v10108_v49 = vld [vmem:[%s15241_s2 + $0xacc] sm:$0xf]  ;;  %v9259_v19 = vld [vmem:[%s15241_s2 + $0xb18] sm:$0xf0] }
 0x320   : > { %v5863_v38 = vadd.f32 %v14561_v4, %v5850_v50  ;;  %v9964_v4 = vld [vmem:[%s15241_s2 + $0x64c] sm:$0xf] }
 0x322   : > { %6091 = vmatpush.bf16.msrb.mxu2 %v8158_v27  ;;  %6104 = vmatpush.bf16.msrb.mxu3 %v8286_v28  ;;  %v10004_v27 = vld [vmem:[%s15241_s2 + $0x78c] sm:$0xf]  ;;  %v5876_v40 = vadd.f32 %v14563_v0, %v5863_v38  ;;  %v8654_v0 = vor.u32 %v9964_v4, %v8651_v55 }
 0x323   : > { %v10096_v4 = vld [vmem:[%s15241_s2 + $0xa6c] sm:$0xf] }
 0x326   : > { %6092 = vmatpush.bf16.msrb.mxu2 %v8142_v44  ;;  %6105 = vmatpush.bf16.msrb.mxu3 %v8270_v7  ;;  %v8670_v44 = vor.u32 %v9968_v35, %v8667_v25  ;;  %v8798_v7 = vor.u32 %v10000_v39, %v8795_v26  ;;  %v10100_v39 = vld [vmem:[%s15241_s2 + $0xa8c] sm:$0xf]  ;;  %v9195_v26 = vld [vmem:[%s15241_s2 + $0xa98] sm:$0xf0] }
 0x32a   : > { %6093 = vmatpush.bf16.msrb.mxu2 %v8126_v48  ;;  %6106 = vmatpush.bf16.msrb.mxu3 %v8254_v43 }
 0x32d   : > { %v15039_v42 = vpop.f32.mrf.mxu0  ;;  %v15041_v14 = vpop.f32.mrf.mxu1 }
 0x32e   : > { %6094 = vmatpush.bf16.msrb.mxu2 %v8110_v10  ;;  %6107 = vmatpush.bf16.msrb.mxu3 %v8238_v8  ;;  %v5888_v18 = vpop.f32.mrf.mxu2  ;;  %v8619_v10 = vld [vmem:[%s15241_s2 + $0x618] sm:$0xf0]  ;;  %v10157_v8 = vld [vmem:[%s10531_s14 + $0x8] sm:$0xff] }
 0x32f   : > { %v5889_v43 = vadd.f32 %v5888_v18, %v5876_v40  ;;  %v8622_v57 = vor.u32 %v9956_v5, %v8619_v10  ;;  %v9307_v18 = vld [vmem:[%s15241_s2 + $0xb78] sm:$0xf0] }
 0x330   : > { %v9275_v5 = vld [vmem:[%s15241_s2 + $0xb38] sm:$0xf0] }
 0x331   : > { %6095 = vmatmul.bf16.vlgmr.msrb.gmra.mxu2 %v13532_v3  ;;  %6108 = vmatmul.bf16.vlgmr.msrb.gmra.mxu3 %v13536_v13  ;;  %v8811_v3 = vld [vmem:[%s15241_s2 + $0x798] sm:$0xf0] }
 0x332   : > { %6139 = vmatpush.bf16.msra.mxu2 %v8734_v56  ;;  %6152 = vmatpush.bf16.msra.mxu3 %v8862_v24  ;;  %v8814_v32 = vor.u32 %v10004_v27, %v8811_v3  ;;  %v5901_v48 = vpop.f32.mrf.mxu3  ;;  %v9988_v24 = vld [vmem:[%s15241_s2 + $0x70c] sm:$0xf] }
 0x333   : > { %v5902_v61 = vadd.f32 %v5901_v48, %v5889_v43  ;;  %v8750_v52 = vor.u32 %v9988_v24, %v8747_v12  ;;  %v10104_v27 = vld [vmem:[%s15241_s2 + $0xaac] sm:$0xf]  ;;  %v9182_v48 = vor.u32 %v10096_v4, %v9179_v1  ;;  %v9310_v43 = vor.u32 %v10128_v60, %v9307_v18  ;;  %v9131_v24 = vld [vmem:[%s15241_s2 + $0xa18] sm:$0xf0] }
 0x334   : > { %v10116_v12 = vld [vmem:[%s15241_s2 + $0xb0c] sm:$0xf] }
 0x335   : > { %v6020_v13 = vpop.f32.mrf.mxu0  ;;  %v6033_v28 = vpop.f32.mrf.mxu1  ;;  %v6227_v46 = vadd.f32 %v6219_v21, %v5902_v61  ;;  %v10092_v21 = vld [vmem:[%s15241_s2 + $0xa4c] sm:$0xf] }
 0x336   : > { %6140 = vmatpush.bf16.msra.mxu2 %v8718_v16  ;;  %6153 = vmatpush.bf16.msra.mxu3 %v8846_v17  ;;  %v5890_v31 = vpop.f32.mrf.mxu2  ;;  %v10144_v16 = vld [vmem:[%s15241_s2 + $0xbec] sm:$0xf]  ;;  %v9371_v17 = vld [vmem:[%s15241_s2 + $0xbf8] sm:$0xf0] }
 0x337   : > { %v6231_v56 = vadd.f32 %v10157_v8, %v6227_v46  ;;  %v9374_v62 = vor.u32 %v10144_v16, %v9371_v17  ;;  %v9211_v28 = vld [vmem:[%s15241_s2 + $0xab8] sm:$0xf0]  ;;  %v10088_v46 = vld [vmem:[%s15241_s2 + $0xa2c] sm:$0xf]  ;;  %v9262_v16 = vor.u32 %v10116_v12, %v9259_v19 }
 0x338   : > { %v9214_v38 = vor.u32 %v10104_v27, %v9211_v28 }
 0x339   : > { %6235 = vst [vmem:[%s14703_s12 + $0x8] sm:$0xff] %v6231_v56  ;;  %v10084_v56 = vld [vmem:[%s15241_s2 + $0xa0c] sm:$0xf] }
 0x33a   : > { %6141 = vmatpush.bf16.msra.mxu2 %v8702_v37  ;;  %6154 = vmatpush.bf16.msra.mxu3 %v8830_v41  ;;  %v5903_v58 = vpop.f32.mrf.mxu3  ;;  %v9227_v37 = vld [vmem:[%s15241_s2 + $0xad8] sm:$0xf0]  ;;  %v10140_v41 = vld [vmem:[%s15241_s2 + $0xbcc] sm:$0xf]  ;;  %v9134_v30 = vor.u32 %v10084_v56, %v9131_v24 }
 0x33b   : > { %v9230_v50 = vor.u32 %v10108_v49, %v9227_v37  ;;  %v9358_v53 = vor.u32 %v10140_v41, %v9355_v47 }
 0x33e   : > { %6142 = vmatpush.bf16.msra.mxu2 %v8686_v29  ;;  %6155 = vmatpush.bf16.msra.mxu3 %v8814_v32  ;;  %v10136_v29 = vld [vmem:[%s15241_s2 + $0xbac] sm:$0xf]  ;;  %v9339_v32 = vld [vmem:[%s15241_s2 + $0xbb8] sm:$0xf0] }
 0x33f   : > { %v9342_v25 = vor.u32 %v10136_v29, %v9339_v32 }
 0x342   : > { %6143 = vmatpush.bf16.msra.mxu2 %v8670_v44  ;;  %6156 = vmatpush.bf16.msra.mxu3 %v8798_v7  ;;  %v9198_v44 = vor.u32 %v10100_v39, %v9195_v26  ;;  %v6220_v26 = vperm.slane %v14625_v2, 2 }
 0x346   : > { %6144 = vmatpush.bf16.msra.mxu2 %v8654_v0  ;;  %6157 = vmatpush.bf16.msra.mxu3 %v8782_v51  ;;  %v9163_v0 = vld [vmem:[%s15241_s2 + $0xa58] sm:$0xf0]  ;;  %v10124_v51 = vld [vmem:[%s15241_s2 + $0xb4c] sm:$0xf] }
 0x347   : > { %v9166_v6 = vor.u32 %v10092_v21, %v9163_v0  ;;  %v9294_v45 = vor.u32 %v10124_v51, %v9291_v59 }
 0x34a   : > { %6145 = vmatpush.bf16.msra.mxu2 %v8638_v63  ;;  %6158 = vmatpush.bf16.msra.mxu3 %v8766_v36  ;;  %v9147_v63 = vld [vmem:[%s15241_s2 + $0xa38] sm:$0xf0]  ;;  %v10120_v36 = vld [vmem:[%s15241_s2 + $0xb2c] sm:$0xf] }
 0x34b   : > { %v9150_v10 = vor.u32 %v10088_v46, %v9147_v63  ;;  %v9278_v8 = vor.u32 %v10120_v36, %v9275_v5  ;;  %v6221_v63 = vperm.slane %v14625_v2, 3 }
 0x34d   : > { %v6070_v3 = vpop.f32.mrf.mxu0  ;;  %v6083_v13 = vpop.f32.mrf.mxu1 }
 0x34e   : > { %6146 = vmatpush.bf16.msra.mxu2 %v8622_v57  ;;  %6159 = vmatpush.bf16.msra.mxu3 %v8750_v52  ;;  %v15160_v35 = vadd.f32 %v6083_v13, %v6070_v3 }
 0x351   : > { %6147 = vmatmul.bf16.vlgmr.msra.gmra.mxu2 %v13470_v33  ;;  %6160 = vmatmul.bf16.vlgmr.msra.gmra.mxu3 %v13472_v34  ;;  %v10132_v33 = vld [vmem:[%s15241_s2 + $0xb8c] sm:$0xf]  ;;  %v9323_v34 = vld [vmem:[%s15241_s2 + $0xb98] sm:$0xf0]  ;;  %v5940_v61 = vpop.f32.mrf.mxu2  ;;  %v5953_v15 = vpop.f32.mrf.mxu3 }
 0x352   : > { %6191 = vmatpush.bf16.msrb.mxu2 %v9246_v54  ;;  %6204 = vmatpush.bf16.msrb.mxu3 %v9374_v62  ;;  %v9326_v7 = vor.u32 %v10132_v33, %v9323_v34  ;;  %v5941_v37 = vadd.f32 %v5940_v61, %v14778_v22  ;;  %v10158_v34 = vld [vmem:[%s10531_s14 + $0x10] sm:$0xff] }
 0x354   : > { %v5954_v41 = vadd.f32 %v5953_v15, %v5941_v37 }
 0x355   : > { %v6072_v40 = vpop.f32.mrf.mxu0  ;;  %v6085_v55 = vpop.f32.mrf.mxu1 }
 0x356   : > { %6192 = vmatpush.bf16.msrb.mxu2 %v9230_v50  ;;  %6205 = vmatpush.bf16.msrb.mxu3 %v9358_v53  ;;  %v5967_v53 = vadd.f32 %v14932_v23, %v5954_v41 }
 0x358   : > { %v5980_v27 = vadd.f32 %v14934_v9, %v5967_v53 }
 0x359   : > { %v5942_v31 = vpop.f32.mrf.mxu2  ;;  %v5955_v58 = vpop.f32.mrf.mxu3 }
 0x35a   : > { %6193 = vmatpush.bf16.msrb.mxu2 %v9214_v38  ;;  %6206 = vmatpush.bf16.msrb.mxu3 %v9342_v25 }
 0x35e   : > { %6194 = vmatpush.bf16.msrb.mxu2 %v9198_v44  ;;  %6207 = vmatpush.bf16.msrb.mxu3 %v9326_v7 }
 0x362   : > { %6195 = vmatpush.bf16.msrb.mxu2 %v9182_v48  ;;  %6208 = vmatpush.bf16.msrb.mxu3 %v9310_v43 }
 0x366   : > { %6196 = vmatpush.bf16.msrb.mxu2 %v9166_v6  ;;  %6209 = vmatpush.bf16.msrb.mxu3 %v9294_v45 }
 0x36a   : > { %6197 = vmatpush.bf16.msrb.mxu2 %v9150_v10  ;;  %6210 = vmatpush.bf16.msrb.mxu3 %v9278_v8  ;;  %v10159_v10 = vld [vmem:[%s10531_s14 + $0x18] sm:$0xff] }
 0x36d   : > { %v6122_v17 = vpop.f32.mrf.mxu0  ;;  %v6135_v57 = vpop.f32.mrf.mxu1 }
 0x36e   : > { %6198 = vmatpush.bf16.msrb.mxu2 %v9134_v30  ;;  %6211 = vmatpush.bf16.msrb.mxu3 %v9262_v16 }
 0x371   : > { %6199 = vmatmul.bf16.vlgmr.msrb.gmra.mxu2 %v13754_v20  ;;  %6212 = vmatmul.bf16.vlgmr.msrb.gmra.mxu3 %v13758_v11 }
 0x375   : > { %v6124_v52 = vpop.f32.mrf.mxu0  ;;  %v6137_v54 = vpop.f32.mrf.mxu1 }
 0x376   : > { %v5992_v62 = vpop.f32.mrf.mxu2  ;;  %v6005_v49 = vpop.f32.mrf.mxu3 }
 0x377   : > { %v5993_v13 = vadd.f32 %v5992_v62, %v5980_v27 }
 0x379   : > { %v6006_v11 = vadd.f32 %v6005_v49, %v5993_v13 }
 0x37b   : > { %v6019_v32 = vadd.f32 %v15039_v42, %v6006_v11 }
 0x37d   : > { %v6032_v38 = vadd.f32 %v15041_v14, %v6019_v32 }
 0x37e   : > { %v5994_v47 = vpop.f32.mrf.mxu2  ;;  %v6007_v50 = vpop.f32.mrf.mxu3 }
 0x38d   : > { %v6174_v3 = vpop.f32.mrf.mxu0  ;;  %v6187_v20 = vpop.f32.mrf.mxu1 }
 0x394   : > { %v6044_v22 = vpop.f32.mrf.mxu2  ;;  %v6057_v25 = vpop.f32.mrf.mxu3 }
 0x395   : > { %v6176_v28 = vpop.f32.mrf.mxu0  ;;  %v6189_v29 = vpop.f32.mrf.mxu1  ;;  %v6045_v39 = vadd.f32 %v6044_v22, %v6032_v38 }
 0x397   : > { %v6058_v23 = vadd.f32 %v6057_v25, %v6045_v39 }
 0x399   : > { %v6228_v33 = vadd.f32 %v6220_v26, %v6058_v23 }
 0x39b   : > { %v6232_v9 = vadd.f32 %v10158_v34, %v6228_v33 }
 0x39c   : > { %v6046_v44 = vpop.f32.mrf.mxu2  ;;  %v6059_v7 = vpop.f32.mrf.mxu3 }
 0x39d   : > { %6236 = vst [vmem:[%s14703_s12 + $0x10] sm:$0xff] %v6232_v9 }
 0x3b4   : > { %v6096_v4 = vpop.f32.mrf.mxu2  ;;  %v6109_v40 = vpop.f32.mrf.mxu3 }
 0x3b5   : > { %v6097_v14 = vadd.f32 %v6096_v4, %v15160_v35 }
 0x3b7   : > { %v6110_v18 = vadd.f32 %v6109_v40, %v6097_v14 }
 0x3b9   : > { %v6123_v21 = vadd.f32 %v6122_v17, %v6110_v18 }
 0x3bb   : > { %v6136_v0 = vadd.f32 %v6135_v57, %v6123_v21 }
 0x3bc   : > { %v6098_v55 = vpop.f32.mrf.mxu2  ;;  %v6111_v1 = vpop.f32.mrf.mxu3 }
 0x3d4   : > { %v6148_v60 = vpop.f32.mrf.mxu2  ;;  %v6161_v42 = vpop.f32.mrf.mxu3 }
 0x3d5   : > { %v6149_v51 = vadd.f32 %v6148_v60, %v6136_v0 }
 0x3d7   : > { %v6162_v59 = vadd.f32 %v6161_v42, %v6149_v51 }
 0x3d9   : > { %v6175_v61 = vadd.f32 %v6174_v3, %v6162_v59 }
 0x3db   : > { %v6188_v15 = vadd.f32 %v6187_v20, %v6175_v61 }
 0x3dc   : > { %v6150_v48 = vpop.f32.mrf.mxu2  ;;  %v6163_v43 = vpop.f32.mrf.mxu3 }
 0x3f4   : > { %v6200_v6 = vpop.f32.mrf.mxu2  ;;  %v6213_v45 = vpop.f32.mrf.mxu3 }
 0x3f5   : > { %v6201_v46 = vadd.f32 %v6200_v6, %v6188_v15 }
 0x3f7   : > { %v6214_v36 = vadd.f32 %v6213_v45, %v6201_v46 }
 0x3f9   : > { %v6229_v5 = vadd.f32 %v6221_v63, %v6214_v36 }
 0x3fb   : > { %v6233_v35 = vadd.f32 %v10159_v10, %v6229_v5 }
 0x3fc   : > { %v6202_v8 = vpop.f32.mrf.mxu2  ;;  %v6215_v56 = vpop.f32.mrf.mxu3 }
 0x3fd   : > { %6237 = vst [vmem:[%s14703_s12 + $0x18] sm:$0xff] %v6233_v35 }
 0x3fe PF: > { %s14_s15 = sadd.s32 1, %s10166_s15  }
 0x3ff   : > { %p11_p4 = scmp.ge.s32.totalorder %s14_s15, 4  }
 0x401   :  { %13 = sbr.rel (!%p11_p4) target bundleno = 1 (0x1), region = 67 }

</bundles_post_ra>
